<compile_context>
chip_gen: v7x
topology: tpu7x:2x2x1
jax: 0.10.0
libtpu: 0.0.40
codegen_flags: <defaults>
</compile_context>

<pallas_src>
import functools

import jax
import jax.numpy as jnp
from jax.experimental import pallas as pl
from jax.experimental.pallas import tpu as pltpu


# ---------------------------------------------------------------------------
# Kernel
# ---------------------------------------------------------------------------
def _upsample_conv3x3_kernel(xp_ref, w_ref, b_ref, o_ref, col_ref, *, H, W, C):
    """Fused nearest-2x upsample + 3x3 conv (stride 1, pad 1) for one image.

    xp_ref : (1, H+2, W+2, C) f32  zero-padded low-res input, channels-last
    w_ref  : (4, 2, 2C, C)    bf16 folded sub-pixel weights [s=2a+b, u, (v,ci), co]
    b_ref  : (1, C)           f32  bias
    o_ref  : (1, 4, H*W, C)        out[0, 2a+b, i*W+j, :] == y_up[2i+a, 2j+b, :]
    col_ref: VMEM ((H+2)*W, 3C) bf16  column-shifted planes concatenated on lanes
    """
    HW = H * W

    # Stage 1: three whole-plane, column-shifted, row-flattened copies of the
    # padded image, concatenated along the channel (lane) axis and cast to
    # bf16.  Every MXU operand below is then a contiguous, tile-aligned slice.
    for cv in range(3):
        col_ref[:, cv * C:(cv + 1) * C] = (
            xp_ref[0, :, cv:cv + W, :]
            .reshape((H + 2) * W, C)
            .astype(col_ref.dtype))

    bias = b_ref[...]                                   # (1, C) f32, broadcasts

    # Stage 2: 4 sub-pixel outputs; each is two chained K=2C MXU dots
    # accumulated as a value expression (f32) -> single store per parity.
    for s in range(4):                                  # output parity (a, b)
        a, b = divmod(s, 2)

        def win(u, _a=a, _b=b):
            r0 = (_a + u) * W
            return col_ref[r0:r0 + HW, _b * C:(_b + 2) * C]   # (HW, 2C) bf16

        res = (jnp.dot(win(0), w_ref[s, 0], preferred_element_type=jnp.float32)
               + jnp.dot(win(1), w_ref[s, 1], preferred_element_type=jnp.float32)
               + bias)
        o_ref[0, s] = res.astype(o_ref.dtype)


# ---------------------------------------------------------------------------
# Weight folding: upsample-2x ∘ conv3x3  ->  4 sub-pixel 2x2 convs, K-fused
# ---------------------------------------------------------------------------
def _subpixel_weights_kfused(w_oihw):
    """(Cout, Cin, 3, 3) PyTorch layout -> (4, 2, 2*Cin, Cout).

    For output parity a, the 3 kernel rows (dy=0,1,2) read low-res rows at
    relative offsets (0,1,1) if a==0 and (1,1,2) if a==1 (same for columns).
    Taps hitting the same low-res pixel are pre-summed -> an effective 2x2
    kernel per (a, b).  The two column taps (v=0,1) are then concatenated
    along Cin so each parity needs only 2 dots with K=2*Cin.
    """
    wt = jnp.transpose(w_oihw, (2, 3, 1, 0)).astype(jnp.float32)  # (dy,dx,Ci,Co)
    groups = {0: ((0,), (1, 2)), 1: ((0, 1), (2,))}               # taps per offset
    subs = []
    for a in (0, 1):
        rg = groups[a]
        for b in (0, 1):
            cg = groups[b]
            per_u = []
            for u in (0, 1):
                taps = [sum(wt[dy, dx] for dy in rg[u] for dx in cg[v])
                        for v in (0, 1)]                          # 2 x (Ci, Co)
                per_u.append(jnp.concatenate(taps, axis=0))       # (2Ci, Co)
            subs.append(jnp.stack(per_u, axis=0))                 # (2, 2Ci, Co)
    return jnp.stack(subs, axis=0)                                # (4, 2, 2Ci, Co)


# ---------------------------------------------------------------------------
# Forward wrapper (PyTorch-facing: NCHW in, NCHW out)
# ---------------------------------------------------------------------------
def upsample_forward(x_nchw, weight_oihw, bias):
    """UpSample.forward: F.interpolate(x, 2, 'nearest') then Conv2d(C, C, 3, pad=1).

    x_nchw: (N, C, H, W)   weight_oihw: (C, C, 3, 3)   bias: (C,)
    returns (N, C, 2H, 2W)
    """
    N, C, H, W = x_nchw.shape
    HW = H * W

    # Layout plumbing (one fused XLA pass on the small low-res tensor):
    # NCHW -> NHWC with a 1-pixel zero halo.
    xp = jnp.pad(jnp.transpose(x_nchw, (0, 2, 3, 1)),
                 ((0, 0), (1, 1), (1, 1), (0, 0)))
    weff = _subpixel_weights_kfused(weight_oihw).astype(jnp.bfloat16)
    b2 = bias.reshape(1, C).astype(jnp.float32)

    kernel = functools.partial(_upsample_conv3x3_kernel, H=H, W=W, C=C)
    out = pl.pallas_call(
        kernel,
        out_shape=jax.ShapeDtypeStruct((N, 4, HW, C), x_nchw.dtype),
        grid=(N,),
        in_specs=[
            pl.BlockSpec((1, H + 2, W + 2, C), lambda n: (n, 0, 0, 0)),
            pl.BlockSpec((4, 2, 2 * C, C), lambda n: (0, 0, 0, 0)),
            pl.BlockSpec((1, C), lambda n: (0, 0)),
        ],
        out_specs=pl.BlockSpec((1, 4, HW, C), lambda n: (n, 0, 0, 0)),
        scratch_shapes=[
            pltpu.VMEM(((H + 2) * W, 3 * C), jnp.bfloat16),   # col-shifted planes
        ],
        compiler_params=pltpu.CompilerParams(
            dimension_semantics=("parallel",)),               # batch over both TCs
    )(xp, weff, b2)

    # Sub-pixel de-interleave fused into the (spec-required) NHWC->NCHW output
    # transpose: out[n, 2a+b, i*W+j, c] -> y[n, c, 2i+a, 2j+b].
    out = out.reshape(N, 2, 2, H, W, C).transpose(0, 5, 3, 1, 4, 2)
    return out.reshape(N, C, 2 * H, 2 * W)


# ---------------------------------------------------------------------------
# Demo / self-check
# ---------------------------------------------------------------------------
if __name__ == "__main__":
    key = jax.random.PRNGKey(0)
    kx, kw, kb = jax.random.split(key, 3)

    # Diffusion-latent-like shapes; C=128 keeps the output lane-dense.
    N, C, H, W = 2, 128, 16, 16
    x = jax.random.normal(kx, (N, C, H, W), jnp.float32)
    w = 0.05 * jax.random.normal(kw, (C, C, 3, 3), jnp.float32)
    b = 0.2 * jax.random.normal(kb, (C,), jnp.float32)

    fwd = jax.jit(upsample_forward)
    out = jax.block_until_ready(fwd(x, w, b))
    assert out.shape == (N, C, 2 * H, 2 * W) and out.dtype == jnp.float32

    # --- Check 1 (strict, catches indexing/parity bugs): reference that is
    # bit-faithful to the kernel's bf16-operand / f32-accumulate math.
    xp_bf = jnp.pad(jnp.transpose(x, (0, 2, 3, 1)),
                    ((0, 0), (1, 1), (1, 1), (0, 0))).astype(jnp.bfloat16)
    weff_bf = _subpixel_weights_kfused(w).astype(jnp.bfloat16)
    ys = []
    for s in range(4):
        a_, b_ = divmod(s, 2)
        res = jnp.zeros((N, H, W, C), jnp.float32) + b.astype(jnp.float32)
        for u in (0, 1):
            win = jnp.concatenate(
                [xp_bf[:, a_ + u:a_ + u + H, b_ + v:b_ + v + W, :] for v in (0, 1)],
                axis=-1).astype(jnp.float32)                       # (N,H,W,2C)
            res = res + jnp.einsum(
                "nhwk,ko->nhwo", win, weff_bf[s, u].astype(jnp.float32),
                precision=jax.lax.Precision.HIGHEST)
        ys.append(res)
    ref_bf = jnp.stack(ys, axis=1).reshape(N, 2, 2, H, W, C)
    ref_bf = ref_bf.transpose(0, 5, 3, 1, 4, 2).reshape(N, C, 2 * H, 2 * W)
    err_strict = float(jnp.max(jnp.abs(out - ref_bf)))
    assert err_strict < 1e-3, f"strict (bf16-emulated) max abs err: {err_strict}"

    # --- Check 2 (fidelity sanity vs the true f32 PyTorch forward):
    # nearest-2x upsample + conv3x3; tolerance bounded by bf16 operand rounding.
    up = jnp.repeat(jnp.repeat(x, 2, axis=2), 2, axis=3)
    ref = jax.lax.conv_general_dilated(
        up, w, window_strides=(1, 1), padding=((1, 1), (1, 1)),
        dimension_numbers=("NCHW", "OIHW", "NCHW"),
        precision=jax.lax.Precision.HIGHEST) + b[None, :, None, None]
    err_f32 = float(jnp.max(jnp.abs(out - ref)))
    assert err_f32 < 1e-1, f"f32-reference max abs err: {err_f32}"

    print("KERNEL_OK")
</pallas_src>

<mosaic_0001>
module attributes {stable_mosaic.version = 11 : i64} {
  func.func @_upsample_conv3x3_kernel(%arg0: i32, %arg1: memref<1x18x18x128xf32, #tpu.memory_space<vmem>>, %arg2: memref<4x2x256x128xbf16, #tpu.memory_space<vmem>>, %arg3: memref<1x128xf32, #tpu.memory_space<vmem>>, %arg4: memref<1x4x256x128xf32, #tpu.memory_space<vmem>>, %arg5: memref<288x384xbf16, #tpu.memory_space<vmem>>) attributes {dimension_semantics = [#tpu.dimension_semantics<parallel>], iteration_bounds = array<i64: 2>, scalar_prefetch = 0 : i64, scratch_operands = 1 : i64, tpu.core_type = #tpu.core_type<tc>, window_params = [{transform_indices = @transform_0, window_bounds = array<i64: 1, 18, 18, 128>}, {pipeline_mode = #tpu.pipeline_mode<synchronous>, transform_indices = @transform_1, window_bounds = array<i64: 4, 2, 256, 128>}, {pipeline_mode = #tpu.pipeline_mode<synchronous>, transform_indices = @transform_2, window_bounds = array<i64: 1, 128>}, {transform_indices = @transform_3, window_bounds = array<i64: 1, 4, 256, 128>}]} {
    %c0 = arith.constant 0 : index
    %c0_0 = arith.constant 0 : index
    %c0_1 = arith.constant 0 : index
    %c0_2 = arith.constant 0 : index
    %0 = vector.load %arg1[%c0, %c0_0, %c0_1, %c0_2] : memref<1x18x18x128xf32, #tpu.memory_space<vmem>>, vector<1x18x16x128xf32>
    %1 = vector.shape_cast %0 : vector<1x18x16x128xf32> to vector<18x16x128xf32>
    %2 = vector.shape_cast %1 : vector<18x16x128xf32> to vector<288x128xf32>
    %3 = arith.truncf %2 : vector<288x128xf32> to vector<288x128xbf16>
    %c0_3 = arith.constant 0 : index
    %c0_4 = arith.constant 0 : index
    %4 = vector.load %arg5[%c0_3, %c0_4] : memref<288x384xbf16, #tpu.memory_space<vmem>>, vector<288x128xbf16>
    tpu.vector_store %arg5[%c0_3, %c0_4], %3 {strides = array<i32>} : memref<288x384xbf16, #tpu.memory_space<vmem>>, vector<288x128xbf16>,
    %c0_5 = arith.constant 0 : index
    %c0_6 = arith.constant 0 : index
    %c1 = arith.constant 1 : index
    %c0_7 = arith.constant 0 : index
    %5 = vector.load %arg1[%c0_5, %c0_6, %c1, %c0_7] : memref<1x18x18x128xf32, #tpu.memory_space<vmem>>, vector<1x18x16x128xf32>
    %6 = vector.shape_cast %5 : vector<1x18x16x128xf32> to vector<18x16x128xf32>
    %7 = vector.shape_cast %6 : vector<18x16x128xf32> to vector<288x128xf32>
    %8 = arith.truncf %7 : vector<288x128xf32> to vector<288x128xbf16>
    %c0_8 = arith.constant 0 : index
    %c128 = arith.constant 128 : index
    %9 = vector.load %arg5[%c0_8, %c128] : memref<288x384xbf16, #tpu.memory_space<vmem>>, vector<288x128xbf16>
    tpu.vector_store %arg5[%c0_8, %c128], %8 {strides = array<i32>} : memref<288x384xbf16, #tpu.memory_space<vmem>>, vector<288x128xbf16>,
    %c0_9 = arith.constant 0 : index
    %c0_10 = arith.constant 0 : index
    %c2 = arith.constant 2 : index
    %c0_11 = arith.constant 0 : index
    %10 = vector.load %arg1[%c0_9, %c0_10, %c2, %c0_11] : memref<1x18x18x128xf32, #tpu.memory_space<vmem>>, vector<1x18x16x128xf32>
    %11 = vector.shape_cast %10 : vector<1x18x16x128xf32> to vector<18x16x128xf32>
    %12 = vector.shape_cast %11 : vector<18x16x128xf32> to vector<288x128xf32>
    %13 = arith.truncf %12 : vector<288x128xf32> to vector<288x128xbf16>
    %c0_12 = arith.constant 0 : index
    %c256 = arith.constant 256 : index
    %14 = vector.load %arg5[%c0_12, %c256] : memref<288x384xbf16, #tpu.memory_space<vmem>>, vector<288x128xbf16>
    tpu.vector_store %arg5[%c0_12, %c256], %13 {strides = array<i32>} : memref<288x384xbf16, #tpu.memory_space<vmem>>, vector<288x128xbf16>,
    %c0_13 = arith.constant 0 : index
    %c0_14 = arith.constant 0 : index
    %15 = vector.load %arg3[%c0_13, %c0_14] : memref<1x128xf32, #tpu.memory_space<vmem>>, vector<1x128xf32>
    %c0_15 = arith.constant 0 : index
    %c0_16 = arith.constant 0 : index
    %16 = vector.load %arg5[%c0_15, %c0_16] : memref<288x384xbf16, #tpu.memory_space<vmem>>, vector<256x256xbf16>
    %c0_17 = arith.constant 0 : index
    %c0_18 = arith.constant 0 : index
    %c0_19 = arith.constant 0 : index
    %c0_20 = arith.constant 0 : index
    %17 = vector.load %arg2[%c0_17, %c0_18, %c0_19, %c0_20] : memref<4x2x256x128xbf16, #tpu.memory_space<vmem>>, vector<1x1x256x128xbf16>
    %18 = vector.shape_cast %17 : vector<1x1x256x128xbf16> to vector<256x128xbf16>
    %cst = arith.constant dense<0.000000e+00> : vector<256x128xf32>
    %19 = tpu.matmul %16, %18, %cst {dimension_numbers = #tpu.dot_dimension_numbers<[1], [0], [0], [1], [0, 0, 1, 1], [], []>} : vector<256x256xbf16>, vector<256x128xbf16>, vector<256x128xf32> -> vector<256x128xf32>
    %c16 = arith.constant 16 : index
    %c0_21 = arith.constant 0 : index
    %20 = vector.load %arg5[%c16, %c0_21] : memref<288x384xbf16, #tpu.memory_space<vmem>>, vector<256x256xbf16>
    %c0_22 = arith.constant 0 : index
    %c1_23 = arith.constant 1 : index
    %c0_24 = arith.constant 0 : index
    %c0_25 = arith.constant 0 : index
    %21 = vector.load %arg2[%c0_22, %c1_23, %c0_24, %c0_25] : memref<4x2x256x128xbf16, #tpu.memory_space<vmem>>, vector<1x1x256x128xbf16>
    %22 = vector.shape_cast %21 : vector<1x1x256x128xbf16> to vector<256x128xbf16>
    %cst_26 = arith.constant dense<0.000000e+00> : vector<256x128xf32>
    %23 = tpu.matmul %20, %22, %cst_26 {dimension_numbers = #tpu.dot_dimension_numbers<[1], [0], [0], [1], [0, 0, 1, 1], [], []>} : vector<256x256xbf16>, vector<256x128xbf16>, vector<256x128xf32> -> vector<256x128xf32>
    %24 = arith.addf %19, %23 : vector<256x128xf32>
    %25 = vector.broadcast %15 : vector<1x128xf32> to vector<256x128xf32>
    %26 = arith.addf %24, %25 : vector<256x128xf32>
    %c0_27 = arith.constant 0 : index
    %c0_28 = arith.constant 0 : index
    %c0_29 = arith.constant 0 : index
    %c0_30 = arith.constant 0 : index
    %27 = vector.load %arg4[%c0_27, %c0_28, %c0_29, %c0_30] : memref<1x4x256x128xf32, #tpu.memory_space<vmem>>, vector<1x1x256x128xf32>
    %28 = vector.shape_cast %27 : vector<1x1x256x128xf32> to vector<256x128xf32>
    %29 = vector.shape_cast %26 : vector<256x128xf32> to vector<1x1x256x128xf32>
    tpu.vector_store %arg4[%c0_27, %c0_28, %c0_29, %c0_30], %29 {strides = array<i32>} : memref<1x4x256x128xf32, #tpu.memory_space<vmem>>, vector<1x1x256x128xf32>,
    %c0_31 = arith.constant 0 : index
    %c128_32 = arith.constant 128 : index
    %30 = vector.load %arg5[%c0_31, %c128_32] : memref<288x384xbf16, #tpu.memory_space<vmem>>, vector<256x256xbf16>
    %c1_33 = arith.constant 1 : index
    %c0_34 = arith.constant 0 : index
    %c0_35 = arith.constant 0 : index
    %c0_36 = arith.constant 0 : index
    %31 = vector.load %arg2[%c1_33, %c0_34, %c0_35, %c0_36] : memref<4x2x256x128xbf16, #tpu.memory_space<vmem>>, vector<1x1x256x128xbf16>
    %32 = vector.shape_cast %31 : vector<1x1x256x128xbf16> to vector<256x128xbf16>
    %cst_37 = arith.constant dense<0.000000e+00> : vector<256x128xf32>
    %33 = tpu.matmul %30, %32, %cst_37 {dimension_numbers = #tpu.dot_dimension_numbers<[1], [0], [0], [1], [0, 0, 1, 1], [], []>} : vector<256x256xbf16>, vector<256x128xbf16>, vector<256x128xf32> -> vector<256x128xf32>
    %c16_38 = arith.constant 16 : index
    %c128_39 = arith.constant 128 : index
    %34 = vector.load %arg5[%c16_38, %c128_39] : memref<288x384xbf16, #tpu.memory_space<vmem>>, vector<256x256xbf16>
    %c1_40 = arith.constant 1 : index
    %c1_41 = arith.constant 1 : index
    %c0_42 = arith.constant 0 : index
    %c0_43 = arith.constant 0 : index
    %35 = vector.load %arg2[%c1_40, %c1_41, %c0_42, %c0_43] : memref<4x2x256x128xbf16, #tpu.memory_space<vmem>>, vector<1x1x256x128xbf16>
    %36 = vector.shape_cast %35 : vector<1x1x256x128xbf16> to vector<256x128xbf16>
    %cst_44 = arith.constant dense<0.000000e+00> : vector<256x128xf32>
    %37 = tpu.matmul %34, %36, %cst_44 {dimension_numbers = #tpu.dot_dimension_numbers<[1], [0], [0], [1], [0, 0, 1, 1], [], []>} : vector<256x256xbf16>, vector<256x128xbf16>, vector<256x128xf32> -> vector<256x128xf32>
    %38 = arith.addf %33, %37 : vector<256x128xf32>
    %39 = vector.broadcast %15 : vector<1x128xf32> to vector<256x128xf32>
    %40 = arith.addf %38, %39 : vector<256x128xf32>
    %c0_45 = arith.constant 0 : index
    %c1_46 = arith.constant 1 : index
    %c0_47 = arith.constant 0 : index
    %c0_48 = arith.constant 0 : index
    %41 = vector.load %arg4[%c0_45, %c1_46, %c0_47, %c0_48] : memref<1x4x256x128xf32, #tpu.memory_space<vmem>>, vector<1x1x256x128xf32>
    %42 = vector.shape_cast %41 : vector<1x1x256x128xf32> to vector<256x128xf32>
    %43 = vector.shape_cast %40 : vector<256x128xf32> to vector<1x1x256x128xf32>
    tpu.vector_store %arg4[%c0_45, %c1_46, %c0_47, %c0_48], %43 {strides = array<i32>} : memref<1x4x256x128xf32, #tpu.memory_space<vmem>>, vector<1x1x256x128xf32>,
    %c16_49 = arith.constant 16 : index
    %c0_50 = arith.constant 0 : index
    %44 = vector.load %arg5[%c16_49, %c0_50] : memref<288x384xbf16, #tpu.memory_space<vmem>>, vector<256x256xbf16>
    %c2_51 = arith.constant 2 : index
    %c0_52 = arith.constant 0 : index
    %c0_53 = arith.constant 0 : index
    %c0_54 = arith.constant 0 : index
    %45 = vector.load %arg2[%c2_51, %c0_52, %c0_53, %c0_54] : memref<4x2x256x128xbf16, #tpu.memory_space<vmem>>, vector<1x1x256x128xbf16>
    %46 = vector.shape_cast %45 : vector<1x1x256x128xbf16> to vector<256x128xbf16>
    %cst_55 = arith.constant dense<0.000000e+00> : vector<256x128xf32>
    %47 = tpu.matmul %44, %46, %cst_55 {dimension_numbers = #tpu.dot_dimension_numbers<[1], [0], [0], [1], [0, 0, 1, 1], [], []>} : vector<256x256xbf16>, vector<256x128xbf16>, vector<256x128xf32> -> vector<256x128xf32>
    %c32 = arith.constant 32 : index
    %c0_56 = arith.constant 0 : index
    %48 = vector.load %arg5[%c32, %c0_56] : memref<288x384xbf16, #tpu.memory_space<vmem>>, vector<256x256xbf16>
    %c2_57 = arith.constant 2 : index
    %c1_58 = arith.constant 1 : index
    %c0_59 = arith.constant 0 : index
    %c0_60 = arith.constant 0 : index
    %49 = vector.load %arg2[%c2_57, %c1_58, %c0_59, %c0_60] : memref<4x2x256x128xbf16, #tpu.memory_space<vmem>>, vector<1x1x256x128xbf16>
    %50 = vector.shape_cast %49 : vector<1x1x256x128xbf16> to vector<256x128xbf16>
    %cst_61 = arith.constant dense<0.000000e+00> : vector<256x128xf32>
    %51 = tpu.matmul %48, %50, %cst_61 {dimension_numbers = #tpu.dot_dimension_numbers<[1], [0], [0], [1], [0, 0, 1, 1], [], []>} : vector<256x256xbf16>, vector<256x128xbf16>, vector<256x128xf32> -> vector<256x128xf32>
    %52 = arith.addf %47, %51 : vector<256x128xf32>
    %53 = vector.broadcast %15 : vector<1x128xf32> to vector<256x128xf32>
    %54 = arith.addf %52, %53 : vector<256x128xf32>
    %c0_62 = arith.constant 0 : index
    %c2_63 = arith.constant 2 : index
    %c0_64 = arith.constant 0 : index
    %c0_65 = arith.constant 0 : index
    %55 = vector.load %arg4[%c0_62, %c2_63, %c0_64, %c0_65] : memref<1x4x256x128xf32, #tpu.memory_space<vmem>>, vector<1x1x256x128xf32>
    %56 = vector.shape_cast %55 : vector<1x1x256x128xf32> to vector<256x128xf32>
    %57 = vector.shape_cast %54 : vector<256x128xf32> to vector<1x1x256x128xf32>
    tpu.vector_store %arg4[%c0_62, %c2_63, %c0_64, %c0_65], %57 {strides = array<i32>} : memref<1x4x256x128xf32, #tpu.memory_space<vmem>>, vector<1x1x256x128xf32>,
    %c16_66 = arith.constant 16 : index
    %c128_67 = arith.constant 128 : index
    %58 = vector.load %arg5[%c16_66, %c128_67] : memref<288x384xbf16, #tpu.memory_space<vmem>>, vector<256x256xbf16>
    %c3 = arith.constant 3 : index
    %c0_68 = arith.constant 0 : index
    %c0_69 = arith.constant 0 : index
    %c0_70 = arith.constant 0 : index
    %59 = vector.load %arg2[%c3, %c0_68, %c0_69, %c0_70] : memref<4x2x256x128xbf16, #tpu.memory_space<vmem>>, vector<1x1x256x128xbf16>
    %60 = vector.shape_cast %59 : vector<1x1x256x128xbf16> to vector<256x128xbf16>
    %cst_71 = arith.constant dense<0.000000e+00> : vector<256x128xf32>
    %61 = tpu.matmul %58, %60, %cst_71 {dimension_numbers = #tpu.dot_dimension_numbers<[1], [0], [0], [1], [0, 0, 1, 1], [], []>} : vector<256x256xbf16>, vector<256x128xbf16>, vector<256x128xf32> -> vector<256x128xf32>
    %c32_72 = arith.constant 32 : index
    %c128_73 = arith.constant 128 : index
    %62 = vector.load %arg5[%c32_72, %c128_73] : memref<288x384xbf16, #tpu.memory_space<vmem>>, vector<256x256xbf16>
    %c3_74 = arith.constant 3 : index
    %c1_75 = arith.constant 1 : index
    %c0_76 = arith.constant 0 : index
    %c0_77 = arith.constant 0 : index
    %63 = vector.load %arg2[%c3_74, %c1_75, %c0_76, %c0_77] : memref<4x2x256x128xbf16, #tpu.memory_space<vmem>>, vector<1x1x256x128xbf16>
    %64 = vector.shape_cast %63 : vector<1x1x256x128xbf16> to vector<256x128xbf16>
    %cst_78 = arith.constant dense<0.000000e+00> : vector<256x128xf32>
    %65 = tpu.matmul %62, %64, %cst_78 {dimension_numbers = #tpu.dot_dimension_numbers<[1], [0], [0], [1], [0, 0, 1, 1], [], []>} : vector<256x256xbf16>, vector<256x128xbf16>, vector<256x128xf32> -> vector<256x128xf32>
    %66 = arith.addf %61, %65 : vector<256x128xf32>
    %67 = vector.broadcast %15 : vector<1x128xf32> to vector<256x128xf32>
    %68 = arith.addf %66, %67 : vector<256x128xf32>
    %c0_79 = arith.constant 0 : index
    %c3_80 = arith.constant 3 : index
    %c0_81 = arith.constant 0 : index
    %c0_82 = arith.constant 0 : index
    %69 = vector.load %arg4[%c0_79, %c3_80, %c0_81, %c0_82] : memref<1x4x256x128xf32, #tpu.memory_space<vmem>>, vector<1x1x256x128xf32>
    %70 = vector.shape_cast %69 : vector<1x1x256x128xf32> to vector<256x128xf32>
    %71 = vector.shape_cast %68 : vector<256x128xf32> to vector<1x1x256x128xf32>
    tpu.vector_store %arg4[%c0_79, %c3_80, %c0_81, %c0_82], %71 {strides = array<i32>} : memref<1x4x256x128xf32, #tpu.memory_space<vmem>>, vector<1x1x256x128xf32>,
    return
  }
  func.func @transform_0(%arg0: i32) -> (i32, i32, i32, i32) {
    %c0_i32 = arith.constant 0 : i32
    %c0_i32_0 = arith.constant 0 : i32
    %c0_i32_1 = arith.constant 0 : i32
    %c0_i32_2 = arith.constant 0 : i32
    return %arg0, %c0_i32, %c0_i32_0, %c0_i32_1 : i32, i32, i32, i32
  }
  func.func @transform_1(%arg0: i32) -> (i32, i32, i32, i32) {
    %c0_i32 = arith.constant 0 : i32
    %c0_i32_0 = arith.constant 0 : i32
    %c0_i32_1 = arith.constant 0 : i32
    %c0_i32_2 = arith.constant 0 : i32
    %c0_i32_3 = arith.constant 0 : i32
    return %c0_i32, %c0_i32_0, %c0_i32_1, %c0_i32_2 : i32, i32, i32, i32
  }
  func.func @transform_2(%arg0: i32) -> (i32, i32) {
    %c0_i32 = arith.constant 0 : i32
    %c0_i32_0 = arith.constant 0 : i32
    %c0_i32_1 = arith.constant 0 : i32
    return %c0_i32, %c0_i32_0 : i32, i32
  }
  func.func @transform_3(%arg0: i32) -> (i32, i32, i32, i32) {
    %c0_i32 = arith.constant 0 : i32
    %c0_i32_0 = arith.constant 0 : i32
    %c0_i32_1 = arith.constant 0 : i32
    %c0_i32_2 = arith.constant 0 : i32
    return %arg0, %c0_i32, %c0_i32_0, %c0_i32_1 : i32, i32, i32, i32
  }
}

</mosaic_0001>

<bundles_post_ra>
// kernel: upsample_forward.1
= control target key start
LH: loop header
LB: loop body
LE: loop exit
PB: predicated region body
PF: predicated region fallthrough
CT: control target
= control target key end

     0   :  { %s4717_s12 = smov 0   ;;  %s5861_s0 = inlined_call_operand.vmem [shape: f32[2,18,18,128], index: 0, kind: input, shape index: {}]   ;;  %s5862_s1 = inlined_call_operand.vmem [shape: bf16[4,2,256,128], index: 1, kind: input, shape index: {}]   ;;  %s5863_s2 = inlined_call_operand.vmem [shape: f32[1,128], index: 2, kind: input, shape index: {}]   ;;  %s5864_s3 = inlined_call_operand.vmem [shape: f32[2,4,256,128], index: 3, kind: output, shape index: {}]  }
   0x1 LB: > { %s3194_s13 = sadd.s32 4294967295, %s4695_s12   ;;  %p3198_p0 = scmp.ge.s32.totalorder %s4695_s12, 1  ;;  %s4695_s12 = sphi %s4717_s12, %s13_s12  }
   0x2   : > { %p137_p1 = scmp.lt.s32.totalorder %s4695_s12, 3 }
   0x4   : > { %p138_p2 = pnand %p3198_p0, %p137_p1 }
   0x6   : > { %141 = sbr.rel (%p138_p2) target bundleno = 774 (0x306), region = 32 }
   0xd   : > { %v4559_v0 = vld [vmem:[%s5862_s1 + $0xc0] sm:$0xff]   ;;  %v4563_v4 = vld [vmem:[%s5862_s1 + $0xc8] sm:$0xff]   ;;  %v4567_v8 = vld [vmem:[%s5862_s1 + $0xd0] sm:$0xff]   ;;  %p161_p3 = scmp.lt.s32.totalorder %s3194_s13, 1 }
   0xe   : > { %v4560_v1 = vld [vmem:[%s5862_s1 + $0x40] sm:$0xff]   ;;  %3654 = vmatprep.subr.bf16.mxu0 %v4559_v0  ;;  %v4564_v5 = vld [vmem:[%s5862_s1 + $0x48] sm:$0xff]   ;;  %v4568_v9 = vld [vmem:[%s5862_s1 + $0x50] sm:$0xff]  }
   0xf   : > { %v4561_v2 = vld [vmem:[%s5862_s1 + $0x80] sm:$0xff]   ;;  %3766 = vmatprep.subr.bf16.mxu1 %v4560_v1  ;;  %v4565_v6 = vld [vmem:[%s5862_s1 + $0x88] sm:$0xff]   ;;  %v4569_v10 = vld [vmem:[%s5862_s1 + $0x90] sm:$0xff]   ;;  %s5878_s13 = smov (!%p161_p3, %s3194_s13), 1 }
  0x10   : > { %v4562_v3 = vld [vmem:[%s5862_s1] sm:$0xff]   ;;  %3655 = vmatpush3.bf16.msra.mxu0 %v4561_v2  ;;  %v4566_v7 = vld [vmem:[%s5862_s1 + $0x8] sm:$0xff]   ;;  %v4570_v11 = vld [vmem:[%s5862_s1 + $0x10] sm:$0xff]   ;;  %s4550_s16 = smul.u32 432, %s5878_s13  ;;  %s3653_s19 = sshll.u32 %s5878_s13, 10 }
  0x11   : > { %3767 = vmatpush3.bf16.msra.mxu1 %v4562_v3  ;;  %3656 = vmatprep.subr.bf16.mxu0 %v4563_v4  ;;  %v4571_v12 = vld [vmem:[%s5862_s1 + $0xd8] sm:$0xff]   ;;  %v4575_v16 = vld [vmem:[%s5862_s1 + $0xe0] sm:$0xff]   ;;  %v4579_v20 = vld [vmem:[%s5862_s1 + $0xe8] sm:$0xff]   ;;  %s5337_s13 = scalar_lea.vmem %s5864_s3, %s3653_s19 }
  0x12   : > { %3768 = vmatprep.subr.bf16.mxu1 %v4564_v5  ;;  %v4572_v13 = vld [vmem:[%s5862_s1 + $0x58] sm:$0xff]   ;;  %v4576_v17 = vld [vmem:[%s5862_s1 + $0x60] sm:$0xff]   ;;  %v4580_v21 = vld [vmem:[%s5862_s1 + $0x68] sm:$0xff]   ;;  %s4825_s27 = scalar_lea.vmem %s5861_s0, %s4550_s16 }
  0x13   : > { %v4573_v14 = vld [vmem:[%s5862_s1 + $0x98] sm:$0xff]   ;;  %v4577_v18 = vld [vmem:[%s5862_s1 + $0xa0] sm:$0xff]   ;;  %v4581_v22 = vld [vmem:[%s5862_s1 + $0xa8] sm:$0xff]  }
  0x14   : > { %3657 = vmatpush3.bf16.msra.mxu0 %v4565_v6  ;;  %v4574_v15 = vld [vmem:[%s5862_s1 + $0x18] sm:$0xff]   ;;  %v4578_v19 = vld [vmem:[%s5862_s1 + $0x20] sm:$0xff]   ;;  %v4582_v23 = vld [vmem:[%s5862_s1 + $0x28] sm:$0xff]  }
  0x15   : > { %3769 = vmatpush3.bf16.msra.mxu1 %v4566_v7  ;;  %3658 = vmatprep.subr.bf16.mxu0 %v4567_v8  ;;  %v4583_v24 = vld [vmem:[%s5862_s1 + $0xf0] sm:$0xff]   ;;  %v4587_v28 = vld [vmem:[%s5862_s1 + $0xf8] sm:$0xff]   ;;  %v247_v33 = vld [vmem:[%s4825_s27 + $0x21] sm:$0xff] }
  0x16   : > { %3770 = vmatprep.subr.bf16.mxu1 %v4568_v9  ;;  %v4584_v25 = vld [vmem:[%s5862_s1 + $0x70] sm:$0xff]   ;;  %v4588_v29 = vld [vmem:[%s5862_s1 + $0x78] sm:$0xff]   ;;  %v244_v34 = vld [vmem:[%s4825_s27 + $0x1] sm:$0xff] }
  0x17   : > { %v4585_v26 = vld [vmem:[%s5862_s1 + $0xb0] sm:$0xff]   ;;  %v4589_v30 = vld [vmem:[%s5862_s1 + $0xb8] sm:$0xff]   ;;  %v175_v38 = vld [vmem:[%s4825_s27 + $0x20] sm:$0xff] }
  0x18   : > { %3659 = vmatpush3.bf16.msra.mxu0 %v4569_v10  ;;  %v4586_v27 = vld [vmem:[%s5862_s1 + $0x30] sm:$0xff]   ;;  %v4590_v31 = vld [vmem:[%s5862_s1 + $0x38] sm:$0xff]   ;;  %v172_v41 = vld [vmem:[%s4825_s27] sm:$0xff] }
  0x19   : > { %3771 = vmatpush3.bf16.msra.mxu1 %v4570_v11  ;;  %3660 = vmatprep.subr.bf16.mxu0 %v4571_v12  ;;  %v246_v32 = vld [vmem:[%s4825_s27 + $0x19] sm:$0xff]  ;;  %v245_v36 = vld [vmem:[%s4825_s27 + $0x9] sm:$0xff]  ;;  %v248_v48 = vld [vmem:[%s4825_s27 + $0x31] sm:$0xff] }
  0x1a   : > { %3772 = vmatprep.subr.bf16.mxu1 %v4572_v13  ;;  %v4836_v35 = vpack.c.bf16 %v247_v33, %v246_v32  ;;  %v174_v37 = vld [vmem:[%s4825_s27 + $0x18] sm:$0xff]  ;;  %v4841_v39 = vpack.c.bf16 %v245_v36, %v244_v34  ;;  %v173_v42 = vld [vmem:[%s4825_s27 + $0x8] sm:$0xff]  ;;  %v4591_v44 = vld [vmem:[%s5862_s1 + $0x1c0] sm:$0xff]  }
  0x1b   : > { %v4843_v40 = vpack.c.bf16 %v175_v38, %v174_v37  ;;  %v208_v43 = vpack.c.bf16 %v173_v42, %v172_v41  ;;  %v4592_v45 = vld [vmem:[%s5862_s1 + $0x140] sm:$0xff]   ;;  %v176_v50 = vld [vmem:[%s4825_s27 + $0x30] sm:$0xff]  ;;  %v177_v51 = vld [vmem:[%s4825_s27 + $0x38] sm:$0xff] }
  0x1c   : > { %3661 = vmatpush3.bf16.msra.mxu0 %v4573_v14  ;;  %616 = vmatprep.mubr.bf16.mxu0 %v4836_v35  ;;  %v4593_v46 = vld [vmem:[%s5862_s1 + $0x180] sm:$0xff]   ;;  %v4869_v53 = vpack.c.bf16 %v177_v51, %v176_v50  ;;  %v250_v54 = vld [vmem:[%s4825_s27 + $0x49] sm:$0xff]  ;;  %v251_v55 = vld [vmem:[%s4825_s27 + $0x51] sm:$0xff] }
  0x1d   : > { %3773 = vmatpush3.bf16.msra.mxu1 %v4574_v15  ;;  %3662 = vmatprep.subr.bf16.mxu0 %v4575_v16  ;;  %v4594_v47 = vld [vmem:[%s5862_s1 + $0x100] sm:$0xff]   ;;  %v4873_v56 = vpack.c.bf16 %v251_v55, %v250_v54  ;;  %v4595_v57 = vld [vmem:[%s5862_s1 + $0x1c8] sm:$0xff]   ;;  %v179_v61 = vld [vmem:[%s4825_s27 + $0x50] sm:$0xff] }
  0x1e   : > { %3774 = vmatprep.subr.bf16.mxu1 %v4576_v17  ;;  %873 = vmatprep.mubr.bf16.mxu1 %v4841_v39  ;;  %v249_v49 = vld [vmem:[%s4825_s27 + $0x39] sm:$0xff]  ;;  %v4596_v58 = vld [vmem:[%s5862_s1 + $0x148] sm:$0xff]   ;;  %v4599_v2 = vld [vmem:[%s5862_s1 + $0x1d0] sm:$0xff]  }
  0x1f   : > { %v4867_v52 = vpack.c.bf16 %v249_v49, %v248_v48  ;;  %v4597_v59 = vld [vmem:[%s5862_s1 + $0x188] sm:$0xff]   ;;  %v4600_v4 = vld [vmem:[%s5862_s1 + $0x150] sm:$0xff]   ;;  %v180_v7 = vld [vmem:[%s4825_s27 + $0x60] sm:$0xff] }
  0x20   : > { %3663 = vmatpush3.bf16.msra.mxu0 %v4577_v18  ;;  %v178_v60 = vld [vmem:[%s4825_s27 + $0x48] sm:$0xff]  ;;  %v4601_v5 = vld [vmem:[%s5862_s1 + $0x190] sm:$0xff]   ;;  %v254_v9 = vld [vmem:[%s4825_s27 + $0x79] sm:$0xff] }
  0x21   : > { %3775 = vmatpush3.bf16.msra.mxu1 %v4578_v19  ;;  %3664 = vmatprep.subr.bf16.mxu0 %v4579_v20  ;;  %v4598_v62 = vld [vmem:[%s5862_s1 + $0x108] sm:$0xff]   ;;  %v4896_v1 = vpack.c.bf16 %v179_v61, %v178_v60  ;;  %v4602_v6 = vld [vmem:[%s5862_s1 + $0x110] sm:$0xff]   ;;  %v4603_v11 = vld [vmem:[%s5862_s1 + $0x1d8] sm:$0xff]  }
  0x22   : > { %3776 = vmatprep.subr.bf16.mxu1 %v4580_v21  ;;  %v252_v63 = vld [vmem:[%s4825_s27 + $0x61] sm:$0xff]  ;;  %v253_v0 = vld [vmem:[%s4825_s27 + $0x69] sm:$0xff]  ;;  %v4604_v13 = vld [vmem:[%s5862_s1 + $0x158] sm:$0xff]  }
  0x23   : > { %v4901_v3 = vpack.c.bf16 %v253_v0, %v252_v63  ;;  %v181_v8 = vld [vmem:[%s4825_s27 + $0x68] sm:$0xff]  ;;  %v4605_v15 = vld [vmem:[%s5862_s1 + $0x198] sm:$0xff]   ;;  %v183_v18 = vld [vmem:[%s4825_s27 + $0x80] sm:$0xff] }
  0x24   : > { %3665 = vmatpush3.bf16.msra.mxu0 %v4581_v22  ;;  %v255_v10 = vld [vmem:[%s4825_s27 + $0x81] sm:$0xff]  ;;  %v4923_v12 = vpack.c.bf16 %v181_v8, %v180_v7  ;;  %v4606_v16 = vld [vmem:[%s5862_s1 + $0x118] sm:$0xff]   ;;  %v187_v41 = vld [vmem:[%s4825_s27 + $0xb0] sm:$0xff] }
  0x25   : > { %3777 = vmatpush3.bf16.msra.mxu1 %v4582_v23  ;;  %3666 = vmatprep.subr.bf16.mxu0 %v4583_v24  ;;  %v4928_v14 = vpack.c.bf16 %v255_v10, %v254_v9  ;;  %v182_v17 = vld [vmem:[%s4825_s27 + $0x78] sm:$0xff]  ;;  %v4607_v21 = vld [vmem:[%s5862_s1 + $0x1e0] sm:$0xff]   ;;  %v4612_v32 = vld [vmem:[%s5862_s1 + $0x168] sm:$0xff]  }
  0x26   : > { %3778 = vmatprep.subr.bf16.mxu1 %v4584_v25  ;;  %v256_v19 = vld [vmem:[%s4825_s27 + $0x91] sm:$0xff]  ;;  %v257_v20 = vld [vmem:[%s4825_s27 + $0x99] sm:$0xff]  ;;  %v4950_v23 = vpack.c.bf16 %v183_v18, %v182_v17  ;;  %v4613_v33 = vld [vmem:[%s5862_s1 + $0x1a8] sm:$0xff]  }
  0x27   : > { %v4608_v22 = vld [vmem:[%s5862_s1 + $0x160] sm:$0xff]   ;;  %v4955_v25 = vpack.c.bf16 %v257_v20, %v256_v19  ;;  %v4614_v34 = vld [vmem:[%s5862_s1 + $0x128] sm:$0xff]   ;;  %v4615_v42 = vld [vmem:[%s5862_s1 + $0x1f0] sm:$0xff]  }
  0x28   : > { %3667 = vmatpush3.bf16.msra.mxu0 %v4585_v26  ;;  %v4609_v24 = vld [vmem:[%s5862_s1 + $0x1a0] sm:$0xff]   ;;  %v186_v38 = vld [vmem:[%s4825_s27 + $0xa8] sm:$0xff]  ;;  %v4619_v50 = vld [vmem:[%s5862_s1 + $0x1f8] sm:$0xff]  }
  0x29   : > { %3779 = vmatpush3.bf16.msra.mxu1 %v4586_v27  ;;  %3668 = vmatprep.subr.bf16.mxu0 %v4587_v28  ;;  %v4610_v26 = vld [vmem:[%s5862_s1 + $0x120] sm:$0xff]   ;;  %v184_v27 = vld [vmem:[%s4825_s27 + $0x90] sm:$0xff]  ;;  %v185_v28 = vld [vmem:[%s4825_s27 + $0x98] sm:$0xff]  ;;  %v5004_v48 = vpack.c.bf16 %v187_v41, %v186_v38 }
  0x2a   : > { %3780 = vmatprep.subr.bf16.mxu1 %v4588_v29  ;;  %v258_v29 = vld [vmem:[%s4825_s27 + $0xa9] sm:$0xff]  ;;  %v4980_v36 = vpack.c.bf16 %v185_v28, %v184_v27  ;;  %v4620_v51 = vld [vmem:[%s5862_s1 + $0x178] sm:$0xff]   ;;  %v188_v55 = vld [vmem:[%s4825_s27 + $0xc0] sm:$0xff] }
  0x2b   : > { %v4621_v54 = vld [vmem:[%s5862_s1 + $0x1b8] sm:$0xff]   ;;  %v263_v60 = vld [vmem:[%s4825_s27 + $0xe1] sm:$0xff]  ;;  %v192_v9 = vld [vmem:[%s4825_s27 + $0xf0] sm:$0xff] }
  0x2c   : > { %3669 = vmatpush3.bf16.msra.mxu0 %v4589_v30  ;;  %v259_v30 = vld [vmem:[%s4825_s27 + $0xb1] sm:$0xff]  ;;  %v4624_v0 = vld [vmem:[%s5862_s1 + $0x240] sm:$0xff]   ;;  %v194_v17 = vld [vmem:[%s4825_s27 + $0x108] sm:$0xff] }
  0x2d   : > { %3781 = vmatpush3.bf16.msra.mxu1 %v4590_v31  ;;  %3878 = vmatprep.subr.bf16.mxu0 %v4591_v44  ;;  %v4611_v31 = vld [vmem:[%s5862_s1 + $0x1e8] sm:$0xff]   ;;  %v4982_v37 = vpack.c.bf16 %v259_v30, %v258_v29  ;;  %v4616_v44 = vld [vmem:[%s5862_s1 + $0x170] sm:$0xff]   ;;  %v193_v10 = vld [vmem:[%s4825_s27 + $0xf8] sm:$0xff] }
  0x2e   : > { %3990 = vmatprep.subr.bf16.mxu1 %v4592_v45  ;;  %v4617_v45 = vld [vmem:[%s5862_s1 + $0x1b0] sm:$0xff]   ;;  %v268_v19 = vld [vmem:[%s4825_s27 + $0x121] sm:$0xff]  ;;  %v270_v27 = vld [vmem:[%s4825_s27 + $0x139] sm:$0xff] }
  0x2f   : > { %617 = vmatmul.mubr.bf16.vlgmr.msra.gmra.mrb[0].mxu0 %v4843_v40  ;;  %v195_v18 = vld [vmem:[%s4825_s27 + $0x110] sm:$0xff]  ;;  %v271_v28 = vld [vmem:[%s4825_s27 + $0x141] sm:$0xff] }
  0x30   : > { %874 = vmatmul.mubr.bf16.vlgmr.msra.gmra.mrb[0].mxu1 %v208_v43  ;;  %3879 = vmatpush3.bf16.msra.mxu0 %v4593_v46  ;;  %v260_v43 = vld [vmem:[%s4825_s27 + $0xc1] sm:$0xff]  ;;  %v261_v46 = vld [vmem:[%s4825_s27 + $0xc9] sm:$0xff]  ;;  %v5084_v30 = vpack.c.bf16 %v271_v28, %v270_v27  ;;  %v323_v27 = vld [vmem:[%s4825_s27 + $0x52] sm:$0xff] }
  0x31   : > { %881 = vmatprep.mubr.bf16.mxu1 %v4836_v35  ;;  %3991 = vmatpush3.bf16.msra.mxu1 %v4594_v47  ;;  %v4618_v47 = vld [vmem:[%s5862_s1 + $0x130] sm:$0xff]   ;;  %v5006_v49 = vpack.c.bf16 %v261_v46, %v260_v43  ;;  %v201_v43 = vld [vmem:[%s4825_s27 + $0x158] sm:$0xff]  ;;  %v4630_v28 = vld [vmem:[%s5862_s1 + $0x208] sm:$0xff]  }
  0x32   : > { %624 = vmatprep.mubr.bf16.mxu0 %v4867_v52  ;;  %3880 = vmatprep.subr.bf16.mxu0 %v4595_v57  ;;  %v189_v57 = vld [vmem:[%s4825_s27 + $0xc8] sm:$0xff] }
  0x33   : > { %3992 = vmatprep.subr.bf16.mxu1 %v4596_v58  ;;  %v4622_v58 = vld [vmem:[%s5862_s1 + $0x138] sm:$0xff]   ;;  %v5028_v61 = vpack.c.bf16 %v189_v57, %v188_v55  ;;  %v269_v20 = vld [vmem:[%s4825_s27 + $0x129] sm:$0xff] }
  0x34   : > { %3881 = vmatpush3.bf16.msra.mxu0 %v4597_v59  ;;  %v262_v59 = vld [vmem:[%s4825_s27 + $0xd9] sm:$0xff]  ;;  %v277_v55 = vld [vmem:[%s4825_s27 + $0x189] sm:$0xff] }
  0x35   : > { %3993 = vmatpush3.bf16.msra.mxu1 %v4598_v62  ;;  %3882 = vmatprep.subr.bf16.mxu0 %v4599_v2  ;;  %v4623_v62 = vld [vmem:[%s5862_s1 + $0x2c0] sm:$0xff]   ;;  %v5033_v63 = vpack.c.bf16 %v263_v60, %v262_v59  ;;  %v190_v2 = vld [vmem:[%s4825_s27 + $0xd8] sm:$0xff]  ;;  %v205_v60 = vld [vmem:[%s4825_s27 + $0x188] sm:$0xff] }
  0x36   : > { %3994 = vmatprep.subr.bf16.mxu1 %v4600_v4  ;;  %v191_v4 = vld [vmem:[%s4825_s27 + $0xe0] sm:$0xff] }
  0x37   : > { %625 = vmatmul.mubr.bf16.gmra.mrb[4].mxu0 %v4869_v53  ;;  %v5046_v7 = vpack.c.bf16 %v191_v4, %v190_v2  ;;  %v204_v59 = vld [vmem:[%s4825_s27 + $0x180] sm:$0xff]  ;;  %v317_v4 = vld [vmem:[%s4825_s27 + $0xa] sm:$0xff] }
  0x38   : > { %882 = vmatmul.mubr.bf16.gmra.mrb[4].mxu1 %v4843_v40  ;;  %632 = vmatprep.mubr.bf16.mxu0 %v4873_v56  ;;  %v316_v2 = vld [vmem:[%s4825_s27 + $0x2] sm:$0xff] }
  0x39   : > { %889 = vmatprep.mubr.bf16.mxu1 %v4867_v52  ;;  %3883 = vmatpush3.bf16.msra.mxu0 %v4601_v5  ;;  %v264_v5 = vld [vmem:[%s4825_s27 + $0xf1] sm:$0xff] }
  0x3a   : > { %3995 = vmatpush3.bf16.msra.mxu1 %v4602_v6  ;;  %3884 = vmatprep.subr.bf16.mxu0 %v4603_v11  ;;  %v265_v6 = vld [vmem:[%s4825_s27 + $0xf9] sm:$0xff]  ;;  %v266_v11 = vld [vmem:[%s4825_s27 + $0x109] sm:$0xff] }
  0x3b   : > { %3996 = vmatprep.subr.bf16.mxu1 %v4604_v13  ;;  %v5048_v8 = vpack.c.bf16 %v265_v6, %v264_v5  ;;  %v267_v13 = vld [vmem:[%s4825_s27 + $0x111] sm:$0xff]  ;;  %v5132_v5 = vpack.c.bf16 %v205_v60, %v204_v59  ;;  %v4641_v60 = vld [vmem:[%s5862_s1 + $0x2a0] sm:$0xff]  }
  0x3d   : > { %3885 = vmatpush3.bf16.msra.mxu0 %v4605_v15  ;;  %v5058_v15 = vpack.c.bf16 %v193_v10, %v192_v9  ;;  %v352_v9 = vpack.c.bf16 %v317_v4, %v316_v2  ;;  %v320_v10 = vld [vmem:[%s4825_s27 + $0x32] sm:$0xff]  ;;  %v4644_v2 = vld [vmem:[%s5862_s1 + $0x268] sm:$0xff]   ;;  %v326_v4 = vld [vmem:[%s4825_s27 + $0x7a] sm:$0xff] }
  0x3e   : > { %3997 = vmatpush3.bf16.msra.mxu1 %v4606_v16  ;;  %3886 = vmatprep.subr.bf16.mxu0 %v4607_v21  ;;  %v5060_v16 = vpack.c.bf16 %v267_v13, %v266_v11  ;;  %v5070_v21 = vpack.c.bf16 %v195_v18, %v194_v17  ;;  %v321_v11 = vld [vmem:[%s4825_s27 + $0x3a] sm:$0xff] }
  0x3f   : > { %633 = vmatmul.mubr.bf16.gmra.mrb[8].mxu0 %v4896_v1  ;;  %3998 = vmatprep.subr.bf16.mxu1 %v4608_v22  ;;  %v5072_v22 = vpack.c.bf16 %v269_v20, %v268_v19  ;;  %v4625_v13 = vld [vmem:[%s5862_s1 + $0x280] sm:$0xff]   ;;  %v5147_v18 = vpack.c.bf16 %v321_v11, %v320_v10  ;;  %v4627_v19 = vld [vmem:[%s5862_s1 + $0x2c8] sm:$0xff]  }
  0x40   : > { %890 = vmatmul.mubr.bf16.gmra.mrb[8].mxu1 %v4869_v53  ;;  %640 = vmatprep.mubr.bf16.mxu0 %v4901_v3  ;;  %v4626_v17 = vld [vmem:[%s5862_s1 + $0x200] sm:$0xff]   ;;  %v4628_v20 = vld [vmem:[%s5862_s1 + $0x248] sm:$0xff]  }
  0x41   : > { %897 = vmatprep.mubr.bf16.mxu1 %v4873_v56  ;;  %3887 = vmatpush3.bf16.msra.mxu0 %v4609_v24  ;;  %v196_v24 = vld [vmem:[%s4825_s27 + $0x120] sm:$0xff]  ;;  %v4645_v10 = vld [vmem:[%s5862_s1 + $0x2a8] sm:$0xff]  }
  0x42   : > { %3999 = vmatpush3.bf16.msra.mxu1 %v4610_v26  ;;  %3888 = vmatprep.subr.bf16.mxu0 %v4611_v31  ;;  %v197_v26 = vld [vmem:[%s4825_s27 + $0x128] sm:$0xff]  ;;  %v198_v31 = vld [vmem:[%s4825_s27 + $0x138] sm:$0xff] }
  0x43   : > { %4000 = vmatprep.subr.bf16.mxu1 %v4612_v32  ;;  %v5082_v29 = vpack.c.bf16 %v197_v26, %v196_v24  ;;  %v199_v32 = vld [vmem:[%s4825_s27 + $0x140] sm:$0xff]  ;;  %v322_v24 = vld [vmem:[%s4825_s27 + $0x4a] sm:$0xff] }
  0x44   : > { %v5094_v38 = vpack.c.bf16 %v199_v32, %v198_v31  ;;  %v4629_v26 = vld [vmem:[%s5862_s1 + $0x288] sm:$0xff]   ;;  %v4631_v31 = vld [vmem:[%s5862_s1 + $0x2d0] sm:$0xff]   ;;  %v5173_v32 = vpack.c.bf16 %v323_v27, %v322_v24  ;;  %v4652_v27 = vld [vmem:[%s5862_s1 + $0x278] sm:$0xff]  }
  0x45   : > { %3889 = vmatpush3.bf16.msra.mxu0 %v4613_v33  ;;  %v272_v33 = vld [vmem:[%s4825_s27 + $0x151] sm:$0xff]  ;;  %v4646_v11 = vld [vmem:[%s5862_s1 + $0x228] sm:$0xff]  }
  0x46   : > { %4001 = vmatpush3.bf16.msra.mxu1 %v4614_v34  ;;  %3890 = vmatprep.subr.bf16.mxu0 %v4615_v42  ;;  %v273_v34 = vld [vmem:[%s4825_s27 + $0x159] sm:$0xff]  ;;  %v200_v42 = vld [vmem:[%s4825_s27 + $0x150] sm:$0xff] }
  0x47   : > { %641 = vmatmul.mubr.bf16.gmra.mrb[12].mxu0 %v4923_v12  ;;  %4002 = vmatprep.subr.bf16.mxu1 %v4616_v44  ;;  %v5096_v41 = vpack.c.bf16 %v273_v34, %v272_v33  ;;  %v274_v44 = vld [vmem:[%s4825_s27 + $0x169] sm:$0xff]  ;;  %v5106_v46 = vpack.c.bf16 %v201_v43, %v200_v42  ;;  %v4635_v42 = vld [vmem:[%s5862_s1 + $0x2d8] sm:$0xff]  }
  0x48   : > { %898 = vmatmul.mubr.bf16.gmra.mrb[12].mxu1 %v4896_v1  ;;  %648 = vmatprep.mubr.bf16.mxu0 %v4928_v14  ;;  %v4633_v33 = vld [vmem:[%s5862_s1 + $0x290] sm:$0xff]   ;;  %v4636_v43 = vld [vmem:[%s5862_s1 + $0x258] sm:$0xff]  }
  0x49   : > { %905 = vmatprep.mubr.bf16.mxu1 %v4901_v3  ;;  %3891 = vmatpush3.bf16.msra.mxu0 %v4617_v45  ;;  %v275_v45 = vld [vmem:[%s4825_s27 + $0x171] sm:$0xff] }
  0x4a   : > { %4003 = vmatpush3.bf16.msra.mxu1 %v4618_v47  ;;  %3892 = vmatprep.subr.bf16.mxu0 %v4619_v50  ;;  %v5108_v47 = vpack.c.bf16 %v275_v45, %v274_v44  ;;  %v202_v50 = vld [vmem:[%s4825_s27 + $0x168] sm:$0xff]  ;;  %v4634_v34 = vld [vmem:[%s5862_s1 + $0x210] sm:$0xff]  }
  0x4b   : > { %4004 = vmatprep.subr.bf16.mxu1 %v4620_v51  ;;  %v203_v51 = vld [vmem:[%s4825_s27 + $0x170] sm:$0xff]  ;;  %v324_v44 = vld [vmem:[%s4825_s27 + $0x62] sm:$0xff] }
  0x4c   : > { %v5118_v57 = vpack.c.bf16 %v203_v51, %v202_v50  ;;  %v325_v45 = vld [vmem:[%s4825_s27 + $0x6a] sm:$0xff]  ;;  %v4637_v50 = vld [vmem:[%s5862_s1 + $0x298] sm:$0xff]  }
  0x4d   : > { %3893 = vmatpush3.bf16.msra.mxu0 %v4621_v54  ;;  %v276_v54 = vld [vmem:[%s4825_s27 + $0x181] sm:$0xff]  ;;  %v4638_v51 = vld [vmem:[%s5862_s1 + $0x218] sm:$0xff]   ;;  %v5205_v59 = vpack.c.bf16 %v325_v45, %v324_v44  ;;  %v4650_v24 = vld [vmem:[%s5862_s1 + $0x230] sm:$0xff]  }
  0x4e   : > { %4005 = vmatpush3.bf16.msra.mxu1 %v4622_v58  ;;  %4102 = vmatprep.subr.bf16.mxu0 %v4623_v62  ;;  %v5120_v58 = vpack.c.bf16 %v277_v55, %v276_v54  ;;  %v318_v62 = vld [vmem:[%s4825_s27 + $0x1a] sm:$0xff]  ;;  %v330_v44 = vld [vmem:[%s4825_s27 + $0xaa] sm:$0xff]  ;;  %v331_v45 = vld [vmem:[%s4825_s27 + $0xb2] sm:$0xff] }
  0x4f   : > { %649 = vmatmul.mubr.bf16.gmra.mrb[16].mxu0 %v4950_v23  ;;  %4214 = vmatprep.subr.bf16.mxu1 %v4624_v0  ;;  %v319_v0 = vld [vmem:[%s4825_s27 + $0x22] sm:$0xff] }
  0x50   : > { %906 = vmatmul.mubr.bf16.gmra.mrb[16].mxu1 %v4923_v12  ;;  %656 = vmatprep.mubr.bf16.mxu0 %v4955_v25  ;;  %v5134_v6 = vpack.c.bf16 %v319_v0, %v318_v62  ;;  %v4639_v54 = vld [vmem:[%s5862_s1 + $0x2e0] sm:$0xff]   ;;  %v4643_v0 = vld [vmem:[%s5862_s1 + $0x2e8] sm:$0xff]  }
  0x51   : > { %913 = vmatprep.mubr.bf16.mxu1 %v4928_v14  ;;  %v4640_v55 = vld [vmem:[%s5862_s1 + $0x260] sm:$0xff]  }
  0x52   : > { %v4642_v62 = vld [vmem:[%s5862_s1 + $0x220] sm:$0xff]  }
  0x57   : > { %657 = vmatmul.mubr.bf16.gmra.mrb[20].mxu0 %v4980_v36 }
  0x58   : > { %914 = vmatmul.mubr.bf16.gmra.mrb[20].mxu1 %v4950_v23  ;;  %664 = vmatprep.mubr.bf16.mxu0 %v4982_v37 }
  0x59   : > { %921 = vmatprep.mubr.bf16.mxu1 %v4955_v25 }
  0x5f   : > { %665 = vmatmul.mubr.bf16.gmra.mrb[24].mxu0 %v5004_v48 }
  0x60   : > { %922 = vmatmul.mubr.bf16.gmra.mrb[24].mxu1 %v4980_v36  ;;  %672 = vmatprep.mubr.bf16.mxu0 %v5006_v49 }
  0x61   : > { %929 = vmatprep.mubr.bf16.mxu1 %v4982_v37 }
  0x67   : > { %673 = vmatmul.mubr.bf16.gmra.mrb[28].mxu0 %v5028_v61 }
  0x68   : > { %930 = vmatmul.mubr.bf16.gmra.mrb[28].mxu1 %v5004_v48  ;;  %680 = vmatprep.mubr.bf16.mxu0 %v5033_v63 }
  0x69   : > { %937 = vmatprep.mubr.bf16.mxu1 %v5006_v49 }
  0x6f   : > { %681 = vmatmul.mubr.bf16.gmra.mrb[32].mxu0 %v5046_v7 }
  0x70   : > { %938 = vmatmul.mubr.bf16.gmra.mrb[32].mxu1 %v5028_v61  ;;  %688 = vmatprep.mubr.bf16.mxu0 %v5048_v8 }
  0x71   : > { %945 = vmatprep.mubr.bf16.mxu1 %v5033_v63 }
  0x77   : > { %689 = vmatmul.mubr.bf16.gmra.mrb[36].mxu0 %v5058_v15 }
  0x78   : > { %946 = vmatmul.mubr.bf16.gmra.mrb[36].mxu1 %v5046_v7  ;;  %696 = vmatprep.mubr.bf16.mxu0 %v5060_v16 }
  0x79   : > { %953 = vmatprep.mubr.bf16.mxu1 %v5048_v8 }
  0x7f   : > { %697 = vmatmul.mubr.bf16.gmra.mrb[40].mxu0 %v5070_v21 }
  0x80   : > { %954 = vmatmul.mubr.bf16.gmra.mrb[40].mxu1 %v5058_v15  ;;  %704 = vmatprep.mubr.bf16.mxu0 %v5072_v22 }
  0x81   : > { %961 = vmatprep.mubr.bf16.mxu1 %v5060_v16 }
  0x87   : > { %705 = vmatmul.mubr.bf16.gmra.mrb[44].mxu0 %v5082_v29 }
  0x88   : > { %962 = vmatmul.mubr.bf16.gmra.mrb[44].mxu1 %v5070_v21  ;;  %712 = vmatprep.mubr.bf16.mxu0 %v5084_v30 }
  0x89   : > { %969 = vmatprep.mubr.bf16.mxu1 %v5072_v22 }
  0x8f   : > { %713 = vmatmul.mubr.bf16.gmra.mrb[48].mxu0 %v5094_v38 }
  0x90   : > { %970 = vmatmul.mubr.bf16.gmra.mrb[48].mxu1 %v5082_v29  ;;  %720 = vmatprep.mubr.bf16.mxu0 %v5096_v41 }
  0x91   : > { %977 = vmatprep.mubr.bf16.mxu1 %v5084_v30 }
  0x97   : > { %721 = vmatmul.mubr.bf16.gmra.mrb[52].mxu0 %v5106_v46 }
  0x98   : > { %978 = vmatmul.mubr.bf16.gmra.mrb[52].mxu1 %v5094_v38  ;;  %728 = vmatprep.mubr.bf16.mxu0 %v5108_v47 }
  0x99   : > { %985 = vmatprep.mubr.bf16.mxu1 %v5096_v41 }
  0x9f   : > { %729 = vmatmul.mubr.bf16.gmra.mrb[56].mxu0 %v5118_v57 }
  0xa0   : > { %986 = vmatmul.mubr.bf16.gmra.mrb[56].mxu1 %v5106_v46  ;;  %736 = vmatprep.mubr.bf16.mxu0 %v5120_v58 }
  0xa1   : > { %993 = vmatprep.mubr.bf16.mxu1 %v5108_v47 }
  0xa7   : > { %737 = vmatmul.mubr.bf16.gmra.mrb[60].mxu0 %v5132_v5 }
  0xa8   : > { %994 = vmatmul.mubr.bf16.gmra.mrb[60].mxu1 %v5118_v57  ;;  %1300 = vmatprep.mubr.bf16.mxu0 %v5134_v6 }
  0xa9   : > { %1557 = vmatprep.mubr.bf16.mxu1 %v352_v9  ;;  %v327_v9 = vld [vmem:[%s4825_s27 + $0x82] sm:$0xff] }
  0xaf   : > { %1301 = vmatmul.mubr.bf16.vlgmr.msra.gmra.mrb[64].mxu0 %v4836_v35 }
  0xb0   : > { %1558 = vmatmul.mubr.bf16.vlgmr.msra.gmra.mrb[64].mxu1 %v4841_v39  ;;  %4103 = vmatpush3.bf16.msra.mxu0 %v4625_v13  ;;  %v4632_v39 = vld [vmem:[%s5862_s1 + $0x250] sm:$0xff]  }
  0xb1   : > { %4215 = vmatpush3.bf16.msra.mxu1 %v4626_v17  ;;  %1308 = vmatprep.mubr.bf16.mxu0 %v5147_v18  ;;  %v4647_v13 = vld [vmem:[%s5862_s1 + $0x2f0] sm:$0xff]  }
  0xb2   : > { %1565 = vmatprep.mubr.bf16.mxu1 %v5134_v6  ;;  %4104 = vmatprep.subr.bf16.mxu0 %v4627_v19  ;;  %v4648_v17 = vld [vmem:[%s5862_s1 + $0x270] sm:$0xff]   ;;  %v5237_v19 = vpack.c.bf16 %v327_v9, %v326_v4  ;;  %v337_v4 = vld [vmem:[%s4825_s27 + $0xfa] sm:$0xff] }
  0xb3   : > { %4216 = vmatprep.subr.bf16.mxu1 %v4628_v20  ;;  %v4649_v20 = vld [vmem:[%s5862_s1 + $0x2b0] sm:$0xff]  }
  0xb4   : > { %4105 = vmatpush3.bf16.msra.mxu0 %v4629_v26  ;;  %v4651_v26 = vld [vmem:[%s5862_s1 + $0x2f8] sm:$0xff]  }
  0xb5   : > { %4217 = vmatpush3.bf16.msra.mxu1 %v4630_v28  ;;  %4106 = vmatprep.subr.bf16.mxu0 %v4631_v31  ;;  %v328_v28 = vld [vmem:[%s4825_s27 + $0x92] sm:$0xff]  ;;  %v329_v31 = vld [vmem:[%s4825_s27 + $0x9a] sm:$0xff] }
  0xb6   : > { %4218 = vmatprep.subr.bf16.mxu1 %v4632_v39  ;;  %v4653_v39 = vld [vmem:[%s5862_s1 + $0x2b8] sm:$0xff]  }
  0xb7   : > { %1309 = vmatmul.mubr.bf16.gmra.mrb[68].mxu0 %v4867_v52 }
  0xb8   : > { %1566 = vmatmul.mubr.bf16.gmra.mrb[68].mxu1 %v4836_v35  ;;  %1316 = vmatprep.mubr.bf16.mxu0 %v5173_v32 }
  0xb9   : > { %1573 = vmatprep.mubr.bf16.mxu1 %v5147_v18  ;;  %4107 = vmatpush3.bf16.msra.mxu0 %v4633_v33  ;;  %v4654_v33 = vld [vmem:[%s5862_s1 + $0x238] sm:$0xff]  }
  0xba   : > { %4219 = vmatpush3.bf16.msra.mxu1 %v4634_v34  ;;  %4108 = vmatprep.subr.bf16.mxu0 %v4635_v42  ;;  %v4655_v34 = vld [vmem:[%s5862_s1 + $0x3c0] sm:$0xff]  }
  0xbb   : > { %4220 = vmatprep.subr.bf16.mxu1 %v4636_v43  ;;  %v4656_v42 = vld [vmem:[%s5862_s1 + $0x340] sm:$0xff]   ;;  %v5269_v43 = vpack.c.bf16 %v329_v31, %v328_v28 }
  0xbd   : > { %4109 = vmatpush3.bf16.msra.mxu0 %v4637_v50  ;;  %v5277_v50 = vpack.c.bf16 %v331_v45, %v330_v44 }
  0xbe   : > { %4221 = vmatpush3.bf16.msra.mxu1 %v4638_v51  ;;  %4110 = vmatprep.subr.bf16.mxu0 %v4639_v54  ;;  %v332_v51 = vld [vmem:[%s4825_s27 + $0xc2] sm:$0xff]  ;;  %v333_v54 = vld [vmem:[%s4825_s27 + $0xca] sm:$0xff] }
  0xbf   : > { %1317 = vmatmul.mubr.bf16.gmra.mrb[72].mxu0 %v4873_v56  ;;  %4222 = vmatprep.subr.bf16.mxu1 %v4640_v55  ;;  %v5285_v55 = vpack.c.bf16 %v333_v54, %v332_v51 }
  0xc0   : > { %1574 = vmatmul.mubr.bf16.gmra.mrb[72].mxu1 %v4867_v52  ;;  %1324 = vmatprep.mubr.bf16.mxu0 %v5205_v59 }
  0xc1   : > { %1581 = vmatprep.mubr.bf16.mxu1 %v5173_v32  ;;  %4111 = vmatpush3.bf16.msra.mxu0 %v4641_v60  ;;  %v334_v60 = vld [vmem:[%s4825_s27 + $0xda] sm:$0xff] }
  0xc2   : > { %4223 = vmatpush3.bf16.msra.mxu1 %v4642_v62  ;;  %4112 = vmatprep.subr.bf16.mxu0 %v4643_v0  ;;  %v335_v62 = vld [vmem:[%s4825_s27 + $0xe2] sm:$0xff] }
  0xc3   : > { %4224 = vmatprep.subr.bf16.mxu1 %v4644_v2  ;;  %v5293_v0 = vpack.c.bf16 %v335_v62, %v334_v60  ;;  %v336_v2 = vld [vmem:[%s4825_s27 + $0xf2] sm:$0xff]  ;;  %v5331_v60 = vld [vmem:[%s5863_s2] ss:$0 sm:$0xff] }
  0xc4   : > { %v5301_v9 = vpack.c.bf16 %v337_v4, %v336_v2 }
  0xc5   : > { %4113 = vmatpush3.bf16.msra.mxu0 %v4645_v10  ;;  %v338_v10 = vld [vmem:[%s4825_s27 + $0x10a] sm:$0xff] }
  0xc6   : > { %4225 = vmatpush3.bf16.msra.mxu1 %v4646_v11  ;;  %4114 = vmatprep.subr.bf16.mxu0 %v4647_v13  ;;  %v339_v11 = vld [vmem:[%s4825_s27 + $0x112] sm:$0xff] }
  0xc7   : > { %1325 = vmatmul.mubr.bf16.gmra.mrb[76].mxu0 %v4901_v3  ;;  %4226 = vmatprep.subr.bf16.mxu1 %v4648_v17  ;;  %v5309_v13 = vpack.c.bf16 %v339_v11, %v338_v10  ;;  %v340_v17 = vld [vmem:[%s4825_s27 + $0x122] sm:$0xff] }
  0xc8   : > { %1582 = vmatmul.mubr.bf16.gmra.mrb[76].mxu1 %v4873_v56  ;;  %1332 = vmatprep.mubr.bf16.mxu0 %v5237_v19 }
  0xc9   : > { %1589 = vmatprep.mubr.bf16.mxu1 %v5205_v59  ;;  %4115 = vmatpush3.bf16.msra.mxu0 %v4649_v20  ;;  %v341_v20 = vld [vmem:[%s4825_s27 + $0x12a] sm:$0xff] }
  0xca   : > { %4227 = vmatpush3.bf16.msra.mxu1 %v4650_v24  ;;  %4116 = vmatprep.subr.bf16.mxu0 %v4651_v26  ;;  %v5317_v24 = vpack.c.bf16 %v341_v20, %v340_v17  ;;  %v342_v26 = vld [vmem:[%s4825_s27 + $0x13a] sm:$0xff]  ;;  %v344_v20 = vld [vmem:[%s4825_s27 + $0x152] sm:$0xff] }
  0xcb   : > { %4228 = vmatprep.subr.bf16.mxu1 %v4652_v27  ;;  %v343_v27 = vld [vmem:[%s4825_s27 + $0x142] sm:$0xff] }
  0xcc   : > { %5871 = vst [vmem:[#allocation3_spill] sm:$0xff] %v5317_v24  ;;  %v5325_v44 = vpack.c.bf16 %v343_v27, %v342_v26  ;;  %v345_v26 = vld [vmem:[%s4825_s27 + $0x15a] sm:$0xff] }
  0xcd   : > { %4117 = vmatpush3.bf16.msra.mxu0 %v4653_v39 }
  0xce   : > { %4229 = vmatpush3.bf16.msra.mxu1 %v4654_v33  ;;  %4326 = vmatprep.subr.bf16.mxu0 %v4655_v34  ;;  %5872 = vst [vmem:[#allocation4_spill] sm:$0xff] %v5325_v44 }
  0xcf   : > { %1333 = vmatmul.mubr.bf16.gmra.mrb[80].mxu0 %v4928_v14  ;;  %4438 = vmatprep.subr.bf16.mxu1 %v4656_v42 }
  0xd0   : > { %1590 = vmatmul.mubr.bf16.gmra.mrb[80].mxu1 %v4901_v3  ;;  %1340 = vmatprep.mubr.bf16.mxu0 %v5269_v43 }
  0xd1   : > { %1597 = vmatprep.mubr.bf16.mxu1 %v5237_v19 }
  0xd7   : > { %1341 = vmatmul.mubr.bf16.gmra.mrb[84].mxu0 %v4955_v25 }
  0xd8   : > { %1598 = vmatmul.mubr.bf16.gmra.mrb[84].mxu1 %v4928_v14  ;;  %1348 = vmatprep.mubr.bf16.mxu0 %v5277_v50 }
  0xd9   : > { %1605 = vmatprep.mubr.bf16.mxu1 %v5269_v43 }
  0xdf   : > { %1349 = vmatmul.mubr.bf16.gmra.mrb[88].mxu0 %v4982_v37 }
  0xe0   : > { %1606 = vmatmul.mubr.bf16.gmra.mrb[88].mxu1 %v4955_v25  ;;  %1356 = vmatprep.mubr.bf16.mxu0 %v5285_v55 }
  0xe1   : > { %1613 = vmatprep.mubr.bf16.mxu1 %v5277_v50 }
  0xe7   : > { %1357 = vmatmul.mubr.bf16.gmra.mrb[92].mxu0 %v5006_v49 }
  0xe8   : > { %1614 = vmatmul.mubr.bf16.gmra.mrb[92].mxu1 %v4982_v37  ;;  %1364 = vmatprep.mubr.bf16.mxu0 %v5293_v0 }
  0xe9   : > { %1621 = vmatprep.mubr.bf16.mxu1 %v5285_v55 }
  0xef   : > { %1365 = vmatmul.mubr.bf16.gmra.mrb[96].mxu0 %v5033_v63 }
  0xf0   : > { %1622 = vmatmul.mubr.bf16.gmra.mrb[96].mxu1 %v5006_v49  ;;  %1372 = vmatprep.mubr.bf16.mxu0 %v5301_v9 }
  0xf1   : > { %1629 = vmatprep.mubr.bf16.mxu1 %v5293_v0 }
  0xf7   : > { %1373 = vmatmul.mubr.bf16.gmra.mrb[100].mxu0 %v5048_v8 }
  0xf8   : > { %1630 = vmatmul.mubr.bf16.gmra.mrb[100].mxu1 %v5033_v63  ;;  %1380 = vmatprep.mubr.bf16.mxu0 %v5309_v13 }
  0xf9   : > { %1637 = vmatprep.mubr.bf16.mxu1 %v5301_v9 }
  0xff   : > { %1381 = vmatmul.mubr.bf16.gmra.mrb[104].mxu0 %v5060_v16 }
 0x100   : > { %1638 = vmatmul.mubr.bf16.gmra.mrb[104].mxu1 %v5048_v8  ;;  %1388 = vmatprep.mubr.bf16.mxu0 %v5317_v24 }
 0x101   : > { %1645 = vmatprep.mubr.bf16.mxu1 %v5309_v13 }
 0x102   : > { %v3670_v28 = vpop.f32.mrb[0].mxu0 }
 0x103   : > { %v3782_v31 = vpop.f32.mrb[0].mxu1  ;;  %v3671_v39 = vpop.f32.mrb[1].mxu0 }
 0x104   : > { %v3672_v33 = vadd.f32 %v3671_v39, %v3670_v28  ;;  %v3783_v34 = vpop.f32.mrb[1].mxu1  ;;  %v3673_v42 = vpop.f32.mrb[2].mxu0 }
 0x105   : > { %v3784_v45 = vadd.f32 %v3783_v34, %v3782_v31  ;;  %v3785_v51 = vpop.f32.mrb[2].mxu1  ;;  %v3674_v54 = vpop.f32.mrb[3].mxu0 }
 0x106   : > { %v3675_v62 = vadd.f32 %v3674_v54, %v3673_v42  ;;  %v3786_v2 = vpop.f32.mrb[3].mxu1 }
 0x107   : > { %v876_v4 = vadd.f32 %v3784_v45, %v3672_v33  ;;  %v3787_v10 = vadd.f32 %v3786_v2, %v3785_v51  ;;  %1389 = vmatmul.mubr.bf16.gmra.mrb[108].mxu0 %v5072_v22  ;;  %v5347_v45 = vpack.c.bf16 %v345_v26, %v344_v20  ;;  %v346_v26 = vld [vmem:[%s4825_s27 + $0x16a] sm:$0xff] }
 0x108   : > { %1646 = vmatmul.mubr.bf16.gmra.mrb[108].mxu1 %v5060_v16  ;;  %1396 = vmatprep.mubr.bf16.mxu0 %v5325_v44 }
 0x109   : > { %v1008_v11 = vadd.f32 %v5331_v60, %v876_v4  ;;  %v879_v17 = vadd.f32 %v3787_v10, %v3675_v62  ;;  %1653 = vmatprep.mubr.bf16.mxu1 %v5317_v24  ;;  %5873 = vst [vmem:[#allocation5_spill] sm:$0xff] %v5347_v45 }
 0x10a   : > { %v3676_v27 = vpop.f32.mrb[4].mxu0 }
 0x10b   : > { %1040 = vst [vmem:[%s5337_s13] sm:$0xff] %v1008_v11  ;;  %v1009_v28 = vadd.f32 %v5331_v60, %v879_v17  ;;  %v3788_v31 = vpop.f32.mrb[4].mxu1  ;;  %v3677_v39 = vpop.f32.mrb[5].mxu0 }
 0x10c   : > { %v3678_v33 = vadd.f32 %v3677_v39, %v3676_v27  ;;  %v3789_v34 = vpop.f32.mrb[5].mxu1  ;;  %v3679_v42 = vpop.f32.mrb[6].mxu0  ;;  %v347_v27 = vld [vmem:[%s4825_s27 + $0x172] sm:$0xff] }
 0x10d   : > { %1041 = vst [vmem:[%s5337_s13 + $0x8] sm:$0xff] %v1009_v28  ;;  %v3790_v51 = vadd.f32 %v3789_v34, %v3788_v31  ;;  %v3791_v54 = vpop.f32.mrb[6].mxu1  ;;  %v3680_v62 = vpop.f32.mrb[7].mxu0 }
 0x10e   : > { %v3681_v2 = vadd.f32 %v3680_v62, %v3679_v42  ;;  %v3792_v4 = vpop.f32.mrb[7].mxu1 }
 0x10f   : > { %v884_v10 = vadd.f32 %v3790_v51, %v3678_v33  ;;  %v3793_v11 = vadd.f32 %v3792_v4, %v3791_v54  ;;  %1397 = vmatmul.mubr.bf16.gmra.mrb[112].mxu0 %v5084_v30  ;;  %v5359_v54 = vpack.c.bf16 %v347_v27, %v346_v26  ;;  %v348_v27 = vld [vmem:[%s4825_s27 + $0x182] sm:$0xff] }
 0x110   : > { %1654 = vmatmul.mubr.bf16.gmra.mrb[112].mxu1 %v5072_v22  ;;  %1404 = vmatprep.mubr.bf16.mxu0 %v5347_v45 }
 0x111   : > { %v1010_v17 = vadd.f32 %v5331_v60, %v884_v10  ;;  %v887_v20 = vadd.f32 %v3793_v11, %v3681_v2  ;;  %1661 = vmatprep.mubr.bf16.mxu1 %v5325_v44 }
 0x112   : > { %v3682_v28 = vpop.f32.mrb[8].mxu0 }
 0x113   : > { %1042 = vst [vmem:[%s5337_s13 + $0x10] sm:$0xff] %v1010_v17  ;;  %v1011_v31 = vadd.f32 %v5331_v60, %v887_v20  ;;  %v3794_v39 = vpop.f32.mrb[8].mxu1  ;;  %v3683_v33 = vpop.f32.mrb[9].mxu0 }
 0x114   : > { %v3684_v34 = vadd.f32 %v3683_v33, %v3682_v28  ;;  %v3795_v42 = vpop.f32.mrb[9].mxu1  ;;  %v3685_v51 = vpop.f32.mrb[10].mxu0  ;;  %v349_v28 = vld [vmem:[%s4825_s27 + $0x18a] sm:$0xff] }
 0x115   : > { %1043 = vst [vmem:[%s5337_s13 + $0x18] sm:$0xff] %v1011_v31  ;;  %v3796_v62 = vadd.f32 %v3795_v42, %v3794_v39  ;;  %v3797_v2 = vpop.f32.mrb[10].mxu1  ;;  %v3686_v4 = vpop.f32.mrb[11].mxu0 }
 0x116   : > { %v3687_v10 = vadd.f32 %v3686_v4, %v3685_v51  ;;  %v3798_v11 = vpop.f32.mrb[11].mxu1 }
 0x117   : > { %v892_v44 = vadd.f32 %v3796_v62, %v3684_v34  ;;  %v3799_v17 = vadd.f32 %v3798_v11, %v3797_v2  ;;  %1405 = vmatmul.mubr.bf16.gmra.mrb[116].mxu0 %v5096_v41  ;;  %v5371_v2 = vpack.c.bf16 %v349_v28, %v348_v27 }
 0x118   : > { %1662 = vmatmul.mubr.bf16.gmra.mrb[116].mxu1 %v5084_v30  ;;  %1412 = vmatprep.mubr.bf16.mxu0 %v5359_v54 }
 0x119   : > { %v1012_v20 = vadd.f32 %v5331_v60, %v892_v44  ;;  %v895_v26 = vadd.f32 %v3799_v17, %v3687_v10  ;;  %1669 = vmatprep.mubr.bf16.mxu1 %v5347_v45 }
 0x11a   : > { %v3688_v31 = vpop.f32.mrb[12].mxu0 }
 0x11b   : > { %1044 = vst [vmem:[%s5337_s13 + $0x20] sm:$0xff] %v1012_v20  ;;  %v1013_v39 = vadd.f32 %v5331_v60, %v895_v26  ;;  %v3800_v33 = vpop.f32.mrb[12].mxu1  ;;  %v3689_v34 = vpop.f32.mrb[13].mxu0 }
 0x11c   : > { %v3690_v42 = vadd.f32 %v3689_v34, %v3688_v31  ;;  %v3801_v51 = vpop.f32.mrb[13].mxu1  ;;  %v3691_v62 = vpop.f32.mrb[14].mxu0 }
 0x11d   : > { %1045 = vst [vmem:[%s5337_s13 + $0x28] sm:$0xff] %v1013_v39  ;;  %v3802_v4 = vadd.f32 %v3801_v51, %v3800_v33  ;;  %v3803_v44 = vpop.f32.mrb[14].mxu1  ;;  %v3692_v10 = vpop.f32.mrb[15].mxu0 }
 0x11e   : > { %v3693_v11 = vadd.f32 %v3692_v10, %v3691_v62  ;;  %v3804_v17 = vpop.f32.mrb[15].mxu1 }
 0x11f   : > { %v900_v45 = vadd.f32 %v3802_v4, %v3690_v42  ;;  %v3805_v24 = vadd.f32 %v3804_v17, %v3803_v44  ;;  %1413 = vmatmul.mubr.bf16.gmra.mrb[120].mxu0 %v5108_v47 }
 0x120   : > { %1670 = vmatmul.mubr.bf16.gmra.mrb[120].mxu1 %v5096_v41  ;;  %1420 = vmatprep.mubr.bf16.mxu0 %v5371_v2 }
 0x121   : > { %v1014_v20 = vadd.f32 %v5331_v60, %v900_v45  ;;  %v903_v26 = vadd.f32 %v3805_v24, %v3693_v11  ;;  %1677 = vmatprep.mubr.bf16.mxu1 %v5359_v54 }
 0x122   : > { %v3694_v27 = vpop.f32.mrb[16].mxu0 }
 0x123   : > { %1046 = vst [vmem:[%s5337_s13 + $0x30] sm:$0xff] %v1014_v20  ;;  %v1015_v28 = vadd.f32 %v5331_v60, %v903_v26  ;;  %v3806_v31 = vpop.f32.mrb[16].mxu1  ;;  %v3695_v39 = vpop.f32.mrb[17].mxu0 }
 0x124   : > { %v3696_v33 = vadd.f32 %v3695_v39, %v3694_v27  ;;  %v3807_v34 = vpop.f32.mrb[17].mxu1  ;;  %v3697_v42 = vpop.f32.mrb[18].mxu0 }
 0x125   : > { %1047 = vst [vmem:[%s5337_s13 + $0x38] sm:$0xff] %v1015_v28  ;;  %v3808_v51 = vadd.f32 %v3807_v34, %v3806_v31  ;;  %v3809_v62 = vpop.f32.mrb[18].mxu1  ;;  %v3698_v4 = vpop.f32.mrb[19].mxu0  ;;  %v4657_v34 = vld [vmem:[%s5862_s1 + $0x380] sm:$0xff]  }
 0x126   : > { %v3699_v44 = vadd.f32 %v3698_v4, %v3697_v42  ;;  %v3810_v10 = vpop.f32.mrb[19].mxu1  ;;  %v4658_v4 = vld [vmem:[%s5862_s1 + $0x300] sm:$0xff]  }
 0x127   : > { %v908_v45 = vadd.f32 %v3808_v51, %v3696_v33  ;;  %v3811_v24 = vadd.f32 %v3810_v10, %v3809_v62  ;;  %1421 = vmatmul.mubr.bf16.gmra.mrb[124].mxu0 %v5120_v58 }
 0x128   : > { %1678 = vmatmul.mubr.bf16.gmra.mrb[124].mxu1 %v5108_v47  ;;  %1979 = vmatprep.mubr.bf16.mxu0 %v4867_v52 }
 0x129   : > { %v1016_v11 = vadd.f32 %v5331_v60, %v908_v45  ;;  %v911_v17 = vadd.f32 %v3811_v24, %v3699_v44  ;;  %2236 = vmatprep.mubr.bf16.mxu1 %v4836_v35  ;;  %v4659_v45 = vld [vmem:[%s5862_s1 + $0x3c8] sm:$0xff]  }
 0x12a   : > { %v3700_v20 = vpop.f32.mrb[20].mxu0 }
 0x12b   : > { %1048 = vst [vmem:[%s5337_s13 + $0x40] sm:$0xff] %v1016_v11  ;;  %v1017_v26 = vadd.f32 %v5331_v60, %v911_v17  ;;  %v3812_v27 = vpop.f32.mrb[20].mxu1  ;;  %v3701_v28 = vpop.f32.mrb[21].mxu0  ;;  %v4660_v17 = vld [vmem:[%s5862_s1 + $0x348] sm:$0xff]  }
 0x12c   : > { %v3702_v31 = vadd.f32 %v3701_v28, %v3700_v20  ;;  %v3813_v39 = vpop.f32.mrb[21].mxu1  ;;  %v3703_v33 = vpop.f32.mrb[22].mxu0  ;;  %v4661_v20 = vld [vmem:[%s5862_s1 + $0x388] sm:$0xff]  }
 0x12d   : > { %1049 = vst [vmem:[%s5337_s13 + $0x48] sm:$0xff] %v1017_v26  ;;  %v3814_v42 = vadd.f32 %v3813_v39, %v3812_v27  ;;  %v3815_v51 = vpop.f32.mrb[22].mxu1  ;;  %v3704_v62 = vpop.f32.mrb[23].mxu0  ;;  %v4662_v28 = vld [vmem:[%s5862_s1 + $0x308] sm:$0xff]   ;;  %v4664_v39 = vld [vmem:[%s5862_s1 + $0x350] sm:$0xff]  }
 0x12e   : > { %v3705_v44 = vadd.f32 %v3704_v62, %v3703_v33  ;;  %v3816_v10 = vpop.f32.mrb[23].mxu1 }
 0x12f   : > { %v916_v24 = vadd.f32 %v3814_v42, %v3702_v31  ;;  %v3817_v11 = vadd.f32 %v3816_v10, %v3815_v51  ;;  %1980 = vmatmul.mubr.bf16.vlgmr.msra.gmra.mrb[128].mxu0 %v4869_v53 }
 0x130   : > { %2237 = vmatmul.mubr.bf16.vlgmr.msra.gmra.mrb[128].mxu1 %v4843_v40  ;;  %4327 = vmatpush3.bf16.msra.mxu0 %v4657_v34  ;;  %v4663_v40 = vld [vmem:[%s5862_s1 + $0x3d0] sm:$0xff]  }
 0x131   : > { %v1018_v26 = vadd.f32 %v5331_v60, %v916_v24  ;;  %v919_v27 = vadd.f32 %v3817_v11, %v3705_v44  ;;  %4439 = vmatpush3.bf16.msra.mxu1 %v4658_v4  ;;  %1987 = vmatprep.mubr.bf16.mxu0 %v4873_v56 }
 0x132   : > { %v3706_v31 = vpop.f32.mrb[24].mxu0  ;;  %2244 = vmatprep.mubr.bf16.mxu1 %v4867_v52  ;;  %4328 = vmatprep.subr.bf16.mxu0 %v4659_v45  ;;  %v4665_v45 = vld [vmem:[%s5862_s1 + $0x390] sm:$0xff]  }
 0x133   : > { %1050 = vst [vmem:[%s5337_s13 + $0x50] sm:$0xff] %v1018_v26  ;;  %v1019_v33 = vadd.f32 %v5331_v60, %v919_v27  ;;  %v3818_v34 = vpop.f32.mrb[24].mxu1  ;;  %v3707_v42 = vpop.f32.mrb[25].mxu0  ;;  %4440 = vmatprep.subr.bf16.mxu1 %v4660_v17  ;;  %v4666_v17 = vld [vmem:[%s5862_s1 + $0x310] sm:$0xff]  }
 0x134   : > { %v3708_v51 = vadd.f32 %v3707_v42, %v3706_v31  ;;  %v3819_v62 = vpop.f32.mrb[25].mxu1  ;;  %v3709_v4 = vpop.f32.mrb[26].mxu0  ;;  %4329 = vmatpush3.bf16.msra.mxu0 %v4661_v20  ;;  %v4667_v20 = vld [vmem:[%s5862_s1 + $0x3d8] sm:$0xff]   ;;  %v4671_v42 = vld [vmem:[%s5862_s1 + $0x3e0] sm:$0xff]  }
 0x135   : > { %1051 = vst [vmem:[%s5337_s13 + $0x58] sm:$0xff] %v1019_v33  ;;  %v3820_v44 = vadd.f32 %v3819_v62, %v3818_v34  ;;  %v3821_v10 = vpop.f32.mrb[26].mxu1  ;;  %v3710_v24 = vpop.f32.mrb[27].mxu0  ;;  %4441 = vmatpush3.bf16.msra.mxu1 %v4662_v28  ;;  %4330 = vmatprep.subr.bf16.mxu0 %v4663_v40  ;;  %v4668_v28 = vld [vmem:[%s5862_s1 + $0x358] sm:$0xff]  }
 0x136   : > { %v3711_v11 = vadd.f32 %v3710_v24, %v3709_v4  ;;  %v3822_v26 = vpop.f32.mrb[27].mxu1  ;;  %4442 = vmatprep.subr.bf16.mxu1 %v4664_v39  ;;  %v4669_v33 = vld [vmem:[%s5862_s1 + $0x398] sm:$0xff]  }
 0x137   : > { %v924_v27 = vadd.f32 %v3820_v44, %v3708_v51  ;;  %v3823_v31 = vadd.f32 %v3822_v26, %v3821_v10  ;;  %1988 = vmatmul.mubr.bf16.gmra.mrb[132].mxu0 %v4896_v1  ;;  %v4672_v44 = vld [vmem:[%s5862_s1 + $0x360] sm:$0xff]  }
 0x138   : > { %2245 = vmatmul.mubr.bf16.gmra.mrb[132].mxu1 %v4869_v53  ;;  %1995 = vmatprep.mubr.bf16.mxu0 %v4901_v3  ;;  %v4670_v53 = vld [vmem:[%s5862_s1 + $0x318] sm:$0xff]  }
 0x139   : > { %v1020_v40 = vadd.f32 %v5331_v60, %v924_v27  ;;  %v927_v39 = vadd.f32 %v3823_v31, %v3711_v11  ;;  %2252 = vmatprep.mubr.bf16.mxu1 %v4873_v56  ;;  %4331 = vmatpush3.bf16.msra.mxu0 %v4665_v45 }
 0x13a   : > { %v3712_v34 = vpop.f32.mrb[28].mxu0  ;;  %4443 = vmatpush3.bf16.msra.mxu1 %v4666_v17  ;;  %4332 = vmatprep.subr.bf16.mxu0 %v4667_v20  ;;  %v4673_v20 = vld [vmem:[%s5862_s1 + $0x3a0] sm:$0xff]  }
 0x13b   : > { %1052 = vst [vmem:[%s5337_s13 + $0x60] sm:$0xff] %v1020_v40  ;;  %v1021_v51 = vadd.f32 %v5331_v60, %v927_v39  ;;  %v3824_v62 = vpop.f32.mrb[28].mxu1  ;;  %v3713_v4 = vpop.f32.mrb[29].mxu0  ;;  %4444 = vmatprep.subr.bf16.mxu1 %v4668_v28  ;;  %v4674_v28 = vld [vmem:[%s5862_s1 + $0x320] sm:$0xff]   ;;  %v4675_v40 = vld [vmem:[%s5862_s1 + $0x3e8] sm:$0xff]  }
 0x13c   : > { %v3714_v10 = vadd.f32 %v3713_v4, %v3712_v34  ;;  %v3825_v24 = vpop.f32.mrb[29].mxu1  ;;  %v3715_v45 = vpop.f32.mrb[30].mxu0  ;;  %v4679_v4 = vld [vmem:[%s5862_s1 + $0x3f0] sm:$0xff]  }
 0x13d   : > { %1053 = vst [vmem:[%s5337_s13 + $0x68] sm:$0xff] %v1021_v51  ;;  %v3826_v11 = vadd.f32 %v3825_v24, %v3824_v62  ;;  %v3827_v26 = vpop.f32.mrb[30].mxu1  ;;  %v3716_v17 = vpop.f32.mrb[31].mxu0  ;;  %4333 = vmatpush3.bf16.msra.mxu0 %v4669_v33  ;;  %v4676_v33 = vld [vmem:[%s5862_s1 + $0x368] sm:$0xff]  }
 0x13e   : > { %v3717_v27 = vadd.f32 %v3716_v17, %v3715_v45  ;;  %v3828_v31 = vpop.f32.mrb[31].mxu1  ;;  %4445 = vmatpush3.bf16.msra.mxu1 %v4670_v53  ;;  %4334 = vmatprep.subr.bf16.mxu0 %v4671_v42  ;;  %v4677_v51 = vld [vmem:[%s5862_s1 + $0x3a8] sm:$0xff]   ;;  %v4680_v45 = vld [vmem:[%s5862_s1 + $0x370] sm:$0xff]  }
 0x13f   : > { %v932_v39 = vadd.f32 %v3826_v11, %v3714_v10  ;;  %v3829_v34 = vadd.f32 %v3828_v31, %v3827_v26  ;;  %1996 = vmatmul.mubr.bf16.gmra.mrb[136].mxu0 %v4923_v12  ;;  %4446 = vmatprep.subr.bf16.mxu1 %v4672_v44 }
 0x140   : > { %2253 = vmatmul.mubr.bf16.gmra.mrb[136].mxu1 %v4896_v1  ;;  %2003 = vmatprep.mubr.bf16.mxu0 %v4928_v14  ;;  %v4678_v1 = vld [vmem:[%s5862_s1 + $0x328] sm:$0xff]  }
 0x141   : > { %v1022_v53 = vadd.f32 %v5331_v60, %v932_v39  ;;  %v935_v42 = vadd.f32 %v3829_v34, %v3717_v27  ;;  %2260 = vmatprep.mubr.bf16.mxu1 %v4901_v3  ;;  %4335 = vmatpush3.bf16.msra.mxu0 %v4673_v20  ;;  %v4682_v34 = vld [vmem:[%s5862_s1 + $0x330] sm:$0xff]  }
 0x142   : > { %v3718_v62 = vpop.f32.mrb[32].mxu0  ;;  %4447 = vmatpush3.bf16.msra.mxu1 %v4674_v28  ;;  %4336 = vmatprep.subr.bf16.mxu0 %v4675_v40  ;;  %v4681_v28 = vld [vmem:[%s5862_s1 + $0x3b0] sm:$0xff]  }
 0x143   : > { %1054 = vst [vmem:[%s5337_s13 + $0x70] sm:$0xff] %v1022_v53  ;;  %v1023_v44 = vadd.f32 %v5331_v60, %v935_v42  ;;  %v3830_v10 = vpop.f32.mrb[32].mxu1  ;;  %v3719_v24 = vpop.f32.mrb[33].mxu0  ;;  %4448 = vmatprep.subr.bf16.mxu1 %v4676_v33  ;;  %v4683_v33 = vld [vmem:[%s5862_s1 + $0x3f8] sm:$0xff]  }
 0x144   : > { %v3720_v11 = vadd.f32 %v3719_v24, %v3718_v62  ;;  %v3831_v26 = vpop.f32.mrb[33].mxu1  ;;  %v3721_v17 = vpop.f32.mrb[34].mxu0 }
 0x145   : > { %1055 = vst [vmem:[%s5337_s13 + $0x78] sm:$0xff] %v1023_v44  ;;  %v3832_v20 = vadd.f32 %v3831_v26, %v3830_v10  ;;  %v3833_v27 = vpop.f32.mrb[34].mxu1  ;;  %v3722_v31 = vpop.f32.mrb[35].mxu0  ;;  %4337 = vmatpush3.bf16.msra.mxu0 %v4677_v51  ;;  %v4684_v51 = vld [vmem:[%s5862_s1 + $0x378] sm:$0xff]  }
 0x146   : > { %v3723_v40 = vadd.f32 %v3722_v31, %v3721_v17  ;;  %v3834_v39 = vpop.f32.mrb[35].mxu1  ;;  %4449 = vmatpush3.bf16.msra.mxu1 %v4678_v1  ;;  %4338 = vmatprep.subr.bf16.mxu0 %v4679_v4  ;;  %v4685_v4 = vld [vmem:[%s5862_s1 + $0x3b8] sm:$0xff]  }
 0x147   : > { %v940_v53 = vadd.f32 %v3832_v20, %v3720_v11  ;;  %v3835_v42 = vadd.f32 %v3834_v39, %v3833_v27  ;;  %2004 = vmatmul.mubr.bf16.gmra.mrb[140].mxu0 %v4950_v23  ;;  %4450 = vmatprep.subr.bf16.mxu1 %v4680_v45 }
 0x148   : > { %2261 = vmatmul.mubr.bf16.gmra.mrb[140].mxu1 %v4923_v12  ;;  %2011 = vmatprep.mubr.bf16.mxu0 %v4955_v25  ;;  %v4686_v12 = vld [vmem:[%s5862_s1 + $0x338] sm:$0xff]  }
 0x149   : > { %v1024_v62 = vadd.f32 %v5331_v60, %v940_v53  ;;  %v943_v1 = vadd.f32 %v3835_v42, %v3723_v40  ;;  %2268 = vmatprep.mubr.bf16.mxu1 %v4928_v14  ;;  %4339 = vmatpush3.bf16.msra.mxu0 %v4681_v28 }
 0x14a   : > { %v3724_v44 = vpop.f32.mrb[36].mxu0  ;;  %4451 = vmatpush3.bf16.msra.mxu1 %v4682_v34  ;;  %4340 = vmatprep.subr.bf16.mxu0 %v4683_v33 }
 0x14b   : > { %1056 = vst [vmem:[%s5337_s13 + $0x80] sm:$0xff] %v1024_v62  ;;  %v1025_v10 = vadd.f32 %v5331_v60, %v943_v1  ;;  %v3836_v24 = vpop.f32.mrb[36].mxu1  ;;  %v3725_v45 = vpop.f32.mrb[37].mxu0  ;;  %4452 = vmatprep.subr.bf16.mxu1 %v4684_v51 }
 0x14c   : > { %v3726_v11 = vadd.f32 %v3725_v45, %v3724_v44  ;;  %v3837_v26 = vpop.f32.mrb[37].mxu1  ;;  %v3727_v17 = vpop.f32.mrb[38].mxu0 }
 0x14d   : > { %1057 = vst [vmem:[%s5337_s13 + $0x88] sm:$0xff] %v1025_v10  ;;  %v3838_v20 = vadd.f32 %v3837_v26, %v3836_v24  ;;  %v3839_v27 = vpop.f32.mrb[38].mxu1  ;;  %v3728_v31 = vpop.f32.mrb[39].mxu0  ;;  %4341 = vmatpush3.bf16.msra.mxu0 %v4685_v4 }
 0x14e   : > { %v3729_v28 = vadd.f32 %v3728_v31, %v3727_v17  ;;  %v3840_v40 = vpop.f32.mrb[39].mxu1  ;;  %4453 = vmatpush3.bf16.msra.mxu1 %v4686_v12 }
 0x14f   : > { %v948_v39 = vadd.f32 %v3838_v20, %v3726_v11  ;;  %v3841_v34 = vadd.f32 %v3840_v40, %v3839_v27  ;;  %2012 = vmatmul.mubr.bf16.gmra.mrb[144].mxu0 %v4980_v36 }
 0x150   : > { %2269 = vmatmul.mubr.bf16.gmra.mrb[144].mxu1 %v4950_v23  ;;  %2019 = vmatprep.mubr.bf16.mxu0 %v4982_v37 }
 0x151   : > { %v1026_v33 = vadd.f32 %v5331_v60, %v948_v39  ;;  %v951_v53 = vadd.f32 %v3841_v34, %v3729_v28  ;;  %2276 = vmatprep.mubr.bf16.mxu1 %v4955_v25 }
 0x152   : > { %v3730_v42 = vpop.f32.mrb[40].mxu0 }
 0x153   : > { %1058 = vst [vmem:[%s5337_s13 + $0x90] sm:$0xff] %v1026_v33  ;;  %v1027_v51 = vadd.f32 %v5331_v60, %v951_v53  ;;  %v3842_v62 = vpop.f32.mrb[40].mxu1  ;;  %v3731_v1 = vpop.f32.mrb[41].mxu0 }
 0x154   : > { %v3732_v4 = vadd.f32 %v3731_v1, %v3730_v42  ;;  %v3843_v44 = vpop.f32.mrb[41].mxu1  ;;  %v3733_v12 = vpop.f32.mrb[42].mxu0 }
 0x155   : > { %1059 = vst [vmem:[%s5337_s13 + $0x98] sm:$0xff] %v1027_v51  ;;  %v3844_v10 = vadd.f32 %v3843_v44, %v3842_v62  ;;  %v3845_v23 = vpop.f32.mrb[42].mxu1  ;;  %v3734_v24 = vpop.f32.mrb[43].mxu0 }
 0x156   : > { %v3735_v45 = vadd.f32 %v3734_v24, %v3733_v12  ;;  %v3846_v11 = vpop.f32.mrb[43].mxu1 }
 0x157   : > { %v956_v26 = vadd.f32 %v3844_v10, %v3732_v4  ;;  %v3847_v17 = vadd.f32 %v3846_v11, %v3845_v23  ;;  %2020 = vmatmul.mubr.bf16.gmra.mrb[148].mxu0 %v5004_v48 }
 0x158   : > { %2277 = vmatmul.mubr.bf16.gmra.mrb[148].mxu1 %v4980_v36  ;;  %2027 = vmatprep.mubr.bf16.mxu0 %v5006_v49 }
 0x159   : > { %v1028_v20 = vadd.f32 %v5331_v60, %v956_v26  ;;  %v959_v27 = vadd.f32 %v3847_v17, %v3735_v45  ;;  %2284 = vmatprep.mubr.bf16.mxu1 %v4982_v37 }
 0x15a   : > { %v3736_v31 = vpop.f32.mrb[44].mxu0 }
 0x15b   : > { %1060 = vst [vmem:[%s5337_s13 + $0xa0] sm:$0xff] %v1028_v20  ;;  %v1029_v28 = vadd.f32 %v5331_v60, %v959_v27  ;;  %v3848_v40 = vpop.f32.mrb[44].mxu1  ;;  %v3737_v39 = vpop.f32.mrb[45].mxu0 }
 0x15c   : > { %v3738_v34 = vadd.f32 %v3737_v39, %v3736_v31  ;;  %v3849_v33 = vpop.f32.mrb[45].mxu1  ;;  %v3739_v53 = vpop.f32.mrb[46].mxu0 }
 0x15d   : > { %1061 = vst [vmem:[%s5337_s13 + $0xa8] sm:$0xff] %v1029_v28  ;;  %v3850_v42 = vadd.f32 %v3849_v33, %v3848_v40  ;;  %v3851_v36 = vpop.f32.mrb[46].mxu1  ;;  %v3740_v51 = vpop.f32.mrb[47].mxu0 }
 0x15e   : > { %v3741_v62 = vadd.f32 %v3740_v51, %v3739_v53  ;;  %v3852_v1 = vpop.f32.mrb[47].mxu1 }
 0x15f   : > { %v964_v4 = vadd.f32 %v3850_v42, %v3738_v34  ;;  %v3853_v44 = vadd.f32 %v3852_v1, %v3851_v36  ;;  %2028 = vmatmul.mubr.bf16.gmra.mrb[152].mxu0 %v5028_v61 }
 0x160   : > { %2285 = vmatmul.mubr.bf16.gmra.mrb[152].mxu1 %v5004_v48  ;;  %2035 = vmatprep.mubr.bf16.mxu0 %v5033_v63 }
 0x161   : > { %v1030_v12 = vadd.f32 %v5331_v60, %v964_v4  ;;  %v967_v10 = vadd.f32 %v3853_v44, %v3741_v62  ;;  %2292 = vmatprep.mubr.bf16.mxu1 %v5006_v49 }
 0x162   : > { %v3742_v23 = vpop.f32.mrb[48].mxu0 }
 0x163   : > { %1062 = vst [vmem:[%s5337_s13 + $0xb0] sm:$0xff] %v1030_v12  ;;  %v1031_v24 = vadd.f32 %v5331_v60, %v967_v10  ;;  %v3854_v45 = vpop.f32.mrb[48].mxu1  ;;  %v3743_v11 = vpop.f32.mrb[49].mxu0 }
 0x164   : > { %v3744_v26 = vadd.f32 %v3743_v11, %v3742_v23  ;;  %v3855_v17 = vpop.f32.mrb[49].mxu1  ;;  %v3745_v20 = vpop.f32.mrb[50].mxu0 }
 0x165   : > { %1063 = vst [vmem:[%s5337_s13 + $0xb8] sm:$0xff] %v1031_v24  ;;  %v3856_v27 = vadd.f32 %v3855_v17, %v3854_v45  ;;  %v3857_v48 = vpop.f32.mrb[50].mxu1  ;;  %v3746_v31 = vpop.f32.mrb[51].mxu0 }
 0x166   : > { %v3747_v28 = vadd.f32 %v3746_v31, %v3745_v20  ;;  %v3858_v40 = vpop.f32.mrb[51].mxu1 }
 0x167   : > { %v972_v39 = vadd.f32 %v3856_v27, %v3744_v26  ;;  %v3859_v34 = vadd.f32 %v3858_v40, %v3857_v48  ;;  %2036 = vmatmul.mubr.bf16.gmra.mrb[156].mxu0 %v5046_v7 }
 0x168   : > { %2293 = vmatmul.mubr.bf16.gmra.mrb[156].mxu1 %v5028_v61  ;;  %2043 = vmatprep.mubr.bf16.mxu0 %v5048_v8 }
 0x169   : > { %v1032_v33 = vadd.f32 %v5331_v60, %v972_v39  ;;  %v975_v53 = vadd.f32 %v3859_v34, %v3747_v28  ;;  %2300 = vmatprep.mubr.bf16.mxu1 %v5033_v63 }
 0x16a   : > { %v3748_v42 = vpop.f32.mrb[52].mxu0 }
 0x16b   : > { %1064 = vst [vmem:[%s5337_s13 + $0xc0] sm:$0xff] %v1032_v33  ;;  %v1033_v36 = vadd.f32 %v5331_v60, %v975_v53  ;;  %v3860_v51 = vpop.f32.mrb[52].mxu1  ;;  %v3749_v62 = vpop.f32.mrb[53].mxu0 }
 0x16c   : > { %v3750_v1 = vadd.f32 %v3749_v62, %v3748_v42  ;;  %v3861_v4 = vpop.f32.mrb[53].mxu1  ;;  %v3751_v44 = vpop.f32.mrb[54].mxu0 }
 0x16d   : > { %1065 = vst [vmem:[%s5337_s13 + $0xc8] sm:$0xff] %v1033_v36  ;;  %v3862_v12 = vadd.f32 %v3861_v4, %v3860_v51  ;;  %v3863_v61 = vpop.f32.mrb[54].mxu1  ;;  %v3752_v10 = vpop.f32.mrb[55].mxu0 }
 0x16e   : > { %v3753_v23 = vadd.f32 %v3752_v10, %v3751_v44  ;;  %v3864_v24 = vpop.f32.mrb[55].mxu1 }
 0x16f   : > { %v980_v45 = vadd.f32 %v3862_v12, %v3750_v1  ;;  %v3865_v11 = vadd.f32 %v3864_v24, %v3863_v61  ;;  %2044 = vmatmul.mubr.bf16.gmra.mrb[160].mxu0 %v5058_v15 }
 0x170   : > { %2301 = vmatmul.mubr.bf16.gmra.mrb[160].mxu1 %v5046_v7  ;;  %2051 = vmatprep.mubr.bf16.mxu0 %v5060_v16 }
 0x171   : > { %v1034_v26 = vadd.f32 %v5331_v60, %v980_v45  ;;  %v983_v17 = vadd.f32 %v3865_v11, %v3753_v23  ;;  %2308 = vmatprep.mubr.bf16.mxu1 %v5048_v8 }
 0x172   : > { %v3754_v20 = vpop.f32.mrb[56].mxu0 }
 0x173   : > { %1066 = vst [vmem:[%s5337_s13 + $0xd0] sm:$0xff] %v1034_v26  ;;  %v1035_v27 = vadd.f32 %v5331_v60, %v983_v17  ;;  %v3866_v48 = vpop.f32.mrb[56].mxu1  ;;  %v3755_v31 = vpop.f32.mrb[57].mxu0 }
 0x174   : > { %v3756_v28 = vadd.f32 %v3755_v31, %v3754_v20  ;;  %v3867_v40 = vpop.f32.mrb[57].mxu1  ;;  %v3757_v39 = vpop.f32.mrb[58].mxu0 }
 0x175   : > { %1067 = vst [vmem:[%s5337_s13 + $0xd8] sm:$0xff] %v1035_v27  ;;  %v3868_v34 = vadd.f32 %v3867_v40, %v3866_v48  ;;  %v3869_v7 = vpop.f32.mrb[58].mxu1  ;;  %v3758_v33 = vpop.f32.mrb[59].mxu0 }
 0x176   : > { %v3759_v53 = vadd.f32 %v3758_v33, %v3757_v39  ;;  %v3870_v42 = vpop.f32.mrb[59].mxu1 }
 0x177   : > { %v988_v36 = vadd.f32 %v3868_v34, %v3756_v28  ;;  %v3871_v51 = vadd.f32 %v3870_v42, %v3869_v7  ;;  %2052 = vmatmul.mubr.bf16.gmra.mrb[164].mxu0 %v5070_v21 }
 0x178   : > { %2309 = vmatmul.mubr.bf16.gmra.mrb[164].mxu1 %v5058_v15  ;;  %2059 = vmatprep.mubr.bf16.mxu0 %v5072_v22 }
 0x179   : > { %v1036_v62 = vadd.f32 %v5331_v60, %v988_v36  ;;  %v991_v1 = vadd.f32 %v3871_v51, %v3759_v53  ;;  %2316 = vmatprep.mubr.bf16.mxu1 %v5060_v16 }
 0x17a   : > { %v3760_v4 = vpop.f32.mrb[60].mxu0 }
 0x17b   : > { %1068 = vst [vmem:[%s5337_s13 + $0xe0] sm:$0xff] %v1036_v62  ;;  %v1037_v44 = vadd.f32 %v5331_v60, %v991_v1  ;;  %v3872_v12 = vpop.f32.mrb[60].mxu1  ;;  %v3761_v61 = vpop.f32.mrb[61].mxu0 }
 0x17c   : > { %v3762_v10 = vadd.f32 %v3761_v61, %v3760_v4  ;;  %v3873_v23 = vpop.f32.mrb[61].mxu1  ;;  %v3763_v24 = vpop.f32.mrb[62].mxu0 }
 0x17d   : > { %1069 = vst [vmem:[%s5337_s13 + $0xe8] sm:$0xff] %v1037_v44  ;;  %v3874_v45 = vadd.f32 %v3873_v23, %v3872_v12  ;;  %v3875_v15 = vpop.f32.mrb[62].mxu1  ;;  %v3764_v11 = vpop.f32.mrb[63].mxu0 }
 0x17e   : > { %v3765_v26 = vadd.f32 %v3764_v11, %v3763_v24  ;;  %v3876_v17 = vpop.f32.mrb[63].mxu1 }
 0x17f   : > { %v996_v20 = vadd.f32 %v3874_v45, %v3762_v10  ;;  %v3877_v27 = vadd.f32 %v3876_v17, %v3875_v15  ;;  %2060 = vmatmul.mubr.bf16.gmra.mrb[168].mxu0 %v5082_v29 }
 0x180   : > { %2317 = vmatmul.mubr.bf16.gmra.mrb[168].mxu1 %v5070_v21  ;;  %2067 = vmatprep.mubr.bf16.mxu0 %v5084_v30 }
 0x181   : > { %v1038_v48 = vadd.f32 %v5331_v60, %v996_v20  ;;  %v999_v31 = vadd.f32 %v3877_v27, %v3765_v26  ;;  %2324 = vmatprep.mubr.bf16.mxu1 %v5072_v22 }
 0x182   : > { %v3894_v28 = vpop.f32.mrb[64].mxu0 }
 0x183   : > { %1070 = vst [vmem:[%s5337_s13 + $0xf0] sm:$0xff] %v1038_v48  ;;  %v1039_v40 = vadd.f32 %v5331_v60, %v999_v31  ;;  %v4006_v39 = vpop.f32.mrb[64].mxu1  ;;  %v3895_v34 = vpop.f32.mrb[65].mxu0 }
 0x184   : > { %v3896_v7 = vadd.f32 %v3895_v34, %v3894_v28  ;;  %v4007_v33 = vpop.f32.mrb[65].mxu1  ;;  %v3897_v53 = vpop.f32.mrb[66].mxu0 }
 0x185   : > { %1071 = vst [vmem:[%s5337_s13 + $0xf8] sm:$0xff] %v1039_v40  ;;  %v4008_v42 = vadd.f32 %v4007_v33, %v4006_v39  ;;  %v4009_v21 = vpop.f32.mrb[66].mxu1  ;;  %v3898_v36 = vpop.f32.mrb[67].mxu0 }
 0x186   : > { %v3899_v51 = vadd.f32 %v3898_v36, %v3897_v53  ;;  %v4010_v62 = vpop.f32.mrb[67].mxu1 }
 0x187   : > { %v1560_v1 = vadd.f32 %v4008_v42, %v3896_v7  ;;  %v4011_v4 = vadd.f32 %v4010_v62, %v4009_v21  ;;  %2068 = vmatmul.mubr.bf16.gmra.mrb[172].mxu0 %v5094_v38 }
 0x188   : > { %2325 = vmatmul.mubr.bf16.gmra.mrb[172].mxu1 %v5082_v29  ;;  %2075 = vmatprep.mubr.bf16.mxu0 %v5096_v41 }
 0x189   : > { %v1686_v44 = vadd.f32 %v5331_v60, %v1560_v1  ;;  %v1563_v12 = vadd.f32 %v4011_v4, %v3899_v51  ;;  %2332 = vmatprep.mubr.bf16.mxu1 %v5084_v30 }
 0x18a   : > { %v3900_v61 = vpop.f32.mrb[68].mxu0 }
 0x18b   : > { %3363 = vst [vmem:[%s5337_s13 + $0x100] sm:$0xff] %v1686_v44  ;;  %v1687_v10 = vadd.f32 %v5331_v60, %v1563_v12  ;;  %v4012_v23 = vpop.f32.mrb[68].mxu1  ;;  %v3901_v24 = vpop.f32.mrb[69].mxu0 }
 0x18c   : > { %v3902_v45 = vadd.f32 %v3901_v24, %v3900_v61  ;;  %v4013_v15 = vpop.f32.mrb[69].mxu1  ;;  %v3903_v11 = vpop.f32.mrb[70].mxu0 }
 0x18d   : > { %3364 = vst [vmem:[%s5337_s13 + $0x108] sm:$0xff] %v1687_v10  ;;  %v4014_v26 = vadd.f32 %v4013_v15, %v4012_v23  ;;  %v4015_v29 = vpop.f32.mrb[70].mxu1  ;;  %v3904_v17 = vpop.f32.mrb[71].mxu0  ;;  %v278_v10 = vld [vmem:[%s4825_s27 + $0x199] sm:$0xff]  ;;  %v279_v23 = vld [vmem:[%s4825_s27 + $0x1a1] sm:$0xff] }
 0x18e   : > { %v3905_v20 = vadd.f32 %v3904_v17, %v3903_v11  ;;  %v4016_v27 = vpop.f32.mrb[71].mxu1  ;;  %v5593_v17 = vpack.c.bf16 %v279_v23, %v278_v10 }
 0x18f   : > { %v1568_v48 = vadd.f32 %v4014_v26, %v3902_v45  ;;  %v4017_v31 = vadd.f32 %v4016_v27, %v4015_v29  ;;  %2076 = vmatmul.mubr.bf16.gmra.mrb[176].mxu0 %v5106_v46 }
 0x190   : > { %2333 = vmatmul.mubr.bf16.gmra.mrb[176].mxu1 %v5094_v38  ;;  %2083 = vmatprep.mubr.bf16.mxu0 %v5108_v47 }
 0x191   : > { %v1688_v28 = vadd.f32 %v5331_v60, %v1568_v48  ;;  %v1571_v40 = vadd.f32 %v4017_v31, %v3905_v20  ;;  %2340 = vmatprep.mubr.bf16.mxu1 %v5096_v41 }
 0x192   : > { %v3906_v39 = vpop.f32.mrb[72].mxu0 }
 0x193   : > { %3365 = vst [vmem:[%s5337_s13 + $0x110] sm:$0xff] %v1688_v28  ;;  %v1689_v34 = vadd.f32 %v5331_v60, %v1571_v40  ;;  %v4018_v7 = vpop.f32.mrb[72].mxu1  ;;  %v3907_v33 = vpop.f32.mrb[73].mxu0 }
 0x194   : > { %v3908_v53 = vadd.f32 %v3907_v33, %v3906_v39  ;;  %v4019_v42 = vpop.f32.mrb[73].mxu1  ;;  %v3909_v21 = vpop.f32.mrb[74].mxu0 }
 0x195   : > { %3366 = vst [vmem:[%s5337_s13 + $0x118] sm:$0xff] %v1689_v34  ;;  %v4020_v38 = vadd.f32 %v4019_v42, %v4018_v7  ;;  %v4021_v36 = vpop.f32.mrb[74].mxu1  ;;  %v3910_v51 = vpop.f32.mrb[75].mxu0  ;;  %v206_v34 = vld [vmem:[%s4825_s27 + $0x198] sm:$0xff]  ;;  %v207_v7 = vld [vmem:[%s4825_s27 + $0x1a0] sm:$0xff] }
 0x196   : > { %v3911_v62 = vadd.f32 %v3910_v51, %v3909_v21  ;;  %v4022_v1 = vpop.f32.mrb[75].mxu1  ;;  %v225_v51 = vpack.c.bf16 %v207_v7, %v206_v34 }
 0x197   : > { %v1576_v4 = vadd.f32 %v4020_v38, %v3908_v53  ;;  %v4023_v44 = vadd.f32 %v4022_v1, %v4021_v36  ;;  %2084 = vmatmul.mubr.bf16.gmra.mrb[180].mxu0 %v5118_v57 }
 0x198   : > { %2341 = vmatmul.mubr.bf16.gmra.mrb[180].mxu1 %v5106_v46  ;;  %2091 = vmatprep.mubr.bf16.mxu0 %v5120_v58 }
 0x199   : > { %v1690_v12 = vadd.f32 %v5331_v60, %v1576_v4  ;;  %v1579_v61 = vadd.f32 %v4023_v44, %v3911_v62  ;;  %2348 = vmatprep.mubr.bf16.mxu1 %v5108_v47 }
 0x19a   : > { %v3912_v24 = vpop.f32.mrb[76].mxu0 }
 0x19b   : > { %3367 = vst [vmem:[%s5337_s13 + $0x120] sm:$0xff] %v1690_v12  ;;  %v1691_v45 = vadd.f32 %v5331_v60, %v1579_v61  ;;  %v4024_v15 = vpop.f32.mrb[76].mxu1  ;;  %v3913_v11 = vpop.f32.mrb[77].mxu0 }
 0x19c   : > { %v3914_v26 = vadd.f32 %v3913_v11, %v3912_v24  ;;  %v4025_v46 = vpop.f32.mrb[77].mxu1  ;;  %v3915_v29 = vpop.f32.mrb[78].mxu0 }
 0x19d   : > { %3368 = vst [vmem:[%s5337_s13 + $0x128] sm:$0xff] %v1691_v45  ;;  %v4026_v20 = vadd.f32 %v4025_v46, %v4024_v15  ;;  %v4027_v27 = vpop.f32.mrb[78].mxu1  ;;  %v3916_v48 = vpop.f32.mrb[79].mxu0 }
 0x19e   : > { %v3917_v31 = vadd.f32 %v3916_v48, %v3915_v29  ;;  %v4028_v28 = vpop.f32.mrb[79].mxu1 }
 0x19f   : > { %v1584_v40 = vadd.f32 %v4026_v20, %v3914_v26  ;;  %v4029_v39 = vadd.f32 %v4028_v28, %v4027_v27  ;;  %2092 = vmatmul.mubr.bf16.gmra.mrb[184].mxu0 %v5132_v5 }
 0x1a0   : > { %2349 = vmatmul.mubr.bf16.gmra.mrb[184].mxu1 %v5118_v57  ;;  %2099 = vmatprep.mubr.bf16.mxu0 %v5593_v17 }
 0x1a1   : > { %v1692_v33 = vadd.f32 %v5331_v60, %v1584_v40  ;;  %v1587_v53 = vadd.f32 %v4029_v39, %v3917_v31  ;;  %2356 = vmatprep.mubr.bf16.mxu1 %v5120_v58 }
 0x1a2   : > { %v3918_v42 = vpop.f32.mrb[80].mxu0 }
 0x1a3   : > { %3369 = vst [vmem:[%s5337_s13 + $0x130] sm:$0xff] %v1692_v33  ;;  %v1693_v21 = vadd.f32 %v5331_v60, %v1587_v53  ;;  %v4030_v38 = vpop.f32.mrb[80].mxu1  ;;  %v3919_v36 = vpop.f32.mrb[81].mxu0  ;;  %v5611_v60 = vld [vmem:[%s5863_s2] ss:$0 sm:$0xff] }
 0x1a4   : > { %v3920_v62 = vadd.f32 %v3919_v36, %v3918_v42  ;;  %v4031_v1 = vpop.f32.mrb[81].mxu1  ;;  %v3921_v57 = vpop.f32.mrb[82].mxu0 }
 0x1a5   : > { %3370 = vst [vmem:[%s5337_s13 + $0x138] sm:$0xff] %v1693_v21  ;;  %v4032_v4 = vadd.f32 %v4031_v1, %v4030_v38  ;;  %v4033_v44 = vpop.f32.mrb[82].mxu1  ;;  %v3922_v12 = vpop.f32.mrb[83].mxu0 }
 0x1a6   : > { %v3923_v61 = vadd.f32 %v3922_v12, %v3921_v57  ;;  %v4034_v10 = vpop.f32.mrb[83].mxu1 }
 0x1a7   : > { %v1592_v23 = vadd.f32 %v4032_v4, %v3920_v62  ;;  %v4035_v24 = vadd.f32 %v4034_v10, %v4033_v44  ;;  %2100 = vmatmul.mubr.bf16.gmra.mrb[188].mxu0 %v225_v51 }
 0x1a8   : > { %2357 = vmatmul.mubr.bf16.gmra.mrb[188].mxu1 %v5132_v5  ;;  %2688 = vmatprep.mubr.bf16.mxu0 %v5147_v18 }
 0x1a9   : > { %v1694_v45 = vadd.f32 %v5611_v60, %v1592_v23  ;;  %v1595_v15 = vadd.f32 %v4035_v24, %v3923_v61  ;;  %2945 = vmatprep.mubr.bf16.mxu1 %v5134_v6 }
 0x1aa   : > { %v3924_v11 = vpop.f32.mrb[84].mxu0 }
 0x1ab   : > { %3371 = vst [vmem:[%s5337_s13 + $0x140] sm:$0xff] %v1694_v45  ;;  %v1695_v26 = vadd.f32 %v5611_v60, %v1595_v15  ;;  %v4036_v46 = vpop.f32.mrb[84].mxu1  ;;  %v3925_v29 = vpop.f32.mrb[85].mxu0 }
 0x1ac   : > { %v3926_v20 = vadd.f32 %v3925_v29, %v3924_v11  ;;  %v4037_v5 = vpop.f32.mrb[85].mxu1  ;;  %v3927_v27 = vpop.f32.mrb[86].mxu0 }
 0x1ad   : > { %3372 = vst [vmem:[%s5337_s13 + $0x148] sm:$0xff] %v1695_v26  ;;  %v4038_v48 = vadd.f32 %v4037_v5, %v4036_v46  ;;  %v4039_v31 = vpop.f32.mrb[86].mxu1  ;;  %v3928_v28 = vpop.f32.mrb[87].mxu0 }
 0x1ae   : > { %v3929_v40 = vadd.f32 %v3928_v28, %v3927_v27  ;;  %v4040_v39 = vpop.f32.mrb[87].mxu1 }
 0x1af   : > { %v1600_v34 = vadd.f32 %v4038_v48, %v3926_v20  ;;  %v4041_v7 = vadd.f32 %v4040_v39, %v4039_v31  ;;  %2689 = vmatmul.mubr.bf16.vlgmr.msra.gmra.mrb[192].mxu0 %v4867_v52 }
 0x1b0   : > { %2946 = vmatmul.mubr.bf16.vlgmr.msra.gmra.mrb[192].mxu1 %v4836_v35  ;;  %2696 = vmatprep.mubr.bf16.mxu0 %v5173_v32 }
 0x1b1   : > { %v1696_v6 = vadd.f32 %v5611_v60, %v1600_v34  ;;  %v1603_v33 = vadd.f32 %v4041_v7, %v3929_v40  ;;  %2953 = vmatprep.mubr.bf16.mxu1 %v5147_v18 }
 0x1b2   : > { %v3930_v53 = vpop.f32.mrb[88].mxu0 }
 0x1b3   : > { %3373 = vst [vmem:[%s5337_s13 + $0x150] sm:$0xff] %v1696_v6  ;;  %v1697_v42 = vadd.f32 %v5611_v60, %v1603_v33  ;;  %v4042_v21 = vpop.f32.mrb[88].mxu1  ;;  %v3931_v38 = vpop.f32.mrb[89].mxu0 }
 0x1b4   : > { %v3932_v36 = vadd.f32 %v3931_v38, %v3930_v53  ;;  %v4043_v51 = vpop.f32.mrb[89].mxu1  ;;  %v3933_v62 = vpop.f32.mrb[90].mxu0 }
 0x1b5   : > { %3374 = vst [vmem:[%s5337_s13 + $0x158] sm:$0xff] %v1697_v42  ;;  %v4044_v1 = vadd.f32 %v4043_v51, %v4042_v21  ;;  %v4045_v35 = vpop.f32.mrb[90].mxu1  ;;  %v3934_v57 = vpop.f32.mrb[91].mxu0 }
 0x1b6   : > { %v3935_v4 = vadd.f32 %v3934_v57, %v3933_v62  ;;  %v4046_v44 = vpop.f32.mrb[91].mxu1 }
 0x1b7   : > { %v1608_v12 = vadd.f32 %v4044_v1, %v3932_v36  ;;  %v4047_v61 = vadd.f32 %v4046_v44, %v4045_v35  ;;  %2697 = vmatmul.mubr.bf16.gmra.mrb[196].mxu0 %v4873_v56 }
 0x1b8   : > { %2954 = vmatmul.mubr.bf16.gmra.mrb[196].mxu1 %v4867_v52  ;;  %2704 = vmatprep.mubr.bf16.mxu0 %v5205_v59 }
 0x1b9   : > { %v1698_v18 = vadd.f32 %v5611_v60, %v1608_v12  ;;  %v1611_v10 = vadd.f32 %v4047_v61, %v3935_v4  ;;  %2961 = vmatprep.mubr.bf16.mxu1 %v5173_v32 }
 0x1ba   : > { %v3936_v23 = vpop.f32.mrb[92].mxu0 }
 0x1bb   : > { %3375 = vst [vmem:[%s5337_s13 + $0x160] sm:$0xff] %v1698_v18  ;;  %v1699_v24 = vadd.f32 %v5611_v60, %v1611_v10  ;;  %v4048_v45 = vpop.f32.mrb[92].mxu1  ;;  %v3937_v15 = vpop.f32.mrb[93].mxu0 }
 0x1bc   : > { %v3938_v11 = vadd.f32 %v3937_v15, %v3936_v23  ;;  %v4049_v26 = vpop.f32.mrb[93].mxu1  ;;  %v3939_v46 = vpop.f32.mrb[94].mxu0 }
 0x1bd   : > { %3376 = vst [vmem:[%s5337_s13 + $0x168] sm:$0xff] %v1699_v24  ;;  %v4050_v29 = vadd.f32 %v4049_v26, %v4048_v45  ;;  %v4051_v52 = vpop.f32.mrb[94].mxu1  ;;  %v3940_v20 = vpop.f32.mrb[95].mxu0 }
 0x1be   : > { %v3941_v5 = vadd.f32 %v3940_v20, %v3939_v46  ;;  %v4052_v27 = vpop.f32.mrb[95].mxu1 }
 0x1bf   : > { %v1616_v48 = vadd.f32 %v4050_v29, %v3938_v11  ;;  %v4053_v31 = vadd.f32 %v4052_v27, %v4051_v52  ;;  %2705 = vmatmul.mubr.bf16.gmra.mrb[200].mxu0 %v4901_v3 }
 0x1c0   : > { %2962 = vmatmul.mubr.bf16.gmra.mrb[200].mxu1 %v4873_v56  ;;  %2712 = vmatprep.mubr.bf16.mxu0 %v5237_v19 }
 0x1c1   : > { %v1700_v32 = vadd.f32 %v5611_v60, %v1616_v48  ;;  %v1619_v28 = vadd.f32 %v4053_v31, %v3941_v5  ;;  %2969 = vmatprep.mubr.bf16.mxu1 %v5205_v59 }
 0x1c2   : > { %v3942_v40 = vpop.f32.mrb[96].mxu0 }
 0x1c3   : > { %3377 = vst [vmem:[%s5337_s13 + $0x170] sm:$0xff] %v1700_v32  ;;  %v1701_v39 = vadd.f32 %v5611_v60, %v1619_v28  ;;  %v4054_v34 = vpop.f32.mrb[96].mxu1  ;;  %v3943_v7 = vpop.f32.mrb[97].mxu0 }
 0x1c4   : > { %v3944_v6 = vadd.f32 %v3943_v7, %v3942_v40  ;;  %v4055_v33 = vpop.f32.mrb[97].mxu1  ;;  %v3945_v53 = vpop.f32.mrb[98].mxu0 }
 0x1c5   : > { %3378 = vst [vmem:[%s5337_s13 + $0x178] sm:$0xff] %v1701_v39  ;;  %v4056_v42 = vadd.f32 %v4055_v33, %v4054_v34  ;;  %v4057_v56 = vpop.f32.mrb[98].mxu1  ;;  %v3946_v21 = vpop.f32.mrb[99].mxu0 }
 0x1c6   : > { %v3947_v38 = vadd.f32 %v3946_v21, %v3945_v53  ;;  %v4058_v36 = vpop.f32.mrb[99].mxu1 }
 0x1c7   : > { %v1624_v51 = vadd.f32 %v4056_v42, %v3944_v6  ;;  %v4059_v62 = vadd.f32 %v4058_v36, %v4057_v56  ;;  %2713 = vmatmul.mubr.bf16.gmra.mrb[204].mxu0 %v4928_v14 }
 0x1c8   : > { %2970 = vmatmul.mubr.bf16.gmra.mrb[204].mxu1 %v4901_v3  ;;  %2720 = vmatprep.mubr.bf16.mxu0 %v5269_v43 }
 0x1c9   : > { %v1702_v59 = vadd.f32 %v5611_v60, %v1624_v51  ;;  %v1627_v1 = vadd.f32 %v4059_v62, %v3947_v38  ;;  %2977 = vmatprep.mubr.bf16.mxu1 %v5237_v19 }
 0x1ca   : > { %v3948_v35 = vpop.f32.mrb[100].mxu0 }
 0x1cb   : > { %3379 = vst [vmem:[%s5337_s13 + $0x180] sm:$0xff] %v1702_v59  ;;  %v1703_v57 = vadd.f32 %v5611_v60, %v1627_v1  ;;  %v4060_v4 = vpop.f32.mrb[100].mxu1  ;;  %v3949_v44 = vpop.f32.mrb[101].mxu0 }
 0x1cc   : > { %v3950_v12 = vadd.f32 %v3949_v44, %v3948_v35  ;;  %v4061_v61 = vpop.f32.mrb[101].mxu1  ;;  %v3951_v18 = vpop.f32.mrb[102].mxu0 }
 0x1cd   : > { %3380 = vst [vmem:[%s5337_s13 + $0x188] sm:$0xff] %v1703_v57  ;;  %v4062_v10 = vadd.f32 %v4061_v61, %v4060_v4  ;;  %v4063_v3 = vpop.f32.mrb[102].mxu1  ;;  %v3952_v23 = vpop.f32.mrb[103].mxu0 }
 0x1ce   : > { %v3953_v24 = vadd.f32 %v3952_v23, %v3951_v18  ;;  %v4064_v45 = vpop.f32.mrb[103].mxu1 }
 0x1cf   : > { %v1632_v15 = vadd.f32 %v4062_v10, %v3950_v12  ;;  %v4065_v11 = vadd.f32 %v4064_v45, %v4063_v3  ;;  %2721 = vmatmul.mubr.bf16.gmra.mrb[208].mxu0 %v4955_v25 }
 0x1d0   : > { %2978 = vmatmul.mubr.bf16.gmra.mrb[208].mxu1 %v4928_v14  ;;  %2728 = vmatprep.mubr.bf16.mxu0 %v5277_v50 }
 0x1d1   : > { %v1704_v19 = vadd.f32 %v5611_v60, %v1632_v15  ;;  %v1635_v26 = vadd.f32 %v4065_v11, %v3953_v24  ;;  %2985 = vmatprep.mubr.bf16.mxu1 %v5269_v43 }
 0x1d2   : > { %v3954_v46 = vpop.f32.mrb[104].mxu0 }
 0x1d3   : > { %3381 = vst [vmem:[%s5337_s13 + $0x190] sm:$0xff] %v1704_v19  ;;  %v1705_v29 = vadd.f32 %v5611_v60, %v1635_v26  ;;  %v4066_v52 = vpop.f32.mrb[104].mxu1  ;;  %v3955_v20 = vpop.f32.mrb[105].mxu0 }
 0x1d4   : > { %v3956_v5 = vadd.f32 %v3955_v20, %v3954_v46  ;;  %v4067_v27 = vpop.f32.mrb[105].mxu1  ;;  %v3957_v48 = vpop.f32.mrb[106].mxu0 }
 0x1d5   : > { %3382 = vst [vmem:[%s5337_s13 + $0x198] sm:$0xff] %v1705_v29  ;;  %v4068_v31 = vadd.f32 %v4067_v27, %v4066_v52  ;;  %v4069_v14 = vpop.f32.mrb[106].mxu1  ;;  %v3958_v32 = vpop.f32.mrb[107].mxu0 }
 0x1d6   : > { %v3959_v28 = vadd.f32 %v3958_v32, %v3957_v48  ;;  %v4070_v40 = vpop.f32.mrb[107].mxu1 }
 0x1d7   : > { %v1640_v39 = vadd.f32 %v4068_v31, %v3956_v5  ;;  %v4071_v34 = vadd.f32 %v4070_v40, %v4069_v14  ;;  %2729 = vmatmul.mubr.bf16.gmra.mrb[212].mxu0 %v4982_v37 }
 0x1d8   : > { %2986 = vmatmul.mubr.bf16.gmra.mrb[212].mxu1 %v4955_v25  ;;  %2736 = vmatprep.mubr.bf16.mxu0 %v5285_v55 }
 0x1d9   : > { %v1706_v43 = vadd.f32 %v5611_v60, %v1640_v39  ;;  %v1643_v7 = vadd.f32 %v4071_v34, %v3959_v28  ;;  %2993 = vmatprep.mubr.bf16.mxu1 %v5277_v50 }
 0x1da   : > { %v3960_v6 = vpop.f32.mrb[108].mxu0 }
 0x1db   : > { %3383 = vst [vmem:[%s5337_s13 + $0x1a0] sm:$0xff] %v1706_v43  ;;  %v1707_v33 = vadd.f32 %v5611_v60, %v1643_v7  ;;  %v4072_v53 = vpop.f32.mrb[108].mxu1  ;;  %v3961_v42 = vpop.f32.mrb[109].mxu0 }
 0x1dc   : > { %v3962_v56 = vadd.f32 %v3961_v42, %v3960_v6  ;;  %v4073_v21 = vpop.f32.mrb[109].mxu1  ;;  %v3963_v38 = vpop.f32.mrb[110].mxu0 }
 0x1dd   : > { %3384 = vst [vmem:[%s5337_s13 + $0x1a8] sm:$0xff] %v1707_v33  ;;  %v4074_v36 = vadd.f32 %v4073_v21, %v4072_v53  ;;  %v4075_v25 = vpop.f32.mrb[110].mxu1  ;;  %v3964_v51 = vpop.f32.mrb[111].mxu0 }
 0x1de   : > { %v3965_v62 = vadd.f32 %v3964_v51, %v3963_v38  ;;  %v4076_v59 = vpop.f32.mrb[111].mxu1 }
 0x1df   : > { %v1648_v1 = vadd.f32 %v4074_v36, %v3962_v56  ;;  %v4077_v35 = vadd.f32 %v4076_v59, %v4075_v25  ;;  %2737 = vmatmul.mubr.bf16.gmra.mrb[216].mxu0 %v5006_v49 }
 0x1e0   : > { %2994 = vmatmul.mubr.bf16.gmra.mrb[216].mxu1 %v4982_v37  ;;  %2744 = vmatprep.mubr.bf16.mxu0 %v5293_v0 }
 0x1e1   : > { %v1708_v50 = vadd.f32 %v5611_v60, %v1648_v1  ;;  %v1651_v57 = vadd.f32 %v4077_v35, %v3965_v62  ;;  %3001 = vmatprep.mubr.bf16.mxu1 %v5285_v55 }
 0x1e2   : > { %v3966_v4 = vpop.f32.mrb[112].mxu0 }
 0x1e3   : > { %3385 = vst [vmem:[%s5337_s13 + $0x1b0] sm:$0xff] %v1708_v50  ;;  %v1709_v44 = vadd.f32 %v5611_v60, %v1651_v57  ;;  %v4078_v12 = vpop.f32.mrb[112].mxu1  ;;  %v3967_v61 = vpop.f32.mrb[113].mxu0 }
 0x1e4   : > { %v3968_v18 = vadd.f32 %v3967_v61, %v3966_v4  ;;  %v4079_v10 = vpop.f32.mrb[113].mxu1  ;;  %v3969_v3 = vpop.f32.mrb[114].mxu0 }
 0x1e5   : > { %3386 = vst [vmem:[%s5337_s13 + $0x1b8] sm:$0xff] %v1709_v44  ;;  %v4080_v23 = vadd.f32 %v4079_v10, %v4078_v12  ;;  %v4081_v37 = vpop.f32.mrb[114].mxu1  ;;  %v3970_v24 = vpop.f32.mrb[115].mxu0 }
 0x1e6   : > { %v3971_v45 = vadd.f32 %v3970_v24, %v3969_v3  ;;  %v4082_v15 = vpop.f32.mrb[115].mxu1 }
 0x1e7   : > { %v1656_v11 = vadd.f32 %v4080_v23, %v3968_v18  ;;  %v4083_v19 = vadd.f32 %v4082_v15, %v4081_v37  ;;  %2745 = vmatmul.mubr.bf16.gmra.mrb[220].mxu0 %v5033_v63 }
 0x1e8   : > { %3002 = vmatmul.mubr.bf16.gmra.mrb[220].mxu1 %v5006_v49  ;;  %2752 = vmatprep.mubr.bf16.mxu0 %v5301_v9 }
 0x1e9   : > { %v1710_v55 = vadd.f32 %v5611_v60, %v1656_v11  ;;  %v1659_v26 = vadd.f32 %v4083_v19, %v3971_v45  ;;  %3009 = vmatprep.mubr.bf16.mxu1 %v5293_v0 }
 0x1ea   : > { %v3972_v46 = vpop.f32.mrb[116].mxu0 }
 0x1eb   : > { %3387 = vst [vmem:[%s5337_s13 + $0x1c0] sm:$0xff] %v1710_v55  ;;  %v1711_v29 = vadd.f32 %v5611_v60, %v1659_v26  ;;  %v4084_v52 = vpop.f32.mrb[116].mxu1  ;;  %v3973_v20 = vpop.f32.mrb[117].mxu0 }
 0x1ec   : > { %v3974_v5 = vadd.f32 %v3973_v20, %v3972_v46  ;;  %v4085_v27 = vpop.f32.mrb[117].mxu1  ;;  %v3975_v48 = vpop.f32.mrb[118].mxu0 }
 0x1ed   : > { %3388 = vst [vmem:[%s5337_s13 + $0x1c8] sm:$0xff] %v1711_v29  ;;  %v4086_v31 = vadd.f32 %v4085_v27, %v4084_v52  ;;  %v4087_v49 = vpop.f32.mrb[118].mxu1  ;;  %v3976_v14 = vpop.f32.mrb[119].mxu0 }
 0x1ee   : > { %v3977_v32 = vadd.f32 %v3976_v14, %v3975_v48  ;;  %v4088_v28 = vpop.f32.mrb[119].mxu1  ;;  %v5876_v14 = vld [vmem:[#allocation5_spill] sm:$0xff] }
 0x1ef   : > { %v1664_v40 = vadd.f32 %v4086_v31, %v3974_v5  ;;  %v4089_v39 = vadd.f32 %v4088_v28, %v4087_v49  ;;  %2753 = vmatmul.mubr.bf16.gmra.mrb[224].mxu0 %v5048_v8 }
 0x1f0   : > { %3010 = vmatmul.mubr.bf16.gmra.mrb[224].mxu1 %v5033_v63  ;;  %2760 = vmatprep.mubr.bf16.mxu0 %v5309_v13 }
 0x1f1   : > { %v1712_v0 = vadd.f32 %v5611_v60, %v1664_v40  ;;  %v1667_v34 = vadd.f32 %v4089_v39, %v3977_v32  ;;  %3017 = vmatprep.mubr.bf16.mxu1 %v5301_v9  ;;  %v5874_v9 = vld [vmem:[#allocation3_spill] sm:$0xff] }
 0x1f2   : > { %v3978_v43 = vpop.f32.mrb[120].mxu0 }
 0x1f3   : > { %3389 = vst [vmem:[%s5337_s13 + $0x1d0] sm:$0xff] %v1712_v0  ;;  %v1713_v7 = vadd.f32 %v5611_v60, %v1667_v34  ;;  %v4090_v6 = vpop.f32.mrb[120].mxu1  ;;  %v3979_v33 = vpop.f32.mrb[121].mxu0 }
 0x1f4   : > { %v3980_v53 = vadd.f32 %v3979_v33, %v3978_v43  ;;  %v4091_v42 = vpop.f32.mrb[121].mxu1  ;;  %v3981_v56 = vpop.f32.mrb[122].mxu0 }
 0x1f5   : > { %3390 = vst [vmem:[%s5337_s13 + $0x1d8] sm:$0xff] %v1713_v7  ;;  %v4092_v21 = vadd.f32 %v4091_v42, %v4090_v6  ;;  %v4093_v63 = vpop.f32.mrb[122].mxu1  ;;  %v3982_v38 = vpop.f32.mrb[123].mxu0 }
 0x1f6   : > { %v3983_v36 = vadd.f32 %v3982_v38, %v3981_v56  ;;  %v4094_v25 = vpop.f32.mrb[123].mxu1 }
 0x1f7   : > { %v1672_v51 = vadd.f32 %v4092_v21, %v3980_v53  ;;  %v4095_v62 = vadd.f32 %v4094_v25, %v4093_v63  ;;  %2761 = vmatmul.mubr.bf16.gmra.mrb[228].mxu0 %v5060_v16 }
 0x1f8   : > { %3018 = vmatmul.mubr.bf16.gmra.mrb[228].mxu1 %v5048_v8  ;;  %2768 = vmatprep.mubr.bf16.mxu0 %v5874_v9 }
 0x1f9   : > { %v1714_v59 = vadd.f32 %v5611_v60, %v1672_v51  ;;  %v1675_v1 = vadd.f32 %v4095_v62, %v3983_v36  ;;  %3025 = vmatprep.mubr.bf16.mxu1 %v5309_v13  ;;  %v5875_v13 = vld [vmem:[#allocation4_spill] sm:$0xff] }
 0x1fa   : > { %v3984_v35 = vpop.f32.mrb[124].mxu0 }
 0x1fb   : > { %3391 = vst [vmem:[%s5337_s13 + $0x1e0] sm:$0xff] %v1714_v59  ;;  %v1715_v50 = vadd.f32 %v5611_v60, %v1675_v1  ;;  %v4096_v57 = vpop.f32.mrb[124].mxu1  ;;  %v3985_v4 = vpop.f32.mrb[125].mxu0 }
 0x1fc   : > { %v3986_v44 = vadd.f32 %v3985_v4, %v3984_v35  ;;  %v4097_v12 = vpop.f32.mrb[125].mxu1  ;;  %v3987_v61 = vpop.f32.mrb[126].mxu0 }
 0x1fd   : > { %3392 = vst [vmem:[%s5337_s13 + $0x1e8] sm:$0xff] %v1715_v50  ;;  %v4098_v18 = vadd.f32 %v4097_v12, %v4096_v57  ;;  %v4099_v8 = vpop.f32.mrb[126].mxu1  ;;  %v3988_v10 = vpop.f32.mrb[127].mxu0 }
 0x1fe   : > { %v3989_v3 = vadd.f32 %v3988_v10, %v3987_v61  ;;  %v4100_v23 = vpop.f32.mrb[127].mxu1  ;;  %v350_v10 = vld [vmem:[%s4825_s27 + $0x19a] sm:$0xff] }
 0x1ff   : > { %v1680_v37 = vadd.f32 %v4098_v18, %v3986_v44  ;;  %v4101_v24 = vadd.f32 %v4100_v23, %v4099_v8  ;;  %2769 = vmatmul.mubr.bf16.gmra.mrb[232].mxu0 %v5072_v22 }
 0x200   : > { %3026 = vmatmul.mubr.bf16.gmra.mrb[232].mxu1 %v5060_v16  ;;  %2776 = vmatprep.mubr.bf16.mxu0 %v5875_v13 }
 0x201   : > { %v1716_v45 = vadd.f32 %v5611_v60, %v1680_v37  ;;  %v1683_v15 = vadd.f32 %v4101_v24, %v3989_v3  ;;  %3033 = vmatprep.mubr.bf16.mxu1 %v5874_v9  ;;  %v351_v3 = vld [vmem:[%s4825_s27 + $0x1a2] sm:$0xff] }
 0x202   : > { %v4118_v11 = vpop.f32.mrb[128].mxu0 }
 0x203   : > { %3393 = vst [vmem:[%s5337_s13 + $0x1f0] sm:$0xff] %v1716_v45  ;;  %v1717_v19 = vadd.f32 %v5611_v60, %v1683_v15  ;;  %v4230_v55 = vpop.f32.mrb[128].mxu1  ;;  %v4119_v26 = vpop.f32.mrb[129].mxu0 }
 0x204   : > { %v4120_v46 = vadd.f32 %v4119_v26, %v4118_v11  ;;  %v4231_v29 = vpop.f32.mrb[129].mxu1  ;;  %v4121_v52 = vpop.f32.mrb[130].mxu0 }
 0x205   : > { %3394 = vst [vmem:[%s5337_s13 + $0x1f8] sm:$0xff] %v1717_v19  ;;  %v4232_v20 = vadd.f32 %v4231_v29, %v4230_v55  ;;  %v4233_v16 = vpop.f32.mrb[130].mxu1  ;;  %v4122_v5 = vpop.f32.mrb[131].mxu0 }
 0x206   : > { %v4123_v27 = vadd.f32 %v4122_v5, %v4121_v52  ;;  %v4234_v48 = vpop.f32.mrb[131].mxu1 }
 0x207   : > { %v2239_v31 = vadd.f32 %v4232_v20, %v4120_v46  ;;  %v4235_v49 = vadd.f32 %v4234_v48, %v4233_v16  ;;  %2777 = vmatmul.mubr.bf16.gmra.mrb[236].mxu0 %v5084_v30 }
 0x208   : > { %3034 = vmatmul.mubr.bf16.gmra.mrb[236].mxu1 %v5072_v22  ;;  %2784 = vmatprep.mubr.bf16.mxu0 %v5876_v14 }
 0x209   : > { %v2365_v32 = vadd.f32 %v5611_v60, %v2239_v31  ;;  %v2242_v28 = vadd.f32 %v4235_v49, %v4123_v27  ;;  %3041 = vmatprep.mubr.bf16.mxu1 %v5875_v13 }
 0x20a   : > { %v4124_v40 = vpop.f32.mrb[132].mxu0 }
 0x20b   : > { %3491 = vst [vmem:[%s5337_s13 + $0x200] sm:$0xff] %v2365_v32  ;;  %v2366_v39 = vadd.f32 %v5611_v60, %v2242_v28  ;;  %v4236_v0 = vpop.f32.mrb[132].mxu1  ;;  %v4125_v34 = vpop.f32.mrb[133].mxu0 }
 0x20c   : > { %v4126_v43 = vadd.f32 %v4125_v34, %v4124_v40  ;;  %v4237_v7 = vpop.f32.mrb[133].mxu1  ;;  %v4127_v6 = vpop.f32.mrb[134].mxu0 }
 0x20d   : > { %3492 = vst [vmem:[%s5337_s13 + $0x208] sm:$0xff] %v2366_v39  ;;  %v4238_v33 = vadd.f32 %v4237_v7, %v4236_v0  ;;  %v4239_v22 = vpop.f32.mrb[134].mxu1  ;;  %v4128_v53 = vpop.f32.mrb[135].mxu0 }
 0x20e   : > { %v4129_v42 = vadd.f32 %v4128_v53, %v4127_v6  ;;  %v4240_v56 = vpop.f32.mrb[135].mxu1 }
 0x20f   : > { %v2247_v21 = vadd.f32 %v4238_v33, %v4126_v43  ;;  %v4241_v63 = vadd.f32 %v4240_v56, %v4239_v22  ;;  %2785 = vmatmul.mubr.bf16.gmra.mrb[240].mxu0 %v5096_v41 }
 0x210   : > { %3042 = vmatmul.mubr.bf16.gmra.mrb[240].mxu1 %v5084_v30  ;;  %2792 = vmatprep.mubr.bf16.mxu0 %v5359_v54 }
 0x211   : > { %v2367_v38 = vadd.f32 %v5611_v60, %v2247_v21  ;;  %v2250_v36 = vadd.f32 %v4241_v63, %v4129_v42  ;;  %3049 = vmatprep.mubr.bf16.mxu1 %v5876_v14 }
 0x212   : > { %v4130_v25 = vpop.f32.mrb[136].mxu0 }
 0x213   : > { %3493 = vst [vmem:[%s5337_s13 + $0x210] sm:$0xff] %v2367_v38  ;;  %v2368_v51 = vadd.f32 %v5611_v60, %v2250_v36  ;;  %v4242_v62 = vpop.f32.mrb[136].mxu1  ;;  %v4131_v9 = vpop.f32.mrb[137].mxu0 }
 0x214   : > { %v4132_v59 = vadd.f32 %v4131_v9, %v4130_v25  ;;  %v4243_v1 = vpop.f32.mrb[137].mxu1  ;;  %v4133_v35 = vpop.f32.mrb[138].mxu0 }
 0x215   : > { %3494 = vst [vmem:[%s5337_s13 + $0x218] sm:$0xff] %v2368_v51  ;;  %v4244_v30 = vadd.f32 %v4243_v1, %v4242_v62  ;;  %v4245_v50 = vpop.f32.mrb[138].mxu1  ;;  %v4134_v57 = vpop.f32.mrb[139].mxu0 }
 0x216   : > { %v4135_v4 = vadd.f32 %v4134_v57, %v4133_v35  ;;  %v4246_v44 = vpop.f32.mrb[139].mxu1 }
 0x217   : > { %v2255_v12 = vadd.f32 %v4244_v30, %v4132_v59  ;;  %v4247_v61 = vadd.f32 %v4246_v44, %v4245_v50  ;;  %2793 = vmatmul.mubr.bf16.gmra.mrb[244].mxu0 %v5108_v47 }
 0x218   : > { %3050 = vmatmul.mubr.bf16.gmra.mrb[244].mxu1 %v5096_v41  ;;  %2800 = vmatprep.mubr.bf16.mxu0 %v5371_v2  ;;  %v369_v41 = vpack.c.bf16 %v351_v3, %v350_v10 }
 0x219   : > { %v2369_v18 = vadd.f32 %v5611_v60, %v2255_v12  ;;  %v2258_v8 = vadd.f32 %v4247_v61, %v4135_v4  ;;  %3057 = vmatprep.mubr.bf16.mxu1 %v5359_v54 }
 0x21a   : > { %v4136_v23 = vpop.f32.mrb[140].mxu0 }
 0x21b   : > { %3495 = vst [vmem:[%s5337_s13 + $0x220] sm:$0xff] %v2369_v18  ;;  %v2370_v37 = vadd.f32 %v5611_v60, %v2258_v8  ;;  %v4248_v24 = vpop.f32.mrb[140].mxu1  ;;  %v4137_v13 = vpop.f32.mrb[141].mxu0 }
 0x21c   : > { %v4138_v45 = vadd.f32 %v4137_v13, %v4136_v23  ;;  %v4249_v15 = vpop.f32.mrb[141].mxu1  ;;  %v4139_v11 = vpop.f32.mrb[142].mxu0 }
 0x21d   : > { %3496 = vst [vmem:[%s5337_s13 + $0x228] sm:$0xff] %v2370_v37  ;;  %v4250_v19 = vadd.f32 %v4249_v15, %v4248_v24  ;;  %v4251_v55 = vpop.f32.mrb[142].mxu1  ;;  %v4140_v26 = vpop.f32.mrb[143].mxu0 }
 0x21e   : > { %v4141_v46 = vadd.f32 %v4140_v26, %v4139_v11  ;;  %v4252_v29 = vpop.f32.mrb[143].mxu1 }
 0x21f   : > { %v2263_v54 = vadd.f32 %v4250_v19, %v4138_v45  ;;  %v4253_v52 = vadd.f32 %v4252_v29, %v4251_v55  ;;  %2801 = vmatmul.mubr.bf16.gmra.mrb[248].mxu0 %v5120_v58 }
 0x220   : > { %3058 = vmatmul.mubr.bf16.gmra.mrb[248].mxu1 %v5108_v47  ;;  %2808 = vmatprep.mubr.bf16.mxu0 %v369_v41 }
 0x221   : > { %v2371_v20 = vadd.f32 %v5611_v60, %v2263_v54  ;;  %v2266_v16 = vadd.f32 %v4253_v52, %v4141_v46  ;;  %3065 = vmatprep.mubr.bf16.mxu1 %v5371_v2 }
 0x222   : > { %v4142_v5 = vpop.f32.mrb[144].mxu0 }
 0x223   : > { %3497 = vst [vmem:[%s5337_s13 + $0x230] sm:$0xff] %v2371_v20  ;;  %v2372_v27 = vadd.f32 %v5611_v60, %v2266_v16  ;;  %v4254_v48 = vpop.f32.mrb[144].mxu1  ;;  %v4143_v31 = vpop.f32.mrb[145].mxu0 }
 0x224   : > { %v4144_v49 = vadd.f32 %v4143_v31, %v4142_v5  ;;  %v4255_v14 = vpop.f32.mrb[145].mxu1  ;;  %v4145_v32 = vpop.f32.mrb[146].mxu0 }
 0x225   : > { %3498 = vst [vmem:[%s5337_s13 + $0x238] sm:$0xff] %v2372_v27  ;;  %v4256_v28 = vadd.f32 %v4255_v14, %v4254_v48  ;;  %v4257_v40 = vpop.f32.mrb[146].mxu1  ;;  %v4146_v47 = vpop.f32.mrb[147].mxu0 }
 0x226   : > { %v4147_v39 = vadd.f32 %v4146_v47, %v4145_v32  ;;  %v4258_v0 = vpop.f32.mrb[147].mxu1 }
 0x227   : > { %v2271_v34 = vadd.f32 %v4256_v28, %v4144_v49  ;;  %v4259_v43 = vadd.f32 %v4258_v0, %v4257_v40  ;;  %2809 = vmatmul.mubr.bf16.gmra.mrb[252].mxu0 %v5593_v17 }
 0x228   : > { %3066 = vmatmul.mubr.bf16.gmra.mrb[252].mxu1 %v5120_v58 }
 0x229   : > { %v2373_v2 = vadd.f32 %v5611_v60, %v2271_v34  ;;  %v2274_v7 = vadd.f32 %v4259_v43, %v4147_v39 }
 0x22a   : > { %v4148_v6 = vpop.f32.mrb[148].mxu0 }
 0x22b   : > { %3499 = vst [vmem:[%s5337_s13 + $0x240] sm:$0xff] %v2373_v2  ;;  %v2374_v33 = vadd.f32 %v5611_v60, %v2274_v7  ;;  %v4260_v22 = vpop.f32.mrb[148].mxu1  ;;  %v4149_v53 = vpop.f32.mrb[149].mxu0 }
 0x22c   : > { %v4150_v42 = vadd.f32 %v4149_v53, %v4148_v6  ;;  %v4261_v56 = vpop.f32.mrb[149].mxu1  ;;  %v4151_v21 = vpop.f32.mrb[150].mxu0 }
 0x22d   : > { %3500 = vst [vmem:[%s5337_s13 + $0x248] sm:$0xff] %v2374_v33  ;;  %v4262_v63 = vadd.f32 %v4261_v56, %v4260_v22  ;;  %v4263_v38 = vpop.f32.mrb[150].mxu1  ;;  %v4152_v17 = vpop.f32.mrb[151].mxu0 }
 0x22e   : > { %v4153_v36 = vadd.f32 %v4152_v17, %v4151_v21  ;;  %v4264_v58 = vpop.f32.mrb[151].mxu1 }
 0x22f   : > { %v2279_v25 = vadd.f32 %v4262_v63, %v4150_v42  ;;  %v4265_v51 = vadd.f32 %v4264_v58, %v4263_v38 }
 0x231   : > { %v2375_v62 = vadd.f32 %v5611_v60, %v2279_v25  ;;  %v2282_v9 = vadd.f32 %v4265_v51, %v4153_v36 }
 0x232   : > { %v4154_v59 = vpop.f32.mrb[152].mxu0 }
 0x233   : > { %3501 = vst [vmem:[%s5337_s13 + $0x250] sm:$0xff] %v2375_v62  ;;  %v2376_v1 = vadd.f32 %v5611_v60, %v2282_v9  ;;  %v4266_v35 = vpop.f32.mrb[152].mxu1  ;;  %v4155_v30 = vpop.f32.mrb[153].mxu0 }
 0x234   : > { %v4156_v50 = vadd.f32 %v4155_v30, %v4154_v59  ;;  %v4267_v57 = vpop.f32.mrb[153].mxu1  ;;  %v4157_v4 = vpop.f32.mrb[154].mxu0 }
 0x235   : > { %3502 = vst [vmem:[%s5337_s13 + $0x258] sm:$0xff] %v2376_v1  ;;  %v4268_v44 = vadd.f32 %v4267_v57, %v4266_v35  ;;  %v4269_v12 = vpop.f32.mrb[154].mxu1  ;;  %v4158_v61 = vpop.f32.mrb[155].mxu0 }
 0x236   : > { %v4159_v18 = vadd.f32 %v4158_v61, %v4157_v4  ;;  %v4270_v8 = vpop.f32.mrb[155].mxu1 }
 0x237   : > { %v2287_v10 = vadd.f32 %v4268_v44, %v4156_v50  ;;  %v4271_v3 = vadd.f32 %v4270_v8, %v4269_v12 }
 0x239   : > { %v2377_v23 = vadd.f32 %v5611_v60, %v2287_v10  ;;  %v2290_v37 = vadd.f32 %v4271_v3, %v4159_v18 }
 0x23a   : > { %v4160_v24 = vpop.f32.mrb[156].mxu0 }
 0x23b   : > { %3503 = vst [vmem:[%s5337_s13 + $0x260] sm:$0xff] %v2377_v23  ;;  %v2378_v13 = vadd.f32 %v5611_v60, %v2290_v37  ;;  %v4272_v45 = vpop.f32.mrb[156].mxu1  ;;  %v4161_v15 = vpop.f32.mrb[157].mxu0 }
 0x23c   : > { %v4162_v11 = vadd.f32 %v4161_v15, %v4160_v24  ;;  %v4273_v41 = vpop.f32.mrb[157].mxu1  ;;  %v4163_v19 = vpop.f32.mrb[158].mxu0 }
 0x23d   : > { %3504 = vst [vmem:[%s5337_s13 + $0x268] sm:$0xff] %v2378_v13  ;;  %v4274_v55 = vadd.f32 %v4273_v41, %v4272_v45  ;;  %v4275_v26 = vpop.f32.mrb[158].mxu1  ;;  %v4164_v46 = vpop.f32.mrb[159].mxu0 }
 0x23e   : > { %v4165_v29 = vadd.f32 %v4164_v46, %v4163_v19  ;;  %v4276_v54 = vpop.f32.mrb[159].mxu1 }
 0x23f   : > { %v2295_v52 = vadd.f32 %v4274_v55, %v4162_v11  ;;  %v4277_v20 = vadd.f32 %v4276_v54, %v4275_v26 }
 0x241   : > { %v2379_v16 = vadd.f32 %v5611_v60, %v2295_v52  ;;  %v2298_v5 = vadd.f32 %v4277_v20, %v4165_v29 }
 0x242   : > { %v4166_v27 = vpop.f32.mrb[160].mxu0 }
 0x243   : > { %3505 = vst [vmem:[%s5337_s13 + $0x270] sm:$0xff] %v2379_v16  ;;  %v2380_v48 = vadd.f32 %v5611_v60, %v2298_v5  ;;  %v4278_v31 = vpop.f32.mrb[160].mxu1  ;;  %v4167_v49 = vpop.f32.mrb[161].mxu0 }
 0x244   : > { %v4168_v14 = vadd.f32 %v4167_v49, %v4166_v27  ;;  %v4279_v32 = vpop.f32.mrb[161].mxu1  ;;  %v4169_v28 = vpop.f32.mrb[162].mxu0 }
 0x245   : > { %3506 = vst [vmem:[%s5337_s13 + $0x278] sm:$0xff] %v2380_v48  ;;  %v4280_v40 = vadd.f32 %v4279_v32, %v4278_v31  ;;  %v4281_v47 = vpop.f32.mrb[162].mxu1  ;;  %v4170_v39 = vpop.f32.mrb[163].mxu0 }
 0x246   : > { %v4171_v0 = vadd.f32 %v4170_v39, %v4169_v28  ;;  %v4282_v34 = vpop.f32.mrb[163].mxu1 }
 0x247   : > { %v2303_v43 = vadd.f32 %v4280_v40, %v4168_v14  ;;  %v4283_v2 = vadd.f32 %v4282_v34, %v4281_v47 }
 0x249   : > { %v2381_v7 = vadd.f32 %v5611_v60, %v2303_v43  ;;  %v2306_v6 = vadd.f32 %v4283_v2, %v4171_v0 }
 0x24a   : > { %v4172_v33 = vpop.f32.mrb[164].mxu0 }
 0x24b   : > { %3507 = vst [vmem:[%s5337_s13 + $0x280] sm:$0xff] %v2381_v7  ;;  %v2382_v22 = vadd.f32 %v5611_v60, %v2306_v6  ;;  %v4284_v53 = vpop.f32.mrb[164].mxu1  ;;  %v4173_v42 = vpop.f32.mrb[165].mxu0 }
 0x24c   : > { %v4174_v56 = vadd.f32 %v4173_v42, %v4172_v33  ;;  %v4285_v21 = vpop.f32.mrb[165].mxu1  ;;  %v4175_v63 = vpop.f32.mrb[166].mxu0 }
 0x24d   : > { %3508 = vst [vmem:[%s5337_s13 + $0x288] sm:$0xff] %v2382_v22  ;;  %v4286_v38 = vadd.f32 %v4285_v21, %v4284_v53  ;;  %v4287_v17 = vpop.f32.mrb[166].mxu1  ;;  %v4176_v36 = vpop.f32.mrb[167].mxu0 }
 0x24e   : > { %v4177_v58 = vadd.f32 %v4176_v36, %v4175_v63  ;;  %v4288_v25 = vpop.f32.mrb[167].mxu1 }
 0x24f   : > { %v2311_v51 = vadd.f32 %v4286_v38, %v4174_v56  ;;  %v4289_v62 = vadd.f32 %v4288_v25, %v4287_v17 }
 0x251   : > { %v2383_v9 = vadd.f32 %v5611_v60, %v2311_v51  ;;  %v2314_v59 = vadd.f32 %v4289_v62, %v4177_v58 }
 0x252   : > { %v4178_v1 = vpop.f32.mrb[168].mxu0 }
 0x253   : > { %3509 = vst [vmem:[%s5337_s13 + $0x290] sm:$0xff] %v2383_v9  ;;  %v2384_v35 = vadd.f32 %v5611_v60, %v2314_v59  ;;  %v4290_v30 = vpop.f32.mrb[168].mxu1  ;;  %v4179_v50 = vpop.f32.mrb[169].mxu0  ;;  %v5780_v59 = vld [vmem:[%s5863_s2] ss:$0 sm:$0xff] }
 0x254   : > { %v4180_v57 = vadd.f32 %v4179_v50, %v4178_v1  ;;  %v4291_v4 = vpop.f32.mrb[169].mxu1  ;;  %v4181_v44 = vpop.f32.mrb[170].mxu0 }
 0x255   : > { %3510 = vst [vmem:[%s5337_s13 + $0x298] sm:$0xff] %v2384_v35  ;;  %v4292_v12 = vadd.f32 %v4291_v4, %v4290_v30  ;;  %v4293_v61 = vpop.f32.mrb[170].mxu1  ;;  %v4182_v18 = vpop.f32.mrb[171].mxu0 }
 0x256   : > { %v4183_v8 = vadd.f32 %v4182_v18, %v4181_v44  ;;  %v4294_v10 = vpop.f32.mrb[171].mxu1 }
 0x257   : > { %v2319_v3 = vadd.f32 %v4292_v12, %v4180_v57  ;;  %v4295_v23 = vadd.f32 %v4294_v10, %v4293_v61 }
 0x259   : > { %v2385_v37 = vadd.f32 %v5611_v60, %v2319_v3  ;;  %v2322_v24 = vadd.f32 %v4295_v23, %v4183_v8 }
 0x25a   : > { %v4184_v13 = vpop.f32.mrb[172].mxu0 }
 0x25b   : > { %3511 = vst [vmem:[%s5337_s13 + $0x2a0] sm:$0xff] %v2385_v37  ;;  %v2386_v45 = vadd.f32 %v5611_v60, %v2322_v24  ;;  %v4296_v15 = vpop.f32.mrb[172].mxu1  ;;  %v4185_v11 = vpop.f32.mrb[173].mxu0 }
 0x25c   : > { %v4186_v41 = vadd.f32 %v4185_v11, %v4184_v13  ;;  %v4297_v19 = vpop.f32.mrb[173].mxu1  ;;  %v4187_v55 = vpop.f32.mrb[174].mxu0 }
 0x25d   : > { %3512 = vst [vmem:[%s5337_s13 + $0x2a8] sm:$0xff] %v2386_v45  ;;  %v4298_v26 = vadd.f32 %v4297_v19, %v4296_v15  ;;  %v4299_v46 = vpop.f32.mrb[174].mxu1  ;;  %v4188_v29 = vpop.f32.mrb[175].mxu0 }
 0x25e   : > { %v4189_v54 = vadd.f32 %v4188_v29, %v4187_v55  ;;  %v4300_v52 = vpop.f32.mrb[175].mxu1 }
 0x25f   : > { %v2327_v20 = vadd.f32 %v4298_v26, %v4186_v41  ;;  %v4301_v16 = vadd.f32 %v4300_v52, %v4299_v46 }
 0x261   : > { %v2387_v5 = vadd.f32 %v5611_v60, %v2327_v20  ;;  %v2330_v27 = vadd.f32 %v4301_v16, %v4189_v54 }
 0x262   : > { %v4190_v48 = vpop.f32.mrb[176].mxu0 }
 0x263   : > { %3513 = vst [vmem:[%s5337_s13 + $0x2b0] sm:$0xff] %v2387_v5  ;;  %v2388_v31 = vadd.f32 %v5611_v60, %v2330_v27  ;;  %v4302_v49 = vpop.f32.mrb[176].mxu1  ;;  %v4191_v14 = vpop.f32.mrb[177].mxu0 }
 0x264   : > { %v4192_v32 = vadd.f32 %v4191_v14, %v4190_v48  ;;  %v4303_v28 = vpop.f32.mrb[177].mxu1  ;;  %v4193_v40 = vpop.f32.mrb[178].mxu0 }
 0x265   : > { %3514 = vst [vmem:[%s5337_s13 + $0x2b8] sm:$0xff] %v2388_v31  ;;  %v4304_v47 = vadd.f32 %v4303_v28, %v4302_v49  ;;  %v4305_v39 = vpop.f32.mrb[178].mxu1  ;;  %v4194_v0 = vpop.f32.mrb[179].mxu0 }
 0x266   : > { %v4195_v34 = vadd.f32 %v4194_v0, %v4193_v40  ;;  %v4306_v43 = vpop.f32.mrb[179].mxu1 }
 0x267   : > { %v2335_v2 = vadd.f32 %v4304_v47, %v4192_v32  ;;  %v4307_v7 = vadd.f32 %v4306_v43, %v4305_v39 }
 0x269   : > { %v2389_v6 = vadd.f32 %v5611_v60, %v2335_v2  ;;  %v2338_v33 = vadd.f32 %v4307_v7, %v4195_v34 }
 0x26a   : > { %v4196_v22 = vpop.f32.mrb[180].mxu0 }
 0x26b   : > { %3515 = vst [vmem:[%s5337_s13 + $0x2c0] sm:$0xff] %v2389_v6  ;;  %v2390_v53 = vadd.f32 %v5611_v60, %v2338_v33  ;;  %v4308_v42 = vpop.f32.mrb[180].mxu1  ;;  %v4197_v56 = vpop.f32.mrb[181].mxu0 }
 0x26c   : > { %v4198_v21 = vadd.f32 %v4197_v56, %v4196_v22  ;;  %v4309_v63 = vpop.f32.mrb[181].mxu1  ;;  %v4199_v38 = vpop.f32.mrb[182].mxu0 }
 0x26d   : > { %3516 = vst [vmem:[%s5337_s13 + $0x2c8] sm:$0xff] %v2390_v53  ;;  %v4310_v17 = vadd.f32 %v4309_v63, %v4308_v42  ;;  %v4311_v36 = vpop.f32.mrb[182].mxu1  ;;  %v4200_v58 = vpop.f32.mrb[183].mxu0 }
 0x26e   : > { %v4201_v25 = vadd.f32 %v4200_v58, %v4199_v38  ;;  %v4312_v51 = vpop.f32.mrb[183].mxu1 }
 0x26f   : > { %v2343_v62 = vadd.f32 %v4310_v17, %v4198_v21  ;;  %v4313_v9 = vadd.f32 %v4312_v51, %v4311_v36 }
 0x271   : > { %v2391_v60 = vadd.f32 %v5780_v59, %v2343_v62  ;;  %v2346_v1 = vadd.f32 %v4313_v9, %v4201_v25 }
 0x272   : > { %v4202_v35 = vpop.f32.mrb[184].mxu0 }
 0x273   : > { %3517 = vst [vmem:[%s5337_s13 + $0x2d0] sm:$0xff] %v2391_v60  ;;  %v2392_v30 = vadd.f32 %v5780_v59, %v2346_v1  ;;  %v4314_v50 = vpop.f32.mrb[184].mxu1  ;;  %v4203_v57 = vpop.f32.mrb[185].mxu0 }
 0x274   : > { %v4204_v4 = vadd.f32 %v4203_v57, %v4202_v35  ;;  %v4315_v44 = vpop.f32.mrb[185].mxu1  ;;  %v4205_v12 = vpop.f32.mrb[186].mxu0 }
 0x275   : > { %3518 = vst [vmem:[%s5337_s13 + $0x2d8] sm:$0xff] %v2392_v30  ;;  %v4316_v61 = vadd.f32 %v4315_v44, %v4314_v50  ;;  %v4317_v18 = vpop.f32.mrb[186].mxu1  ;;  %v4206_v8 = vpop.f32.mrb[187].mxu0 }
 0x276   : > { %v4207_v10 = vadd.f32 %v4206_v8, %v4205_v12  ;;  %v4318_v3 = vpop.f32.mrb[187].mxu1 }
 0x277   : > { %v2351_v23 = vadd.f32 %v4316_v61, %v4204_v4  ;;  %v4319_v37 = vadd.f32 %v4318_v3, %v4317_v18 }
 0x279   : > { %v2393_v24 = vadd.f32 %v5780_v59, %v2351_v23  ;;  %v2354_v13 = vadd.f32 %v4319_v37, %v4207_v10 }
 0x27a   : > { %v4208_v45 = vpop.f32.mrb[188].mxu0 }
 0x27b   : > { %3519 = vst [vmem:[%s5337_s13 + $0x2e0] sm:$0xff] %v2393_v24  ;;  %v2394_v15 = vadd.f32 %v5780_v59, %v2354_v13  ;;  %v4320_v11 = vpop.f32.mrb[188].mxu1  ;;  %v4209_v41 = vpop.f32.mrb[189].mxu0 }
 0x27c   : > { %v4210_v19 = vadd.f32 %v4209_v41, %v4208_v45  ;;  %v4321_v55 = vpop.f32.mrb[189].mxu1  ;;  %v4211_v26 = vpop.f32.mrb[190].mxu0 }
 0x27d   : > { %3520 = vst [vmem:[%s5337_s13 + $0x2e8] sm:$0xff] %v2394_v15  ;;  %v4322_v46 = vadd.f32 %v4321_v55, %v4320_v11  ;;  %v4323_v29 = vpop.f32.mrb[190].mxu1  ;;  %v4212_v54 = vpop.f32.mrb[191].mxu0 }
 0x27e   : > { %v4213_v52 = vadd.f32 %v4212_v54, %v4211_v26  ;;  %v4324_v20 = vpop.f32.mrb[191].mxu1 }
 0x27f   : > { %v2359_v16 = vadd.f32 %v4322_v46, %v4210_v19  ;;  %v4325_v5 = vadd.f32 %v4324_v20, %v4323_v29 }
 0x281   : > { %v2395_v27 = vadd.f32 %v5780_v59, %v2359_v16  ;;  %v2362_v48 = vadd.f32 %v4325_v5, %v4213_v52 }
 0x282   : > { %v4342_v31 = vpop.f32.mrb[192].mxu0 }
 0x283   : > { %3521 = vst [vmem:[%s5337_s13 + $0x2f0] sm:$0xff] %v2395_v27  ;;  %v2396_v49 = vadd.f32 %v5780_v59, %v2362_v48  ;;  %v4454_v14 = vpop.f32.mrb[192].mxu1  ;;  %v4343_v32 = vpop.f32.mrb[193].mxu0 }
 0x284   : > { %v4344_v28 = vadd.f32 %v4343_v32, %v4342_v31  ;;  %v4455_v40 = vpop.f32.mrb[193].mxu1  ;;  %v4345_v47 = vpop.f32.mrb[194].mxu0 }
 0x285   : > { %3522 = vst [vmem:[%s5337_s13 + $0x2f8] sm:$0xff] %v2396_v49  ;;  %v4456_v39 = vadd.f32 %v4455_v40, %v4454_v14  ;;  %v4457_v0 = vpop.f32.mrb[194].mxu1  ;;  %v4346_v34 = vpop.f32.mrb[195].mxu0 }
 0x286   : > { %v4347_v43 = vadd.f32 %v4346_v34, %v4345_v47  ;;  %v4458_v2 = vpop.f32.mrb[195].mxu1 }
 0x287   : > { %v2948_v7 = vadd.f32 %v4456_v39, %v4344_v28  ;;  %v4459_v6 = vadd.f32 %v4458_v2, %v4457_v0 }
 0x289   : > { %v3074_v33 = vadd.f32 %v5780_v59, %v2948_v7  ;;  %v2951_v22 = vadd.f32 %v4459_v6, %v4347_v43 }
 0x28a   : > { %v4348_v53 = vpop.f32.mrb[196].mxu0 }
 0x28b   : > { %3619 = vst [vmem:[%s5337_s13 + $0x300] sm:$0xff] %v3074_v33  ;;  %v3075_v42 = vadd.f32 %v5780_v59, %v2951_v22  ;;  %v4460_v56 = vpop.f32.mrb[196].mxu1  ;;  %v4349_v21 = vpop.f32.mrb[197].mxu0 }
 0x28c   : > { %v4350_v63 = vadd.f32 %v4349_v21, %v4348_v53  ;;  %v4461_v38 = vpop.f32.mrb[197].mxu1  ;;  %v4351_v17 = vpop.f32.mrb[198].mxu0 }
 0x28d   : > { %3620 = vst [vmem:[%s5337_s13 + $0x308] sm:$0xff] %v3075_v42  ;;  %v4462_v36 = vadd.f32 %v4461_v38, %v4460_v56  ;;  %v4463_v58 = vpop.f32.mrb[198].mxu1  ;;  %v4352_v25 = vpop.f32.mrb[199].mxu0 }
 0x28e   : > { %v4353_v51 = vadd.f32 %v4352_v25, %v4351_v17  ;;  %v4464_v62 = vpop.f32.mrb[199].mxu1 }
 0x28f   : > { %v2956_v9 = vadd.f32 %v4462_v36, %v4350_v63  ;;  %v4465_v60 = vadd.f32 %v4464_v62, %v4463_v58 }
 0x291   : > { %v3076_v1 = vadd.f32 %v5780_v59, %v2956_v9  ;;  %v2959_v35 = vadd.f32 %v4465_v60, %v4353_v51 }
 0x292   : > { %v4354_v30 = vpop.f32.mrb[200].mxu0 }
 0x293   : > { %3621 = vst [vmem:[%s5337_s13 + $0x310] sm:$0xff] %v3076_v1  ;;  %v3077_v50 = vadd.f32 %v5780_v59, %v2959_v35  ;;  %v4466_v57 = vpop.f32.mrb[200].mxu1  ;;  %v4355_v4 = vpop.f32.mrb[201].mxu0 }
 0x294   : > { %v4356_v44 = vadd.f32 %v4355_v4, %v4354_v30  ;;  %v4467_v12 = vpop.f32.mrb[201].mxu1  ;;  %v4357_v61 = vpop.f32.mrb[202].mxu0 }
 0x295   : > { %3622 = vst [vmem:[%s5337_s13 + $0x318] sm:$0xff] %v3077_v50  ;;  %v4468_v18 = vadd.f32 %v4467_v12, %v4466_v57  ;;  %v4469_v8 = vpop.f32.mrb[202].mxu1  ;;  %v4358_v10 = vpop.f32.mrb[203].mxu0 }
 0x296   : > { %v4359_v3 = vadd.f32 %v4358_v10, %v4357_v61  ;;  %v4470_v23 = vpop.f32.mrb[203].mxu1 }
 0x297   : > { %v2964_v37 = vadd.f32 %v4468_v18, %v4356_v44  ;;  %v4471_v24 = vadd.f32 %v4470_v23, %v4469_v8 }
 0x299   : > { %v3078_v13 = vadd.f32 %v5780_v59, %v2964_v37  ;;  %v2967_v45 = vadd.f32 %v4471_v24, %v4359_v3 }
 0x29a   : > { %v4360_v15 = vpop.f32.mrb[204].mxu0 }
 0x29b   : > { %3623 = vst [vmem:[%s5337_s13 + $0x320] sm:$0xff] %v3078_v13  ;;  %v3079_v11 = vadd.f32 %v5780_v59, %v2967_v45  ;;  %v4472_v41 = vpop.f32.mrb[204].mxu1  ;;  %v4361_v19 = vpop.f32.mrb[205].mxu0 }
 0x29c   : > { %v4362_v55 = vadd.f32 %v4361_v19, %v4360_v15  ;;  %v4473_v26 = vpop.f32.mrb[205].mxu1  ;;  %v4363_v46 = vpop.f32.mrb[206].mxu0 }
 0x29d   : > { %3624 = vst [vmem:[%s5337_s13 + $0x328] sm:$0xff] %v3079_v11  ;;  %v4474_v29 = vadd.f32 %v4473_v26, %v4472_v41  ;;  %v4475_v54 = vpop.f32.mrb[206].mxu1  ;;  %v4364_v52 = vpop.f32.mrb[207].mxu0 }
 0x29e   : > { %v4365_v20 = vadd.f32 %v4364_v52, %v4363_v46  ;;  %v4476_v16 = vpop.f32.mrb[207].mxu1 }
 0x29f   : > { %v2972_v5 = vadd.f32 %v4474_v29, %v4362_v55  ;;  %v4477_v27 = vadd.f32 %v4476_v16, %v4475_v54 }
 0x2a1   : > { %v3080_v48 = vadd.f32 %v5780_v59, %v2972_v5  ;;  %v2975_v31 = vadd.f32 %v4477_v27, %v4365_v20 }
 0x2a2   : > { %v4366_v49 = vpop.f32.mrb[208].mxu0 }
 0x2a3   : > { %3625 = vst [vmem:[%s5337_s13 + $0x330] sm:$0xff] %v3080_v48  ;;  %v3081_v14 = vadd.f32 %v5780_v59, %v2975_v31  ;;  %v4478_v32 = vpop.f32.mrb[208].mxu1  ;;  %v4367_v28 = vpop.f32.mrb[209].mxu0 }
 0x2a4   : > { %v4368_v40 = vadd.f32 %v4367_v28, %v4366_v49  ;;  %v4479_v47 = vpop.f32.mrb[209].mxu1  ;;  %v4369_v39 = vpop.f32.mrb[210].mxu0 }
 0x2a5   : > { %3626 = vst [vmem:[%s5337_s13 + $0x338] sm:$0xff] %v3081_v14  ;;  %v4480_v0 = vadd.f32 %v4479_v47, %v4478_v32  ;;  %v4481_v34 = vpop.f32.mrb[210].mxu1  ;;  %v4370_v43 = vpop.f32.mrb[211].mxu0 }
 0x2a6   : > { %v4371_v2 = vadd.f32 %v4370_v43, %v4369_v39  ;;  %v4482_v7 = vpop.f32.mrb[211].mxu1 }
 0x2a7   : > { %v2980_v6 = vadd.f32 %v4480_v0, %v4368_v40  ;;  %v4483_v33 = vadd.f32 %v4482_v7, %v4481_v34 }
 0x2a9   : > { %v3082_v22 = vadd.f32 %v5780_v59, %v2980_v6  ;;  %v2983_v53 = vadd.f32 %v4483_v33, %v4371_v2 }
 0x2aa   : > { %v4372_v42 = vpop.f32.mrb[212].mxu0 }
 0x2ab   : > { %3627 = vst [vmem:[%s5337_s13 + $0x340] sm:$0xff] %v3082_v22  ;;  %v3083_v56 = vadd.f32 %v5780_v59, %v2983_v53  ;;  %v4484_v21 = vpop.f32.mrb[212].mxu1  ;;  %v4373_v63 = vpop.f32.mrb[213].mxu0 }
 0x2ac   : > { %v4374_v38 = vadd.f32 %v4373_v63, %v4372_v42  ;;  %v4485_v17 = vpop.f32.mrb[213].mxu1  ;;  %v4375_v36 = vpop.f32.mrb[214].mxu0 }
 0x2ad   : > { %3628 = vst [vmem:[%s5337_s13 + $0x348] sm:$0xff] %v3083_v56  ;;  %v4486_v58 = vadd.f32 %v4485_v17, %v4484_v21  ;;  %v4487_v25 = vpop.f32.mrb[214].mxu1  ;;  %v4376_v51 = vpop.f32.mrb[215].mxu0 }
 0x2ae   : > { %v4377_v62 = vadd.f32 %v4376_v51, %v4375_v36  ;;  %v4488_v9 = vpop.f32.mrb[215].mxu1 }
 0x2af   : > { %v2988_v60 = vadd.f32 %v4486_v58, %v4374_v38  ;;  %v4489_v1 = vadd.f32 %v4488_v9, %v4487_v25 }
 0x2b1   : > { %v3084_v35 = vadd.f32 %v5780_v59, %v2988_v60  ;;  %v2991_v30 = vadd.f32 %v4489_v1, %v4377_v62 }
 0x2b2   : > { %v4378_v50 = vpop.f32.mrb[216].mxu0 }
 0x2b3   : > { %3629 = vst [vmem:[%s5337_s13 + $0x350] sm:$0xff] %v3084_v35  ;;  %v3085_v57 = vadd.f32 %v5780_v59, %v2991_v30  ;;  %v4490_v4 = vpop.f32.mrb[216].mxu1  ;;  %v4379_v44 = vpop.f32.mrb[217].mxu0 }
 0x2b4   : > { %v4380_v12 = vadd.f32 %v4379_v44, %v4378_v50  ;;  %v4491_v61 = vpop.f32.mrb[217].mxu1  ;;  %v4381_v18 = vpop.f32.mrb[218].mxu0 }
 0x2b5   : > { %3630 = vst [vmem:[%s5337_s13 + $0x358] sm:$0xff] %v3085_v57  ;;  %v4492_v8 = vadd.f32 %v4491_v61, %v4490_v4  ;;  %v4493_v10 = vpop.f32.mrb[218].mxu1  ;;  %v4382_v3 = vpop.f32.mrb[219].mxu0 }
 0x2b6   : > { %v4383_v23 = vadd.f32 %v4382_v3, %v4381_v18  ;;  %v4494_v37 = vpop.f32.mrb[219].mxu1 }
 0x2b7   : > { %v2996_v24 = vadd.f32 %v4492_v8, %v4380_v12  ;;  %v4495_v13 = vadd.f32 %v4494_v37, %v4493_v10 }
 0x2b9   : > { %v3086_v45 = vadd.f32 %v5780_v59, %v2996_v24  ;;  %v2999_v15 = vadd.f32 %v4495_v13, %v4383_v23 }
 0x2ba   : > { %v4384_v11 = vpop.f32.mrb[220].mxu0 }
 0x2bb   : > { %3631 = vst [vmem:[%s5337_s13 + $0x360] sm:$0xff] %v3086_v45  ;;  %v3087_v41 = vadd.f32 %v5780_v59, %v2999_v15  ;;  %v4496_v19 = vpop.f32.mrb[220].mxu1  ;;  %v4385_v55 = vpop.f32.mrb[221].mxu0 }
 0x2bc   : > { %v4386_v26 = vadd.f32 %v4385_v55, %v4384_v11  ;;  %v4497_v46 = vpop.f32.mrb[221].mxu1  ;;  %v4387_v29 = vpop.f32.mrb[222].mxu0 }
 0x2bd   : > { %3632 = vst [vmem:[%s5337_s13 + $0x368] sm:$0xff] %v3087_v41  ;;  %v4498_v54 = vadd.f32 %v4497_v46, %v4496_v19  ;;  %v4499_v52 = vpop.f32.mrb[222].mxu1  ;;  %v4388_v20 = vpop.f32.mrb[223].mxu0 }
 0x2be   : > { %v4389_v16 = vadd.f32 %v4388_v20, %v4387_v29  ;;  %v4500_v5 = vpop.f32.mrb[223].mxu1 }
 0x2bf   : > { %v3004_v27 = vadd.f32 %v4498_v54, %v4386_v26  ;;  %v4501_v48 = vadd.f32 %v4500_v5, %v4499_v52 }
 0x2c1   : > { %v3088_v31 = vadd.f32 %v5780_v59, %v3004_v27  ;;  %v3007_v49 = vadd.f32 %v4501_v48, %v4389_v16 }
 0x2c2   : > { %v4390_v14 = vpop.f32.mrb[224].mxu0 }
 0x2c3   : > { %3633 = vst [vmem:[%s5337_s13 + $0x370] sm:$0xff] %v3088_v31  ;;  %v3089_v32 = vadd.f32 %v5780_v59, %v3007_v49  ;;  %v4502_v28 = vpop.f32.mrb[224].mxu1  ;;  %v4391_v40 = vpop.f32.mrb[225].mxu0 }
 0x2c4   : > { %v4392_v47 = vadd.f32 %v4391_v40, %v4390_v14  ;;  %v4503_v39 = vpop.f32.mrb[225].mxu1  ;;  %v4393_v0 = vpop.f32.mrb[226].mxu0 }
 0x2c5   : > { %3634 = vst [vmem:[%s5337_s13 + $0x378] sm:$0xff] %v3089_v32  ;;  %v4504_v34 = vadd.f32 %v4503_v39, %v4502_v28  ;;  %v4505_v43 = vpop.f32.mrb[226].mxu1  ;;  %v4394_v2 = vpop.f32.mrb[227].mxu0 }
 0x2c6   : > { %v4395_v7 = vadd.f32 %v4394_v2, %v4393_v0  ;;  %v4506_v6 = vpop.f32.mrb[227].mxu1 }
 0x2c7   : > { %v3012_v33 = vadd.f32 %v4504_v34, %v4392_v47  ;;  %v4507_v22 = vadd.f32 %v4506_v6, %v4505_v43 }
 0x2c9   : > { %v3090_v53 = vadd.f32 %v5780_v59, %v3012_v33  ;;  %v3015_v42 = vadd.f32 %v4507_v22, %v4395_v7 }
 0x2ca   : > { %v4396_v56 = vpop.f32.mrb[228].mxu0 }
 0x2cb   : > { %3635 = vst [vmem:[%s5337_s13 + $0x380] sm:$0xff] %v3090_v53  ;;  %v3091_v21 = vadd.f32 %v5780_v59, %v3015_v42  ;;  %v4508_v63 = vpop.f32.mrb[228].mxu1  ;;  %v4397_v38 = vpop.f32.mrb[229].mxu0 }
 0x2cc   : > { %v4398_v17 = vadd.f32 %v4397_v38, %v4396_v56  ;;  %v4509_v36 = vpop.f32.mrb[229].mxu1  ;;  %v4399_v58 = vpop.f32.mrb[230].mxu0 }
 0x2cd   : > { %3636 = vst [vmem:[%s5337_s13 + $0x388] sm:$0xff] %v3091_v21  ;;  %v4510_v25 = vadd.f32 %v4509_v36, %v4508_v63  ;;  %v4511_v51 = vpop.f32.mrb[230].mxu1  ;;  %v4400_v62 = vpop.f32.mrb[231].mxu0 }
 0x2ce   : > { %v4401_v9 = vadd.f32 %v4400_v62, %v4399_v58  ;;  %v4512_v60 = vpop.f32.mrb[231].mxu1 }
 0x2cf   : > { %v3020_v1 = vadd.f32 %v4510_v25, %v4398_v17  ;;  %v4513_v35 = vadd.f32 %v4512_v60, %v4511_v51 }
 0x2d1   : > { %v3092_v30 = vadd.f32 %v5780_v59, %v3020_v1  ;;  %v3023_v50 = vadd.f32 %v4513_v35, %v4401_v9 }
 0x2d2   : > { %v4402_v57 = vpop.f32.mrb[232].mxu0 }
 0x2d3   : > { %3637 = vst [vmem:[%s5337_s13 + $0x390] sm:$0xff] %v3092_v30  ;;  %v3093_v4 = vadd.f32 %v5780_v59, %v3023_v50  ;;  %v4514_v44 = vpop.f32.mrb[232].mxu1  ;;  %v4403_v12 = vpop.f32.mrb[233].mxu0 }
 0x2d4   : > { %v4404_v61 = vadd.f32 %v4403_v12, %v4402_v57  ;;  %v4515_v18 = vpop.f32.mrb[233].mxu1  ;;  %v4405_v8 = vpop.f32.mrb[234].mxu0 }
 0x2d5   : > { %3638 = vst [vmem:[%s5337_s13 + $0x398] sm:$0xff] %v3093_v4  ;;  %v4516_v10 = vadd.f32 %v4515_v18, %v4514_v44  ;;  %v4517_v3 = vpop.f32.mrb[234].mxu1  ;;  %v4406_v23 = vpop.f32.mrb[235].mxu0 }
 0x2d6   : > { %v4407_v37 = vadd.f32 %v4406_v23, %v4405_v8  ;;  %v4518_v24 = vpop.f32.mrb[235].mxu1 }
 0x2d7   : > { %v3028_v13 = vadd.f32 %v4516_v10, %v4404_v61  ;;  %v4519_v45 = vadd.f32 %v4518_v24, %v4517_v3 }
 0x2d9   : > { %v3094_v15 = vadd.f32 %v5780_v59, %v3028_v13  ;;  %v3031_v11 = vadd.f32 %v4519_v45, %v4407_v37 }
 0x2da   : > { %v4408_v41 = vpop.f32.mrb[236].mxu0 }
 0x2db   : > { %3639 = vst [vmem:[%s5337_s13 + $0x3a0] sm:$0xff] %v3094_v15  ;;  %v3095_v19 = vadd.f32 %v5780_v59, %v3031_v11  ;;  %v4520_v55 = vpop.f32.mrb[236].mxu1  ;;  %v4409_v26 = vpop.f32.mrb[237].mxu0 }
 0x2dc   : > { %v4410_v46 = vadd.f32 %v4409_v26, %v4408_v41  ;;  %v4521_v29 = vpop.f32.mrb[237].mxu1  ;;  %v4411_v54 = vpop.f32.mrb[238].mxu0 }
 0x2dd   : > { %3640 = vst [vmem:[%s5337_s13 + $0x3a8] sm:$0xff] %v3095_v19  ;;  %v4522_v52 = vadd.f32 %v4521_v29, %v4520_v55  ;;  %v4523_v20 = vpop.f32.mrb[238].mxu1  ;;  %v4412_v16 = vpop.f32.mrb[239].mxu0 }
 0x2de   : > { %v4413_v5 = vadd.f32 %v4412_v16, %v4411_v54  ;;  %v4524_v27 = vpop.f32.mrb[239].mxu1 }
 0x2df   : > { %v3036_v48 = vadd.f32 %v4522_v52, %v4410_v46  ;;  %v4525_v31 = vadd.f32 %v4524_v27, %v4523_v20 }
 0x2e1   : > { %v3096_v49 = vadd.f32 %v5780_v59, %v3036_v48  ;;  %v3039_v14 = vadd.f32 %v4525_v31, %v4413_v5 }
 0x2e2   : > { %v4414_v32 = vpop.f32.mrb[240].mxu0 }
 0x2e3   : > { %3641 = vst [vmem:[%s5337_s13 + $0x3b0] sm:$0xff] %v3096_v49  ;;  %v3097_v28 = vadd.f32 %v5780_v59, %v3039_v14  ;;  %v4526_v40 = vpop.f32.mrb[240].mxu1  ;;  %v4415_v47 = vpop.f32.mrb[241].mxu0 }
 0x2e4   : > { %v4416_v39 = vadd.f32 %v4415_v47, %v4414_v32  ;;  %v4527_v0 = vpop.f32.mrb[241].mxu1  ;;  %v4417_v34 = vpop.f32.mrb[242].mxu0 }
 0x2e5   : > { %3642 = vst [vmem:[%s5337_s13 + $0x3b8] sm:$0xff] %v3097_v28  ;;  %v4528_v43 = vadd.f32 %v4527_v0, %v4526_v40  ;;  %v4529_v2 = vpop.f32.mrb[242].mxu1  ;;  %v4418_v7 = vpop.f32.mrb[243].mxu0 }
 0x2e6   : > { %v4419_v6 = vadd.f32 %v4418_v7, %v4417_v34  ;;  %v4530_v33 = vpop.f32.mrb[243].mxu1 }
 0x2e7   : > { %v3044_v22 = vadd.f32 %v4528_v43, %v4416_v39  ;;  %v4531_v53 = vadd.f32 %v4530_v33, %v4529_v2 }
 0x2e9   : > { %v3098_v42 = vadd.f32 %v5780_v59, %v3044_v22  ;;  %v3047_v56 = vadd.f32 %v4531_v53, %v4419_v6 }
 0x2ea   : > { %v4420_v21 = vpop.f32.mrb[244].mxu0 }
 0x2eb   : > { %3643 = vst [vmem:[%s5337_s13 + $0x3c0] sm:$0xff] %v3098_v42  ;;  %v3099_v63 = vadd.f32 %v5780_v59, %v3047_v56  ;;  %v4532_v38 = vpop.f32.mrb[244].mxu1  ;;  %v4421_v17 = vpop.f32.mrb[245].mxu0 }
 0x2ec   : > { %v4422_v36 = vadd.f32 %v4421_v17, %v4420_v21  ;;  %v4533_v58 = vpop.f32.mrb[245].mxu1  ;;  %v4423_v25 = vpop.f32.mrb[246].mxu0 }
 0x2ed   : > { %3644 = vst [vmem:[%s5337_s13 + $0x3c8] sm:$0xff] %v3099_v63  ;;  %v4534_v51 = vadd.f32 %v4533_v58, %v4532_v38  ;;  %v4535_v62 = vpop.f32.mrb[246].mxu1  ;;  %v4424_v9 = vpop.f32.mrb[247].mxu0 }
 0x2ee   : > { %v4425_v60 = vadd.f32 %v4424_v9, %v4423_v25  ;;  %v4536_v1 = vpop.f32.mrb[247].mxu1 }
 0x2ef   : > { %v3052_v35 = vadd.f32 %v4534_v51, %v4422_v36  ;;  %v4537_v30 = vadd.f32 %v4536_v1, %v4535_v62 }
 0x2f1   : > { %v3100_v50 = vadd.f32 %v5780_v59, %v3052_v35  ;;  %v3055_v57 = vadd.f32 %v4537_v30, %v4425_v60 }
 0x2f2   : > { %v4426_v4 = vpop.f32.mrb[248].mxu0 }
 0x2f3   : > { %3645 = vst [vmem:[%s5337_s13 + $0x3d0] sm:$0xff] %v3100_v50  ;;  %v3101_v44 = vadd.f32 %v5780_v59, %v3055_v57  ;;  %v4538_v12 = vpop.f32.mrb[248].mxu1  ;;  %v4427_v61 = vpop.f32.mrb[249].mxu0 }
 0x2f4   : > { %v4428_v18 = vadd.f32 %v4427_v61, %v4426_v4  ;;  %v4539_v8 = vpop.f32.mrb[249].mxu1  ;;  %v4429_v10 = vpop.f32.mrb[250].mxu0 }
 0x2f5   : > { %3646 = vst [vmem:[%s5337_s13 + $0x3d8] sm:$0xff] %v3101_v44  ;;  %v4540_v3 = vadd.f32 %v4539_v8, %v4538_v12  ;;  %v4541_v23 = vpop.f32.mrb[250].mxu1  ;;  %v4430_v37 = vpop.f32.mrb[251].mxu0 }
 0x2f6   : > { %v4431_v24 = vadd.f32 %v4430_v37, %v4429_v10  ;;  %v4542_v13 = vpop.f32.mrb[251].mxu1 }
 0x2f7   : > { %v3060_v45 = vadd.f32 %v4540_v3, %v4428_v18  ;;  %v4543_v15 = vadd.f32 %v4542_v13, %v4541_v23 }
 0x2f9   : > { %v3102_v11 = vadd.f32 %v5780_v59, %v3060_v45  ;;  %v3063_v41 = vadd.f32 %v4543_v15, %v4431_v24 }
 0x2fa   : > { %v4432_v19 = vpop.f32.mrb[252].mxu0 }
 0x2fb   : > { %3647 = vst [vmem:[%s5337_s13 + $0x3e0] sm:$0xff] %v3102_v11  ;;  %v3103_v55 = vadd.f32 %v5780_v59, %v3063_v41  ;;  %v4544_v26 = vpop.f32.mrb[252].mxu1  ;;  %v4433_v46 = vpop.f32.mrb[253].mxu0 }
 0x2fc   : > { %v4434_v29 = vadd.f32 %v4433_v46, %v4432_v19  ;;  %v4545_v54 = vpop.f32.mrb[253].mxu1  ;;  %v4435_v52 = vpop.f32.mrb[254].mxu0 }
 0x2fd   : > { %3648 = vst [vmem:[%s5337_s13 + $0x3e8] sm:$0xff] %v3103_v55  ;;  %v4546_v20 = vadd.f32 %v4545_v54, %v4544_v26  ;;  %v4547_v16 = vpop.f32.mrb[254].mxu1  ;;  %v4436_v5 = vpop.f32.mrb[255].mxu0 }
 0x2fe   : > { %v4437_v27 = vadd.f32 %v4436_v5, %v4435_v52  ;;  %v4548_v48 = vpop.f32.mrb[255].mxu1 }
 0x2ff   : > { %v3068_v31 = vadd.f32 %v4546_v20, %v4434_v29  ;;  %v4549_v49 = vadd.f32 %v4548_v48, %v4547_v16 }
 0x301   : > { %v3104_v14 = vadd.f32 %v5780_v59, %v3068_v31  ;;  %v3071_v32 = vadd.f32 %v4549_v49, %v4437_v27 }
 0x303   : > { %3649 = vst [vmem:[%s5337_s13 + $0x3f0] sm:$0xff] %v3104_v14  ;;  %v3105_v28 = vadd.f32 %v5780_v59, %v3071_v32 }
 0x305   : > { %3650 = vst [vmem:[%s5337_s13 + $0x3f8] sm:$0xff] %v3105_v28 }
 0x306 PF: > { %s13_s12 = sadd.s32 1, %s4695_s12  }
 0x307   : > { %p10_p4 = scmp.ge.s32.totalorder %s13_s12, 4  }
 0x309   :  { %12 = sbr.rel (!%p10_p4) target bundleno = 1 (0x1), region = 72 }

</bundles_post_ra>
